<compile_context>
chip_gen: v6e
topology: v6e:2x2x1
jax: 0.10.0
libtpu: 0.0.40
codegen_flags: <defaults>
</compile_context>

<pallas_src>
import functools

import jax
import jax.numpy as jnp
from jax import lax
from jax.experimental import pallas as pl
from jax.experimental.pallas import tpu as pltpu


def _sigmoid_via_tanh(x):
    # sigmoid(x) == 0.5 * tanh(0.5 * x) + 0.5  -> one EUP op instead of exp + recip.
    return 0.5 * jnp.tanh(0.5 * x) + 0.5


def _gated_pixelcnn_kernel(*refs, kh_eff, spatial_w, residual):
    if residual:
        (pv_ref, ph_ref, xh_ref, emb_ref, bg_ref,
         wv_ref, wcat_ref, wr_ref, br_ref, out_ref) = refs
    else:
        (pv_ref, ph_ref, emb_ref, bg_ref,
         wv_ref, wcat_ref, wr_ref, br_ref, out_ref) = refs
        xh_ref = None

    BN, HW, _ = ph_ref.shape
    C = wr_ref.shape[0]
    C2 = 2 * C
    KWC = wv_ref.shape[1]
    M = BN * HW

    # --- vertical stack: kh_eff row-shifted (M, KW*C) x (KW*C, 2C) matmuls ------
    # pv_ref holds only the width-im2col of the row-padded input; each row tap is
    # an aligned sublane slice (offset di*W, W a multiple of 8) -> free view, and
    # no kh_eff-fold duplication of pv in HBM.
    h_vert = None
    for di in range(kh_eff):
        pv_slab = pv_ref[:, di * spatial_w: di * spatial_w + HW, :].reshape(M, KWC)
        part = jnp.dot(pv_slab, wv_ref[di], preferred_element_type=jnp.float32)
        h_vert = part if h_vert is None else h_vert + part

    # gated activation, vertical stack (emb_ref = class_emb + b_vert, pre-folded)
    gv = h_vert.reshape(BN, HW, C2) + emb_ref[...]
    out_v = jnp.tanh(gv[..., :C]) * _sigmoid_via_tanh(gv[..., C:])

    # --- fused (1x1 vert->horiz  +  horizontal stack) matmul --------------------
    cat = jnp.concatenate(
        [h_vert.astype(jnp.bfloat16), ph_ref[...].reshape(M, -1)], axis=-1)
    g = jnp.dot(cat, wcat_ref[...], preferred_element_type=jnp.float32)
    g = g.reshape(BN, HW, C2) + bg_ref[...]     # bg = emb + b_v2h + b_h + b_v @ W_v2h
    out = jnp.tanh(g[..., :C]) * _sigmoid_via_tanh(g[..., C:])

    # --- 1x1 residual conv (+ skip connection) ---------------------------------
    out_h = jnp.dot(out.reshape(M, C).astype(jnp.bfloat16), wr_ref[...],
                    preferred_element_type=jnp.float32) + br_ref[...]
    out_h = out_h.reshape(BN, HW, C)
    if residual:
        out_h = out_h + xh_ref[...]

    # single lane-dense store: channels [0:C] = out_v, [C:2C] = out_h
    out_ref[...] = jnp.concatenate([out_v, out_h], axis=-1).astype(out_ref.dtype)


def gated_masked_conv2d(x_v, x_h, labels, params, *, kernel_size, mask_type,
                        residual, block_n=32):
    """x_v, x_h: (N, H, W, C) NHWC float32; labels: (N,) int32 class ids."""
    N, H, W, C = x_v.shape
    assert H == W, "the PyTorch module's output slicing assumes square spatial dims"
    P = kernel_size // 2
    KH, KW, KWH = P + 1, kernel_size, P + 1
    C2 = 2 * C
    HW = H * W

    # mask 'A' (make_causal): drop the last vertical kernel row / last horizontal
    # kernel column statically instead of zeroing weights in HBM.
    kh_eff = KH - 1 if mask_type == "A" else KH
    kwh_eff = KWH - 1 if mask_type == "A" else KWH
    assert kh_eff >= 1 and kwh_eff >= 1, "mask 'A' needs kernel_size >= 3"

    # Batch block: pad N up to a multiple of block_n (padded rows use label 0 and
    # zero activations; they are sliced off below).  block_n ~32 keeps per-step
    # VMEM far under the v7x 64 MiB budget while M = bn*HW amortizes the ~0.35 us
    # per-grid-step pipeline overhead and fills MXU rows.
    bn = max(1, min(block_n, N))
    n_blocks = pl.cdiv(N, bn)
    N_pad = n_blocks * bn
    if N_pad != N:
        pad = N_pad - N
        x_v = jnp.pad(x_v, ((0, pad), (0, 0), (0, 0), (0, 0)))
        x_h = jnp.pad(x_h, ((0, pad), (0, 0), (0, 0), (0, 0)))
        labels = jnp.pad(labels, (0, pad))

    Wv, bv = params["vert_w"], params["vert_b"]
    Wvh, bvh = params["v2h_w"], params["v2h_b"]
    Wh, bh = params["horiz_w"], params["horiz_b"]
    Wr, br = params["resid_w"], params["resid_b"]

    # class-conditional embedding lookup + bias folding (glue stays in XLA)
    emb = jnp.take(params["emb"], labels, axis=0).astype(jnp.float32)    # (N_pad, 2C)
    bv_row = bv.reshape(1, C2).astype(jnp.float32)
    emb_v = (emb + bv_row)[:, None, :]                                   # vert gate bias
    bias_g = (emb + bvh.reshape(1, C2) + bh.reshape(1, C2)
              + bv_row @ Wvh.astype(jnp.float32))[:, None, :]            # horiz gate bias

    # vertical stack: width-only im2col of the row-padded input -> (N, HR*W, KW*C);
    # the kh_eff row taps become aligned in-kernel sublane slices.
    HR = H + kh_eff - 1
    xv_pad = jnp.pad(x_v, ((0, 0), (P, 0), (P, P), (0, 0)))[:, :HR]      # (N, HR, W+2P, C)
    pv = jnp.concatenate([xv_pad[:, :, dj:dj + W, :] for dj in range(KW)], axis=-1)
    pv = pv.reshape(N_pad, HR * W, KW * C).astype(jnp.bfloat16)

    # horizontal stack: width im2col (kwh_eff taps)
    xh_pad = jnp.pad(x_h, ((0, 0), (0, 0), (P, 0), (0, 0)))
    ph = jnp.concatenate([xh_pad[:, :, dj:dj + W, :] for dj in range(kwh_eff)], axis=-1)
    ph = ph.reshape(N_pad, HW, kwh_eff * C).astype(jnp.bfloat16)

    # folded weights (bf16 MXU operands, f32 accumulation)
    KWC = KW * C
    kcat = C2 + kwh_eff * C
    wv_f = Wv[:kh_eff].reshape(kh_eff, KWC, C2).astype(jnp.bfloat16)
    wh_f = Wh[:kwh_eff].reshape(kwh_eff * C, C2)
    wcat = jnp.concatenate([Wvh, wh_f], axis=0).astype(jnp.bfloat16)     # (2C+kwh*C, 2C)
    wr = Wr.astype(jnp.bfloat16)
    br_f = br.reshape(1, C).astype(jnp.float32)

    in_specs = [
        pl.BlockSpec((bn, HR * W, KWC), lambda n: (n, 0, 0)),       # vert width-im2col
        pl.BlockSpec((bn, HW, kwh_eff * C), lambda n: (n, 0, 0)),   # horiz im2col
    ]
    args = [pv, ph]
    if residual:  # x_h is only streamed when the skip connection actually reads it
        in_specs.append(pl.BlockSpec((bn, HW, C), lambda n: (n, 0, 0)))
        args.append(x_h.reshape(N_pad, HW, C))
    in_specs += [
        pl.BlockSpec((bn, 1, C2), lambda n: (n, 0, 0)),             # emb + b_v
        pl.BlockSpec((bn, 1, C2), lambda n: (n, 0, 0)),             # emb + b_v2h + b_h + b_v@Wvh
        pl.BlockSpec((kh_eff, KWC, C2), lambda n: (0, 0, 0)),       # per-row vert weights
        pl.BlockSpec((kcat, C2), lambda n: (0, 0)),                 # fused [W_v2h ; W_h]
        pl.BlockSpec((C, C), lambda n: (0, 0)),                     # 1x1 residual weight
        pl.BlockSpec((1, C), lambda n: (0, 0)),                     # residual bias
    ]
    args += [emb_v, bias_g, wv_f, wcat, wr, br_f]

    # single fused, lane-dense (2C-wide) output block: [out_v | out_h]
    out_specs = pl.BlockSpec((bn, HW, C2), lambda n: (n, 0, 0))
    out_shape = jax.ShapeDtypeStruct((N_pad, HW, C2), x_v.dtype)

    kern = functools.partial(_gated_pixelcnn_kernel, kh_eff=kh_eff,
                             spatial_w=W, residual=residual)

    flops = 2 * N_pad * HW * (kh_eff * KWC * C2 + kcat * C2 + C * C)
    bytes_accessed = int(sum(a.size * a.dtype.itemsize for a in args)
                         + N_pad * HW * C2 * x_v.dtype.itemsize)
    cost = pl.CostEstimate(flops=flops, transcendentals=2 * N_pad * HW * C2,
                           bytes_accessed=bytes_accessed)

    fused = pl.pallas_call(
        kern,
        out_shape=out_shape,
        grid_spec=pltpu.PrefetchScalarGridSpec(
            num_scalar_prefetch=0,
            grid=(n_blocks,),
            in_specs=in_specs,
            out_specs=out_specs,
        ),
        compiler_params=pltpu.CompilerParams(
            dimension_semantics=("parallel",),
            vmem_limit_bytes=48 << 20),   # > v5e/v6e scoped defaults, < v7x physical
        cost_estimate=cost,
    )(*args)

    fused = fused.reshape(N_pad, H, W, C2)[:N]
    return fused[..., :C], fused[..., C:]


# ------------------------- pure-JAX reference (sanity check) -------------------------

def _gate(x):
    a, b = jnp.split(x, 2, axis=-1)
    return jnp.tanh(a) * jax.nn.sigmoid(b)


def reference(x_v, x_h, labels, params, *, kernel_size, mask_type, residual):
    N, H, W, C = x_v.shape
    P = kernel_size // 2
    dn = ("NHWC", "HWIO", "NHWC")

    Wv, Wh = params["vert_w"], params["horiz_w"]
    if mask_type == "A":
        Wv = Wv.at[-1].set(0.0)
        Wh = Wh.at[-1].set(0.0)

    emb = params["emb"][labels][:, None, None, :]
    bv = params["vert_b"].reshape(1, 1, 1, -1)
    bvh = params["v2h_b"].reshape(1, 1, 1, -1)
    bh = params["horiz_b"].reshape(1, 1, 1, -1)
    br = params["resid_b"].reshape(1, 1, 1, -1)

    h_vert = lax.conv_general_dilated(x_v, Wv, (1, 1), [(P, P), (P, P)],
                                      dimension_numbers=dn) + bv
    h_vert = h_vert[:, :W, :, :]          # h_vert[:, :, :x_v.size(-1), :] in NCHW
    out_v = _gate(h_vert + emb)

    h_horiz = lax.conv_general_dilated(x_h, Wh[None], (1, 1), [(0, 0), (P, P)],
                                       dimension_numbers=dn) + bh
    h_horiz = h_horiz[:, :, :H, :]        # h_horiz[:, :, :, :x_h.size(-2)] in NCHW

    v2h = lax.conv_general_dilated(h_vert, params["v2h_w"][None, None], (1, 1), "VALID",
                                   dimension_numbers=dn) + bvh
    out = _gate(v2h + h_horiz + emb)

    out_h = lax.conv_general_dilated(out, params["resid_w"][None, None], (1, 1), "VALID",
                                     dimension_numbers=dn) + br
    if residual:
        out_h = out_h + x_h
    return out_v, out_h


# ---------------------------------------- main ----------------------------------------

if __name__ == "__main__":
    N, Cch, H, W = 13, 64, 8, 8          # N=13 exercises the batch-padding path
    kernel_size = 3
    num_classes = 10

    P = kernel_size // 2
    KH, KW, KWH = P + 1, kernel_size, P + 1
    C2 = 2 * Cch

    key = jax.random.PRNGKey(0)
    ks = jax.random.split(key, 12)
    scale = 0.05
    params = {
        "emb":     jax.random.normal(ks[0], (num_classes, C2), jnp.float32) * scale,
        "vert_w":  jax.random.normal(ks[1], (KH, KW, Cch, C2), jnp.float32) * scale,
        "vert_b":  jax.random.normal(ks[2], (1, C2), jnp.float32) * scale,
        "v2h_w":   jax.random.normal(ks[3], (C2, C2), jnp.float32) * scale,
        "v2h_b":   jax.random.normal(ks[4], (1, C2), jnp.float32) * scale,
        "horiz_w": jax.random.normal(ks[5], (KWH, Cch, C2), jnp.float32) * scale,
        "horiz_b": jax.random.normal(ks[6], (1, C2), jnp.float32) * scale,
        "resid_w": jax.random.normal(ks[7], (Cch, Cch), jnp.float32) * scale,
        "resid_b": jax.random.normal(ks[8], (1, Cch), jnp.float32) * scale,
    }

    x_v = jax.random.normal(ks[9], (N, H, W, Cch), jnp.float32)
    x_h = jax.random.normal(ks[10], (N, H, W, Cch), jnp.float32)
    labels = jax.random.randint(ks[11], (N,), 0, num_classes, dtype=jnp.int32)

    # exercise both real configurations: first layer (mask A, no residual) and
    # inner layers (mask B, residual).
    for mask_type, residual in (("A", False), ("B", True)):
        out_v, out_h = gated_masked_conv2d(
            x_v, x_h, labels, params, kernel_size=kernel_size,
            mask_type=mask_type, residual=residual, block_n=8)
        jax.block_until_ready((out_v, out_h))

        ref_v, ref_h = reference(
            x_v, x_h, labels, params, kernel_size=kernel_size,
            mask_type=mask_type, residual=residual)
        err_v = float(jnp.max(jnp.abs(out_v - ref_v)))
        err_h = float(jnp.max(jnp.abs(out_h - ref_h)))
        if not (err_v < 5e-2 and err_h < 5e-2):
            raise SystemExit(
                f"MISMATCH mask={mask_type} residual={residual}: "
                f"err_v={err_v} err_h={err_h}")

    print("KERNEL_OK")
</pallas_src>

<mosaic_0001>
module attributes {stable_mosaic.version = 11 : i64} {
  func.func @_gated_pixelcnn_kernel(%arg0: i32, %arg1: memref<8x64x192xbf16, #tpu.memory_space<vmem>>, %arg2: memref<8x64x64xbf16, #tpu.memory_space<vmem>>, %arg3: memref<8x1x128xf32, #tpu.memory_space<vmem>>, %arg4: memref<8x1x128xf32, #tpu.memory_space<vmem>>, %arg5: memref<1x192x128xbf16, #tpu.memory_space<vmem>>, %arg6: memref<192x128xbf16, #tpu.memory_space<vmem>>, %arg7: memref<64x64xbf16, #tpu.memory_space<vmem>>, %arg8: memref<1x64xf32, #tpu.memory_space<vmem>>, %arg9: memref<8x64x128xf32, #tpu.memory_space<vmem>>) attributes {dimension_semantics = [#tpu.dimension_semantics<parallel>], iteration_bounds = array<i64: 2>, scalar_prefetch = 0 : i64, scratch_operands = 0 : i64, tpu.core_type = #tpu.core_type<tc>, window_params = [{transform_indices = @transform_0, window_bounds = array<i64: 8, 64, 192>}, {transform_indices = @transform_1, window_bounds = array<i64: 8, 64, 64>}, {transform_indices = @transform_2, window_bounds = array<i64: 8, 1, 128>}, {transform_indices = @transform_3, window_bounds = array<i64: 8, 1, 128>}, {pipeline_mode = #tpu.pipeline_mode<synchronous>, transform_indices = @transform_4, window_bounds = array<i64: 1, 192, 128>}, {pipeline_mode = #tpu.pipeline_mode<synchronous>, transform_indices = @transform_5, window_bounds = array<i64: 192, 128>}, {pipeline_mode = #tpu.pipeline_mode<synchronous>, transform_indices = @transform_6, window_bounds = array<i64: 64, 64>}, {pipeline_mode = #tpu.pipeline_mode<synchronous>, transform_indices = @transform_7, window_bounds = array<i64: 1, 64>}, {transform_indices = @transform_8, window_bounds = array<i64: 8, 64, 128>}]} {
    %c0 = arith.constant 0 : index
    %c0_0 = arith.constant 0 : index
    %c0_1 = arith.constant 0 : index
    %0 = vector.load %arg1[%c0, %c0_0, %c0_1] : memref<8x64x192xbf16, #tpu.memory_space<vmem>>, vector<8x64x192xbf16>
    %1 = vector.shape_cast %0 : vector<8x64x192xbf16> to vector<512x192xbf16>
    %c0_2 = arith.constant 0 : index
    %c0_3 = arith.constant 0 : index
    %c0_4 = arith.constant 0 : index
    %2 = vector.load %arg5[%c0_2, %c0_3, %c0_4] : memref<1x192x128xbf16, #tpu.memory_space<vmem>>, vector<1x192x128xbf16>
    %3 = vector.shape_cast %2 : vector<1x192x128xbf16> to vector<192x128xbf16>
    %cst = arith.constant dense<0.000000e+00> : vector<512x128xf32>
    %4 = tpu.matmul %1, %3, %cst {dimension_numbers = #tpu.dot_dimension_numbers<[1], [0], [0], [1], [0, 0, 1, 1], [], []>} : vector<512x192xbf16>, vector<192x128xbf16>, vector<512x128xf32> -> vector<512x128xf32>
    %5 = vector.shape_cast %4 : vector<512x128xf32> to vector<8x64x128xf32>
    %c0_5 = arith.constant 0 : index
    %c0_6 = arith.constant 0 : index
    %c0_7 = arith.constant 0 : index
    %6 = vector.load %arg3[%c0_5, %c0_6, %c0_7] : memref<8x1x128xf32, #tpu.memory_space<vmem>>, vector<8x1x128xf32>
    %7 = vector.broadcast %6 : vector<8x1x128xf32> to vector<8x64x128xf32>
    %8 = arith.addf %5, %7 : vector<8x64x128xf32>
    %9 = vector.extract_strided_slice %8 {offsets = [0, 0, 0], sizes = [8, 64, 64], strides = [1, 1, 1]} : vector<8x64x128xf32> to vector<8x64x64xf32>
    %10 = math.tanh %9 : vector<8x64x64xf32>
    %11 = vector.extract_strided_slice %8 {offsets = [0, 0, 64], sizes = [8, 64, 64], strides = [1, 1, 1]} : vector<8x64x128xf32> to vector<8x64x64xf32>
    %cst_8 = arith.constant 5.000000e-01 : f32
    %12 = vector.broadcast %cst_8 : f32 to vector<8x64x64xf32>
    %13 = arith.mulf %12, %11 : vector<8x64x64xf32>
    %14 = math.tanh %13 : vector<8x64x64xf32>
    %cst_9 = arith.constant 5.000000e-01 : f32
    %15 = vector.broadcast %cst_9 : f32 to vector<8x64x64xf32>
    %16 = arith.mulf %15, %14 : vector<8x64x64xf32>
    %cst_10 = arith.constant 5.000000e-01 : f32
    %17 = vector.broadcast %cst_10 : f32 to vector<8x64x64xf32>
    %18 = arith.addf %16, %17 : vector<8x64x64xf32>
    %19 = arith.mulf %10, %18 : vector<8x64x64xf32>
    %20 = arith.truncf %4 : vector<512x128xf32> to vector<512x128xbf16>
    %c0_11 = arith.constant 0 : index
    %c0_12 = arith.constant 0 : index
    %c0_13 = arith.constant 0 : index
    %21 = vector.load %arg2[%c0_11, %c0_12, %c0_13] : memref<8x64x64xbf16, #tpu.memory_space<vmem>>, vector<8x64x64xbf16>
    %22 = vector.shape_cast %21 : vector<8x64x64xbf16> to vector<512x64xbf16>
    %23 = tpu.concatenate %20, %22 in 1 : vector<512x128xbf16>, vector<512x64xbf16> -> vector<512x192xbf16>
    %c0_14 = arith.constant 0 : index
    %c0_15 = arith.constant 0 : index
    %24 = vector.load %arg6[%c0_14, %c0_15] : memref<192x128xbf16, #tpu.memory_space<vmem>>, vector<192x128xbf16>
    %cst_16 = arith.constant dense<0.000000e+00> : vector<512x128xf32>
    %25 = tpu.matmul %23, %24, %cst_16 {dimension_numbers = #tpu.dot_dimension_numbers<[1], [0], [0], [1], [0, 0, 1, 1], [], []>} : vector<512x192xbf16>, vector<192x128xbf16>, vector<512x128xf32> -> vector<512x128xf32>
    %26 = vector.shape_cast %25 : vector<512x128xf32> to vector<8x64x128xf32>
    %c0_17 = arith.constant 0 : index
    %c0_18 = arith.constant 0 : index
    %c0_19 = arith.constant 0 : index
    %27 = vector.load %arg4[%c0_17, %c0_18, %c0_19] : memref<8x1x128xf32, #tpu.memory_space<vmem>>, vector<8x1x128xf32>
    %28 = vector.broadcast %27 : vector<8x1x128xf32> to vector<8x64x128xf32>
    %29 = arith.addf %26, %28 : vector<8x64x128xf32>
    %30 = vector.extract_strided_slice %29 {offsets = [0, 0, 0], sizes = [8, 64, 64], strides = [1, 1, 1]} : vector<8x64x128xf32> to vector<8x64x64xf32>
    %31 = math.tanh %30 : vector<8x64x64xf32>
    %32 = vector.extract_strided_slice %29 {offsets = [0, 0, 64], sizes = [8, 64, 64], strides = [1, 1, 1]} : vector<8x64x128xf32> to vector<8x64x64xf32>
    %cst_20 = arith.constant 5.000000e-01 : f32
    %33 = vector.broadcast %cst_20 : f32 to vector<8x64x64xf32>
    %34 = arith.mulf %33, %32 : vector<8x64x64xf32>
    %35 = math.tanh %34 : vector<8x64x64xf32>
    %cst_21 = arith.constant 5.000000e-01 : f32
    %36 = vector.broadcast %cst_21 : f32 to vector<8x64x64xf32>
    %37 = arith.mulf %36, %35 : vector<8x64x64xf32>
    %cst_22 = arith.constant 5.000000e-01 : f32
    %38 = vector.broadcast %cst_22 : f32 to vector<8x64x64xf32>
    %39 = arith.addf %37, %38 : vector<8x64x64xf32>
    %40 = arith.mulf %31, %39 : vector<8x64x64xf32>
    %41 = vector.shape_cast %40 : vector<8x64x64xf32> to vector<512x64xf32>
    %42 = arith.truncf %41 : vector<512x64xf32> to vector<512x64xbf16>
    %c0_23 = arith.constant 0 : index
    %c0_24 = arith.constant 0 : index
    %43 = vector.load %arg7[%c0_23, %c0_24] : memref<64x64xbf16, #tpu.memory_space<vmem>>, vector<64x64xbf16>
    %cst_25 = arith.constant dense<0.000000e+00> : vector<512x64xf32>
    %44 = tpu.matmul %42, %43, %cst_25 {dimension_numbers = #tpu.dot_dimension_numbers<[1], [0], [0], [1], [0, 0, 1, 1], [], []>} : vector<512x64xbf16>, vector<64x64xbf16>, vector<512x64xf32> -> vector<512x64xf32>
    %c0_26 = arith.constant 0 : index
    %c0_27 = arith.constant 0 : index
    %45 = vector.load %arg8[%c0_26, %c0_27] : memref<1x64xf32, #tpu.memory_space<vmem>>, vector<1x64xf32>
    %46 = vector.broadcast %45 : vector<1x64xf32> to vector<512x64xf32>
    %47 = arith.addf %44, %46 : vector<512x64xf32>
    %48 = vector.shape_cast %47 : vector<512x64xf32> to vector<8x64x64xf32>
    %49 = tpu.concatenate %19, %48 in 2 : vector<8x64x64xf32>, vector<8x64x64xf32> -> vector<8x64x128xf32>
    %c0_28 = arith.constant 0 : index
    %c0_29 = arith.constant 0 : index
    %c0_30 = arith.constant 0 : index
    %50 = vector.load %arg9[%c0_28, %c0_29, %c0_30] : memref<8x64x128xf32, #tpu.memory_space<vmem>>, vector<8x64x128xf32>
    tpu.vector_store %arg9[%c0_28, %c0_29, %c0_30], %49 {strides = array<i32>} : memref<8x64x128xf32, #tpu.memory_space<vmem>>, vector<8x64x128xf32>,
    return
  }
  func.func @transform_0(%arg0: i32) -> (i32, i32, i32) {
    %c0_i32 = arith.constant 0 : i32
    %c0_i32_0 = arith.constant 0 : i32
    %c0_i32_1 = arith.constant 0 : i32
    return %arg0, %c0_i32, %c0_i32_0 : i32, i32, i32
  }
  func.func @transform_1(%arg0: i32) -> (i32, i32, i32) {
    %c0_i32 = arith.constant 0 : i32
    %c0_i32_0 = arith.constant 0 : i32
    %c0_i32_1 = arith.constant 0 : i32
    return %arg0, %c0_i32, %c0_i32_0 : i32, i32, i32
  }
  func.func @transform_2(%arg0: i32) -> (i32, i32, i32) {
    %c0_i32 = arith.constant 0 : i32
    %c0_i32_0 = arith.constant 0 : i32
    %c0_i32_1 = arith.constant 0 : i32
    return %arg0, %c0_i32, %c0_i32_0 : i32, i32, i32
  }
  func.func @transform_3(%arg0: i32) -> (i32, i32, i32) {
    %c0_i32 = arith.constant 0 : i32
    %c0_i32_0 = arith.constant 0 : i32
    %c0_i32_1 = arith.constant 0 : i32
    return %arg0, %c0_i32, %c0_i32_0 : i32, i32, i32
  }
  func.func @transform_4(%arg0: i32) -> (i32, i32, i32) {
    %c0_i32 = arith.constant 0 : i32
    %c0_i32_0 = arith.constant 0 : i32
    %c0_i32_1 = arith.constant 0 : i32
    %c0_i32_2 = arith.constant 0 : i32
    return %c0_i32, %c0_i32_0, %c0_i32_1 : i32, i32, i32
  }
  func.func @transform_5(%arg0: i32) -> (i32, i32) {
    %c0_i32 = arith.constant 0 : i32
    %c0_i32_0 = arith.constant 0 : i32
    %c0_i32_1 = arith.constant 0 : i32
    return %c0_i32, %c0_i32_0 : i32, i32
  }
  func.func @transform_6(%arg0: i32) -> (i32, i32) {
    %c0_i32 = arith.constant 0 : i32
    %c0_i32_0 = arith.constant 0 : i32
    %c0_i32_1 = arith.constant 0 : i32
    return %c0_i32, %c0_i32_0 : i32, i32
  }
  func.func @transform_7(%arg0: i32) -> (i32, i32) {
    %c0_i32 = arith.constant 0 : i32
    %c0_i32_0 = arith.constant 0 : i32
    %c0_i32_1 = arith.constant 0 : i32
    return %c0_i32, %c0_i32_0 : i32, i32
  }
  func.func @transform_8(%arg0: i32) -> (i32, i32, i32) {
    %c0_i32 = arith.constant 0 : i32
    %c0_i32_0 = arith.constant 0 : i32
    %c0_i32_1 = arith.constant 0 : i32
    return %arg0, %c0_i32, %c0_i32_0 : i32, i32, i32
  }
}

</mosaic_0001>

<bundles_post_ra>
// kernel: tpu_custom_call.1
= control target key start
LH: loop header
LB: loop body
LE: loop exit
PB: predicated region body
PF: predicated region fallthrough
CT: control target
= control target key end

     0   :  { %s8289_s0 = inlined_call_operand.hbm [shape: bf16[16,64,192], index: 0, kind: input, shape index: {}]   ;;  %s8290_s1 = inlined_call_operand.hbm [shape: bf16[16,64,64], index: 1, kind: input, shape index: {}]   ;;  %s8291_s2 = inlined_call_operand.hbm [shape: f32[16,1,128], index: 2, kind: input, shape index: {}]   ;;  %s8292_s3 = inlined_call_operand.hbm [shape: f32[16,1,128], index: 3, kind: input, shape index: {}]   ;;  %s8293_s4 = inlined_call_operand.hbm [shape: bf16[1,192,128], index: 4, kind: input, shape index: {}]   ;;  %s8294_s5 = inlined_call_operand.hbm [shape: bf16[192,128], index: 5, kind: input, shape index: {}]   ;;  %s8295_s6 = inlined_call_operand.hbm [shape: bf16[64,64], index: 6, kind: input, shape index: {}]   ;;  %s8296_s7 = inlined_call_operand.vmem [shape: f32[1,64], index: 7, kind: input, shape index: {}]   ;;  %s8297_s8 = inlined_call_operand.hbm [shape: f32[16,64,128], index: 8, kind: output, shape index: {}]  }
   0x1   :  { %8395 = sst [smem:[#allocation89_spill]] %s8289_s0 }
   0x2   :  { %8396 = sst [smem:[#allocation90_spill]] %s8290_s1 }
   0x3   :  { %8397 = sst [smem:[#allocation91_spill]] %s8293_s4 }
   0x4   :  { %8398 = sst [smem:[#allocation92_spill]] %s8294_s5 }
   0x5   :  { %13 = vsyncpa [#allocation3], 0 }
   0x6   :  { %15 = vsyncpa [#allocation3 + $0x1], 0 }
   0x7   :  { %16 = vsyncpa [#allocation6], 0 }
   0x8   :  { %18 = vsyncpa [#allocation6 + $0x1], 0 }
   0x9   :  { %19 = vsyncpa [#allocation9], 0 }
   0xa   :  { %21 = vsyncpa [#allocation9 + $0x1], 0 }
   0xb   :  { %22 = vsyncpa [#allocation12], 0 }
   0xc   :  { %23 = vsyncpa [#allocation4], 0 }
   0xd   :  { %25 = vsyncpa [#allocation4 + $0x1], 0  ;;  %s6123_s27 = smov 0   ;;  %s6125_s28 = smov 0  }
   0xe   :  { %s6127_s29 = smov 0   ;;  %s6129_s30 = smov 0  }
   0xf LB: > { %8399 = sst [smem:[#allocation21_spill]] %s6054_s29  ;;  %s6144_s9 = sadd.s32 4294967295, %s6058_s30   ;;  %s6058_s30 = sphi %s6129_s30, %s8630_s30   ;;  %s6054_s29 = sphi %s6127_s29, %s8632_s29   ;;  %s6050_s28 = sphi %s6125_s28, %s8634_s28   ;;  %s6046_s27 = sphi %s6123_s27, %s8633_s27  }
  0x10   : > { %s4605_s10 = sadd.s32 4294967294, %s6058_s30   ;;  %s6148_s11 = sadd.s32 1, %s6058_s30  }
  0x11   : > { %8400 = sst [smem:[#allocation22_spill]] %s6148_s11  ;;  %s38_s12 = sadd.s32 1, %s6054_s29 }
  0x12   : > { %s35_s13 = ssub.s32 %s6058_s30, %s6148_s11  ;;  %p45_p0 = scmp.ne.s32.totalorder %s6054_s29, %s6050_s28 }
  0x13   : > { %p36_p1 = scmp.eq.s32.totalorder %s35_s13, 0  ;;  %p46_p2 = scmp.eq.s32.totalorder %s6058_s30, 0 }
  0x14   : > { %p51_p3 = scmp.ne.s32.totalorder %s6050_s28, %s6046_s27  ;;  %p8299_p4 = scmp.eq.s32.totalorder %s6144_s9, 0 }
  0x15   : > { %s6160_s14 = scalar_select %p36_p1, %s6054_s29, %s38_s12  }
  0x16   : > { %p6162_p5 = por %p46_p2, %p45_p0  ;;  %p6168_p6 = por %p8299_p4, %p51_p3 }
  0x17   : > { %8401 = sst [smem:[#allocation23_spill]] %s6160_s14  ;;  %p237_p7 = scmp.eq.s32.totalorder %s6144_s9, 1 }
  0x18   : > { %s8403_s16 = scalar_select %p6168_p6, 1, 0 }
  0x19   : > { %p243_p8 = scmp.eq.s32.totalorder %s4605_s10, 1  ;;  %p4606_p9 = scmp.ge.s32.totalorder %s6058_s30, 1 }
  0x1a   : > { %p250_p10 = scmp.lt.s32.totalorder %s6058_s30, 3  ;;  %p6175_p11 = por %p237_p7, %p45_p0 }
  0x1b   : > { %p6179_p12 = por %p243_p8, %p51_p3  ;;  %s6060_s20 = smov [#allocation10]  }
  0x1c   : > { %s8404_s17 = scalar_select %p6175_p11, 1, 0 }
  0x1d   : > { %s8405_s18 = scalar_select %p6179_p12, 1, 0 }
  0x1e   : > { %p6183_p13 = pnand %p4606_p9, %p250_p10  ;;  %s262_s21 = sshll.u32 %s6060_s20, 4  ;;  %s263_s21 = int_to_ptr.vmem [resolvable:$true] %s262_s21 }
  0x1f   : > { %p5069_p3 = scmp.lt.s32.totalorder %s6058_s30, 2  ;;  %s6061_s23 = smov [#allocation11]  }
  0x20   : > { %s8406_s19 = scalar_select %p6183_p13, 1, 0 }
  0x21   : > { %p5039_p1 = pneg %p6183_p13  ;;  %s275_s24 = sshll.u32 %s6061_s23, 4  ;;  %s276_s24 = int_to_ptr.vmem [resolvable:$true] %s275_s24 }
  0x22   : > { %s5799_s25 = scalar_lea.vmem %s263_s21, 1536  ;;  %p5807_p12 = scmp.lt.s32.totalorder %s263_s21, %s263_s21 }
  0x23   : > { %p6191_p2 = pnand %p5039_p1, %p8299_p4  ;;  %p5800_p8 = scmp.ne.s32.totalorder %s263_s21, %s5799_s25 }
  0x24   : > { %p5808_p11 = scmp.lt.s32.totalorder %s5799_s25, %s5799_s25 }
  0x25   : > { %s8407_s22 = scalar_select %p6191_p2, 1, 0 }
  0x26   : > { %p8308_p7 = pneg %p6191_p2  ;;  %p5809_p1 = por %p5808_p11, %p5807_p12 }
  0x28   : > { %p5802_p9 = pnand %p5800_p8, %p8308_p7 }
  0x2a   : > { %p5803_p10 = pneg %p5802_p9 }
  0x2c   : > { %p5810_p4 = pnand %p5809_p1, %p5803_p10 }
  0x2e   : > { %5813 = shalt.err (!%p5810_p4)
}
  0x2f   : > { %s8303_s26 = smov 64   ;;  %s8306_s10 = smov 4  }
  0x30   : > { %s8408_s4 = sld [smem:[#allocation91_spill]]  ;;  %s6211_s20 = sand.u32 1, %s6054_s29  }
  0x31   : > { %s5825_s23 = scalar_lea.vmem %s276_s24, 1536  ;;  %p5833_p8 = scmp.lt.s32.totalorder %s276_s24, %s276_s24 }
  0x32   : > { %p5826_p11 = scmp.ne.s32.totalorder %s276_s24, %s5825_s23  ;;  %p5834_p9 = scmp.lt.s32.totalorder %s5825_s23, %s5825_s23 }
  0x34   : > { %p5828_p4 = pnand %p5826_p11, %p8308_p7  ;;  %p5835_p10 = por %p5834_p9, %p5833_p8 }
  0x36   : > { %5042 = dma.hbm_to_vmem [thread:$0]  (!%p6191_p2), %s8408_s4, 1536, %s263_s21, [#allocation9], %s8303_s26, %s8303_s26, %s8306_s10  }
  0x37   : > { %p5829_p12 = pneg %p5828_p4 }
  0x39   : > { %p5836_p1 = pnand %p5835_p10, %p5829_p12 }
  0x3b   : > { %5839 = shalt.err (!%p5836_p1)
}
  0x3c   : > { %s8409_s5 = sld [smem:[#allocation92_spill]]  ;;  %p6228_p11 = pnand %p5069_p3, %p6162_p5 }
  0x3d   : > { %s8305_s13 = sand.u32 1, %s6058_s30   ;;  %s4615_s23 = sshll.u32 %s6211_s20, 8 }
  0x3e   : > { %s4880_s4 = sshll.u32 %s6058_s30, 12  ;;  %s331_s14 = scalar_lea.vmem [#allocation5], %s4615_s23 }
  0x3f   : > { %s339_s29 = sshll.u32 %s331_s14, 4  ;;  %s8411_s1 = sld [smem:[#allocation90_spill]]  ;;  %s6240_s29 = int_to_ptr.vmem [resolvable:$true] %s339_s29 }
  0x40   : > { %s6244_s15 = scalar_lea.sflag [#allocation6], %s8305_s13  ;;  %p6250_p3 = pneg %p6228_p11 }
  0x42   : > { %5045 = dma.hbm_to_vmem [thread:$0]  (!%p6191_p2), %s8409_s5, 1536, %s276_s24, [#allocation12], %s8303_s26, %s8303_s26, %s8306_s10  }
  0x45   : > { %s6238_s11 = scalar_lea.hbm %s8411_s1, %s4880_s4  ;;  %s5845_s23 = scalar_lea.hbm %s8411_s1, 8192 }
  0x46   : > { %s5840_s24 = scalar_lea.hbm %s6238_s11, 4096  ;;  %p5846_p8 = scmp.lt.s32.totalorder %s6238_s11, %s8411_s1 }
  0x47   : > { %p5841_p5 = scmp.ne.s32.totalorder %s6238_s11, %s5840_s24  ;;  %p5847_p9 = scmp.lt.s32.totalorder %s5845_s23, %s5840_s24 }
  0x49   : > { %p5843_p4 = pnand %p6250_p3, %p5841_p5  ;;  %p5848_p10 = por %p5847_p9, %p5846_p8 }
  0x4b   : > { %p5844_p12 = pneg %p5843_p4 }
  0x4d   : > { %p5849_p1 = pnand %p5848_p10, %p5844_p12 }
  0x4f   : > { %5852 = shalt.err (!%p5849_p1)
}
  0x50   : > { %s5853_s13 = scalar_lea.vmem %s6240_s29, 4096  ;;  %s6064_s10 = smov [#allocation5]  }
  0x51   : > { %p5854_p0 = scmp.ne.s32.totalorder %s6240_s29, %s5853_s13  ;;  %s5858_s4 = sshll.u32 %s6064_s10, 4  ;;  %s5859_s4 = int_to_ptr.vmem [resolvable:$false] %s5858_s4 }
  0x52   : > { %s5860_s14 = scalar_lea.vmem %s5859_s4, 8192  ;;  %p5861_p7 = scmp.lt.s32.totalorder %s6240_s29, %s5859_s4 }
  0x53   : > { %p5856_p5 = pnand %p5854_p0, %p6250_p3  ;;  %p5862_p6 = scmp.lt.s32.totalorder %s5860_s14, %s5853_s13 }
  0x55   : > { %p5857_p4 = pneg %p5856_p5  ;;  %p5863_p13 = por %p5862_p6, %p5861_p7 }
  0x57   : > { %p5864_p2 = pnand %p5863_p13, %p5857_p4 }
  0x59   : > { %5867 = shalt.err (!%p5864_p2)
}
  0x5a   : > { %s8413_s24 = smov 4   ;;  %s8414_s23 = smov 64  }
  0x5b   : > { %5055 = dma.hbm_to_vmem [thread:$0]  (!%p6228_p11), %s6238_s11, 4096, %s6240_s29, %s6244_s15, %s8414_s23, %s8414_s23, %s8413_s24  }
  0x5c   : > { %s6065_s21 = smov [#allocation13]   ;;  %s4611_s25 = sshll.u32 %s6211_s20, 9 }
  0x5d   : > { %s288_s10 = sshll.u32 %s6065_s21, 4  ;;  %p8415_p6 = scmp.ne.s32.totalorder %s8407_s22, 0  ;;  %s289_s10 = int_to_ptr.vmem [resolvable:$true] %s288_s10 }
  0x5e   : > { %s5879_s4 = scalar_lea.vmem %s289_s10, 512  ;;  %p5887_p12 = scmp.lt.s32.totalorder %s289_s10, %s289_s10 }
  0x5f   : > { %p5880_p0 = scmp.ne.s32.totalorder %s289_s10, %s5879_s4  ;;  %p8416_p13 = pneg %p8415_p6 }
  0x60   : > { %p5888_p8 = scmp.lt.s32.totalorder %s5879_s4, %s5879_s4 }
  0x61   : > { %p5882_p2 = pnand %p5880_p0, %p8416_p13 }
  0x62   : > { %p5889_p9 = por %p5888_p8, %p5887_p12 }
  0x63   : > { %p5883_p7 = pneg %p5882_p2 }
  0x65   : > { %p5890_p10 = pnand %p5889_p9, %p5883_p7 }
  0x67   : > { %5893 = shalt.err (!%p5890_p10)
}
  0x68   : > { %5048 = dma.hbm_to_vmem [thread:$0]  (!%p8415_p6), %s8295_s6, 512, %s289_s10, [#allocation12], %s8414_s23, %s8414_s23, %s8413_s24  }
  0x69   : > { %s4878_s13 = sshll.u32 %s6058_s30, 13  ;;  %s8417_s0 = sld [smem:[#allocation89_spill]] }
  0x6a   : > { %s309_s22 = scalar_lea.vmem [#allocation2], %s4611_s25  ;;  %s4619_s5 = sshll.u32 %s6211_s20, 3 }
  0x6b   : > { %s317_s1 = sshll.u32 %s309_s22, 4  ;;  %s306_s29 = scalar_lea.sflag [#allocation3], %s6211_s20  ;;  %s6294_s1 = int_to_ptr.vmem [resolvable:$true] %s317_s1 }
  0x6f   : > { %s6292_s4 = scalar_lea.hbm %s8417_s0, %s4878_s13  ;;  %s5899_s10 = scalar_lea.hbm %s8417_s0, 16384 }
  0x70   : > { %s5894_s11 = scalar_lea.hbm %s6292_s4, 8192  ;;  %p5900_p0 = scmp.lt.s32.totalorder %s6292_s4, %s8417_s0 }
  0x71   : > { %p5895_p1 = scmp.ne.s32.totalorder %s6292_s4, %s5894_s11  ;;  %p5901_p6 = scmp.lt.s32.totalorder %s5899_s10, %s5894_s11 }
  0x73   : > { %p5897_p5 = pnand %p5895_p1, %p6250_p3  ;;  %p5902_p13 = por %p5901_p6, %p5900_p0 }
  0x75   : > { %p5898_p4 = pneg %p5897_p5 }
  0x77   : > { %p5903_p2 = pnand %p5902_p13, %p5898_p4 }
  0x79   : > { %5906 = shalt.err (!%p5903_p2)
}
  0x7a   : > { %s5907_s25 = scalar_lea.vmem %s6294_s1, 8192  ;;  %s6066_s21 = smov [#allocation2]  }
  0x7b   : > { %p5908_p7 = scmp.ne.s32.totalorder %s6294_s1, %s5907_s25  ;;  %s5912_s22 = sshll.u32 %s6066_s21, 4  ;;  %s5913_s22 = int_to_ptr.vmem [resolvable:$false] %s5912_s22 }
  0x7c   : > { %s5914_s24 = scalar_lea.vmem %s5913_s22, 16384  ;;  %p5915_p9 = scmp.lt.s32.totalorder %s6294_s1, %s5913_s22 }
  0x7d   : > { %p5910_p12 = pnand %p5908_p7, %p6250_p3  ;;  %p5916_p10 = scmp.lt.s32.totalorder %s5914_s24, %s5907_s25 }
  0x7f   : > { %p5911_p8 = pneg %p5910_p12  ;;  %p5917_p1 = por %p5916_p10, %p5915_p9 }
  0x81   : > { %p5918_p5 = pnand %p5917_p1, %p5911_p8 }
  0x83   : > { %5921 = shalt.err (!%p5918_p5)
}
  0x84   : > { %s6067_s11 = smov 128   ;;  %s6068_s23 = smov 8  }
  0x85   : > { %5052 = dma.hbm_to_vmem [thread:$0]  (!%p6228_p11), %s6292_s4, 8192, %s6294_s1, %s306_s29, %s6067_s11, %s6067_s11, %s6068_s23  }
  0x86   : > { %s4881_s10 = sshll.u32 %s6058_s30, 7  ;;  %s353_s21 = scalar_lea.vmem [#allocation7], %s4619_s5 }
  0x87   : > { %s6326_s25 = scalar_lea.hbm %s8291_s2, %s4881_s10  ;;  %s360_s22 = sshll.u32 %s353_s21, 4  ;;  %s6330_s22 = int_to_ptr.vmem [resolvable:$true] %s360_s22 }
  0x88   : > { %s5922_s24 = scalar_lea.hbm %s6326_s25, 128  ;;  %s5927_s29 = scalar_lea.hbm %s8291_s2, 256 }
  0x89   : > { %p5923_p4 = scmp.ne.s32.totalorder %s6326_s25, %s5922_s24  ;;  %p5928_p13 = scmp.lt.s32.totalorder %s6326_s25, %s8291_s2 }
  0x8a   : > { %p5929_p2 = scmp.lt.s32.totalorder %s5927_s29, %s5922_s24 }
  0x8b   : > { %p5925_p0 = pnand %p5923_p4, %p6250_p3 }
  0x8c   : > { %p5930_p7 = por %p5929_p2, %p5928_p13 }
  0x8d   : > { %p5926_p6 = pneg %p5925_p0 }
  0x8f   : > { %p5931_p12 = pnand %p5930_p7, %p5926_p6 }
  0x91   : > { %5934 = shalt.err (!%p5931_p12)
}
  0x92   : > { %s5935_s13 = scalar_lea.vmem %s6330_s22, 128  ;;  %s6069_s14 = smov [#allocation7]  }
  0x93   : > { %p5936_p8 = scmp.ne.s32.totalorder %s6330_s22, %s5935_s13  ;;  %s5940_s21 = sshll.u32 %s6069_s14, 4  ;;  %s5941_s21 = int_to_ptr.vmem [resolvable:$false] %s5940_s21 }
  0x94   : > { %s5942_s1 = scalar_lea.vmem %s5941_s21, 256  ;;  %p5943_p1 = scmp.lt.s32.totalorder %s6330_s22, %s5941_s21 }
  0x95   : > { %p5938_p9 = pnand %p5936_p8, %p6250_p3  ;;  %p5944_p5 = scmp.lt.s32.totalorder %s5942_s1, %s5935_s13 }
  0x97   : > { %p5939_p10 = pneg %p5938_p9  ;;  %p5945_p4 = por %p5944_p5, %p5943_p1 }
  0x99   : > { %p5946_p0 = pnand %p5945_p4, %p5939_p10 }
  0x9b   : > { %5949 = shalt.err (!%p5946_p0)
}
  0x9c   : > { %s6070_s24 = smov 16   ;;  %s6071_s4 = smov 1  }
  0x9d   : > { %5058 = dma.hbm_to_vmem [thread:$0]  (!%p6228_p11), %s6326_s25, 128, %s6330_s22, %s6244_s15, %s6070_s24, %s6070_s24, %s6071_s4  }
  0x9e   : > { %s6361_s23 = scalar_lea.hbm %s8292_s3, %s4881_s10  ;;  %s374_s13 = scalar_lea.vmem [#allocation8], %s4619_s5 }
  0x9f   : > { %s381_s14 = sshll.u32 %s374_s13, 4  ;;  %s8418_s21 = sand.u32 1, %s6058_s30   ;;  %s6365_s14 = int_to_ptr.vmem [resolvable:$true] %s381_s14 }
  0xa0   : > { %s371_s1 = scalar_lea.sflag [#allocation9], %s8418_s21  ;;  %s5950_s0 = scalar_lea.hbm %s6361_s23, 128 }
  0xa1   : > { %p5951_p6 = scmp.ne.s32.totalorder %s6361_s23, %s5950_s0  ;;  %s5955_s10 = scalar_lea.hbm %s8292_s3, 256 }
  0xa2   : > { %p5956_p7 = scmp.lt.s32.totalorder %s6361_s23, %s8292_s3  ;;  %p5957_p12 = scmp.lt.s32.totalorder %s5955_s10, %s5950_s0 }
  0xa3   : > { %p5953_p13 = pnand %p5951_p6, %p6250_p3 }
  0xa4   : > { %p5958_p8 = por %p5957_p12, %p5956_p7 }
  0xa5   : > { %p5954_p2 = pneg %p5953_p13 }
  0xa7   : > { %p5959_p9 = pnand %p5958_p8, %p5954_p2 }
  0xa9   : > { %5962 = shalt.err (!%p5959_p9)
}
  0xaa   : > { %s5963_s5 = scalar_lea.vmem %s6365_s14, 128  ;;  %s6072_s29 = smov [#allocation8]  }
  0xab   : > { %p5964_p10 = scmp.ne.s32.totalorder %s6365_s14, %s5963_s5  ;;  %s5968_s11 = sshll.u32 %s6072_s29, 4  ;;  %s5969_s11 = int_to_ptr.vmem [resolvable:$false] %s5968_s11 }
  0xac   : > { %s5970_s13 = scalar_lea.vmem %s5969_s11, 256  ;;  %p5971_p4 = scmp.lt.s32.totalorder %s6365_s14, %s5969_s11 }
  0xad   : > { %p5966_p1 = pnand %p5964_p10, %p6250_p3  ;;  %p5972_p0 = scmp.lt.s32.totalorder %s5970_s13, %s5963_s5 }
  0xaf   : > { %p5967_p5 = pneg %p5966_p1  ;;  %p5973_p6 = por %p5972_p0, %p5971_p4 }
  0xb1   : > { %p5974_p13 = pnand %p5973_p6, %p5967_p5 }
  0xb3   : > { %5977 = shalt.err (!%p5974_p13)
}
  0xb4   : > { %5061 = dma.hbm_to_vmem [thread:$0]  (!%p6228_p11), %s6361_s23, 128, %s6365_s14, %s371_s1, %s6070_s24, %s6070_s24, %s6071_s4  }
  0xb5   : > { %p8419_p3 = scmp.ne.s32.totalorder %s8406_s19, 0 }
  0xb7   : > { %393 = sbr.rel (%p8419_p3) target bundleno = 1374 (0x55e), region = 52 }
  0xbc   : > { %s6395_s0 = sand.u32 1, %s6050_s28   ;;  %p8420_p2 = scmp.ne.s32.totalorder %s8403_s16, 0 }
  0xbd   : > { %s4626_s26 = sshll.u32 %s6395_s0, 9  ;;  %s396_s21 = scalar_lea.sflag [#allocation3], %s6395_s0 }
  0xbe   : > { %s6401_s12 = scalar_lea.vmem [#allocation2], %s4626_s26 }
  0xbf   : > { %6021 = dma.done.wait (%p8420_p2), %s396_s21, 8192  }
  0xc0   : > { %6023 = vsyncadd (%p8420_p2), %s396_s21, 4294959104  ;;  %s404_s19 = sand.u32 1, %s6144_s9   ;;  %s4627_s24 = sshll.u32 %s6395_s0, 8 }
  0xc1   : > { %s405_s4 = scalar_lea.sflag [#allocation6], %s404_s19  ;;  %s6409_s23 = scalar_lea.vmem [#allocation5], %s4627_s24 }
  0xc2   : > { %6025 = dma.done.wait (%p8420_p2), %s405_s4, 4224  }
  0xc3   : > { %6027 = vsyncadd (%p8420_p2), %s405_s4, 4294963072  ;;  %s4628_s14 = sshll.u32 %s6395_s0, 3  ;;  %s423_s15 = scalar_lea.sflag [#allocation9], %s404_s19 }
  0xc4   : > { %s6416_s1 = scalar_lea.vmem [#allocation7], %s4628_s14  ;;  %s6418_s25 = scalar_lea.vmem [#allocation8], %s4628_s14 }
  0xc5   : > { %6029 = dma.done.wait (%p8420_p2), %s423_s15, 128  }
  0xc6   : > { %6031 = vsyncadd (%p8420_p2), %s423_s15, 4294967168  ;;  %p8421_p11 = scmp.eq.s32.totalorder %s6144_s9, 0 }
  0xc8   : > { %6033 = dma.done.wait (%p8421_p11), [#allocation9], 1536   ;;  %p8422_p7 = pmov %p8421_p11 }
  0xca   : > { %6035 = vsyncadd (%p8422_p7), [#allocation9], 4294965760  ;;  %p8423_p12 = pmov %p8422_p7 }
  0xcb   : > { %p8424_p8 = pmov %p8422_p7 }
  0xcc   : > { %6037 = dma.done.wait (%p8423_p12), [#allocation12], 2048  }
  0xcd   : > { %6039 = vsyncadd (%p8424_p8), [#allocation12], 4294965248  ;;  %v6073_v0 = vmov 0   ;;  %v5119_v1 = vld [vmem:[#allocation10 + $0x38] sm:$0xff]   ;;  %v5120_v2 = vld [vmem:[#allocation10 + $0x30] sm:$0xff]   ;;  %vm940_vm0 = vcmask 523264  }
  0xce   : > { %1037 = vmatprep.subr.bf16.mxu0 %v6073_v0  ;;  %4993 = vmatprep.subr.bf16.mxu1 %v6073_v0  ;;  %v5121_v3 = vld [vmem:[#allocation10 + $0x28] sm:$0xff]   ;;  %v5122_v4 = vld [vmem:[#allocation10 + $0x20] sm:$0xff]   ;;  %v5123_v6 = vld [vmem:[#allocation10 + $0x18] sm:$0xff]   ;;  %s6074_s16 = smov 64   ;;  %s7987_s20 = scalar_lea.vmem [#allocation14], %s4626_s26 }
  0xcf   : > { %1038 = vmatpush1.bf16.msra.mxu0 %v5119_v1  ;;  %5005 = vmatpush1.bf16.msra.mxu1 %v5119_v1  ;;  %v5133_v5 = vld [vmem:[%s6401_s12 + $0x4] ss:$8 sps:$4 sm:$0xff]   ;;  %v5124_v7 = vld [vmem:[#allocation10 + $0x10] sm:$0xff]   ;;  %v5127_v10 = vld [vmem:[#allocation10 + $0x58] sm:$0xff]   ;;  %s4884_s11 = sshll.u32 %s6144_s9, 13  ;;  %s4438_s13 = sshll.u32 %s7987_s20, 4  ;;  %s8243_s13 = int_to_ptr.vmem [resolvable:$true] %s4438_s13 }
  0xd0   : > { %1039 = vmatprep.subr.bf16.mxu0 %v6073_v0  ;;  %4994 = vmatprep.subr.bf16.mxu1 %v6073_v0  ;;  %v5125_v8 = vld [vmem:[#allocation10 + $0x8] sm:$0xff]   ;;  %v5126_v9 = vld [vmem:[#allocation10] sm:$0xff]   ;;  %v5128_v11 = vld [vmem:[#allocation10 + $0x50] sm:$0xff]   ;;  %s4424_s9 = scalar_lea.sflag [#allocation4], %s6395_s0  ;;  %s5978_s19 = scalar_lea.vmem %s8243_s13, 8192 }
  0xd1   : > { %4710 = vmatprep.mubr.msk.bf16.mxu0 %vm940_vm0, %v5133_v5  ;;  %v5129_v12 = vld [vmem:[#allocation10 + $0x48] sm:$0xff]   ;;  %v5130_v13 = vld [vmem:[#allocation10 + $0x40] sm:$0xff]   ;;  %v5134_v15 = vld [vmem:[%s6401_s12 + $0x14] ss:$8 sps:$4 sm:$0xff]   ;;  %p5979_p9 = scmp.ne.s32.totalorder %s8243_s13, %s5978_s19  ;;  %p8627_p10 = scmp.ne.s32.totalorder %s8404_s17, 0 }
  0xd2   : > { %v5131_v14 = vld [vmem:[%s6401_s12] ss:$8 sps:$4 sm:$0xff]   ;;  %v5184_v16 = vld [vmem:[%s6401_s12 + $0x184] ss:$8 sps:$4 sm:$0xff]   ;;  %v5187_v18 = vld [vmem:[#allocation11 + $0x38] sm:$0xff]   ;;  %s6075_s24 = smov [#allocation14]  }
  0xd3   : > { %1040 = vmatpush1.bf16.msra.mxu0 %v5120_v2  ;;  %5006 = vmatpush1.bf16.msra.mxu1 %v5120_v2  ;;  %v5182_v17 = vld [vmem:[%s6401_s12 + $0x180] ss:$8 sps:$4 sm:$0xff]   ;;  %v5136_v19 = vld [vmem:[%s6401_s12 + $0x10] ss:$8 sps:$4 sm:$0xff]   ;;  %v5137_v20 = vld [vmem:[%s6401_s12 + $0x24] ss:$8 sps:$4 sm:$0xff]   ;;  %p5980_p1 = pnand %p5979_p9, %p8627_p10 }
  0xd4   : > { %1041 = vmatprep.subr.bf16.mxu0 %v6073_v0  ;;  %4995 = vmatprep.subr.bf16.mxu1 %v6073_v0  ;;  %v5189_v21 = vld [vmem:[%s6401_s12 + $0x194] ss:$8 sps:$4 sm:$0xff]   ;;  %v5191_v22 = vld [vmem:[%s6401_s12 + $0x190] ss:$8 sps:$4 sm:$0xff]   ;;  %v5139_v24 = vld [vmem:[%s6401_s12 + $0x20] ss:$8 sps:$4 sm:$0xff]  }
  0xd5   : > { %4734 = vmatprep.mubr.msk.bf16.mxu1 %vm940_vm0, %v5184_v16  ;;  %v5192_v23 = vld [vmem:[#allocation11 + $0x30] sm:$0xff]   ;;  %v5196_v26 = vld [vmem:[%s6401_s12 + $0x1a4] ss:$8 sps:$4 sm:$0xff]   ;;  %v5198_v27 = vld [vmem:[%s6401_s12 + $0x1a0] ss:$8 sps:$4 sm:$0xff]   ;;  %p5981_p5 = pneg %p5980_p1  ;;  %s5982_s4 = sshll.u32 %s6075_s24, 4  ;;  %s5983_s4 = int_to_ptr.vmem [resolvable:$false] %s5982_s4 }
  0xd6   : > { %v5140_v25 = vld [vmem:[%s6401_s12 + $0x34] ss:$8 sps:$4 sm:$0xff]   ;;  %v5199_v28 = vld [vmem:[#allocation11 + $0x28] sm:$0xff]   ;;  %v5202_v29 = vld [vmem:[#allocation11 + $0x20] sm:$0xff]   ;;  %p5985_p4 = scmp.lt.s32.totalorder %s8243_s13, %s5983_s4 }
  0xd7   : > { %1042 = vmatpush1.bf16.msra.mxu0 %v5121_v3  ;;  %5007 = vmatpush1.bf16.msra.mxu1 %v5121_v3  ;;  %v5142_v30 = vld [vmem:[%s6401_s12 + $0x30] ss:$8 sps:$4 sm:$0xff]   ;;  %v5143_v31 = vld [vmem:[%s6401_s12 + $0x44] ss:$8 sps:$4 sm:$0xff]   ;;  %v5204_v32 = vld [vmem:[%s6401_s12 + $0x1b4] ss:$8 sps:$4 sm:$0xff]  }
  0xd8   : > { %1043 = vmatprep.subr.bf16.mxu0 %v6073_v0  ;;  %4996 = vmatprep.subr.bf16.mxu1 %v6073_v0  ;;  %v5206_v33 = vld [vmem:[%s6401_s12 + $0x1b0] ss:$8 sps:$4 sm:$0xff]   ;;  %v5145_v35 = vld [vmem:[%s6401_s12 + $0x40] ss:$8 sps:$4 sm:$0xff]   ;;  %v5146_v36 = vld [vmem:[%s6401_s12 + $0x54] ss:$8 sps:$4 sm:$0xff]  }
  0xd9   : > { %v5207_v34 = vld [vmem:[#allocation11 + $0x18] sm:$0xff]   ;;  %v5211_v37 = vld [vmem:[%s6401_s12 + $0x1c4] ss:$8 sps:$4 sm:$0xff]   ;;  %v5213_v38 = vld [vmem:[%s6401_s12 + $0x1c0] ss:$8 sps:$4 sm:$0xff]  }
  0xda   : > { %v5214_v39 = vld [vmem:[#allocation11 + $0x10] sm:$0xff]   ;;  %v5217_v40 = vld [vmem:[#allocation11 + $0x8] sm:$0xff]   ;;  %v5222_v45 = vld [vmem:[#allocation11] sm:$0xff]  }
  0xdb   : > { %1044 = vmatpush1.bf16.msra.mxu0 %v5122_v4  ;;  %5008 = vmatpush1.bf16.msra.mxu1 %v5122_v4  ;;  %v5148_v41 = vld [vmem:[%s6401_s12 + $0x50] ss:$8 sps:$4 sm:$0xff]   ;;  %v5149_v42 = vld [vmem:[%s6401_s12 + $0x64] ss:$8 sps:$4 sm:$0xff]   ;;  %v5219_v43 = vld [vmem:[%s6401_s12 + $0x1d4] ss:$8 sps:$4 sm:$0xff]  }
  0xdc   : > { %1045 = vmatprep.subr.bf16.mxu0 %v6073_v0  ;;  %4997 = vmatprep.subr.bf16.mxu1 %v6073_v0  ;;  %v5221_v44 = vld [vmem:[%s6401_s12 + $0x1d0] ss:$8 sps:$4 sm:$0xff]   ;;  %v5151_v46 = vld [vmem:[%s6401_s12 + $0x60] ss:$8 sps:$4 sm:$0xff]   ;;  %v5152_v47 = vld [vmem:[%s6401_s12 + $0x74] ss:$8 sps:$4 sm:$0xff]  }
  0xdd   : > { %v5226_v48 = vld [vmem:[%s6401_s12 + $0x1e4] ss:$8 sps:$4 sm:$0xff]   ;;  %v5228_v49 = vld [vmem:[%s6401_s12 + $0x1e0] ss:$8 sps:$4 sm:$0xff]   ;;  %v5229_v50 = vld [vmem:[#allocation11 + $0x58] sm:$0xff]  }
  0xde   : > { %v5232_v51 = vld [vmem:[#allocation11 + $0x50] sm:$0xff]   ;;  %v5155_v53 = vld [vmem:[%s6401_s12 + $0x84] ss:$8 sps:$4 sm:$0xff]   ;;  %v5157_v57 = vld [vmem:[%s6401_s12 + $0x80] ss:$8 sps:$4 sm:$0xff]  }
  0xdf   : > { %1046 = vmatpush1.bf16.msra.mxu0 %v5123_v6  ;;  %5009 = vmatpush1.bf16.msra.mxu1 %v5123_v6  ;;  %v5154_v52 = vld [vmem:[%s6401_s12 + $0x70] ss:$8 sps:$4 sm:$0xff]   ;;  %v5234_v54 = vld [vmem:[%s6401_s12 + $0x1f4] ss:$8 sps:$4 sm:$0xff]   ;;  %v5237_v56 = vld [vmem:[#allocation11 + $0x48] sm:$0xff]  }
  0xe0   : > { %1047 = vmatprep.subr.bf16.mxu0 %v6073_v0  ;;  %4998 = vmatprep.subr.bf16.mxu1 %v6073_v0  ;;  %v5236_v55 = vld [vmem:[%s6401_s12 + $0x1f0] ss:$8 sps:$4 sm:$0xff]   ;;  %v5158_v58 = vld [vmem:[%s6401_s12 + $0x94] ss:$8 sps:$4 sm:$0xff]   ;;  %v5238_v59 = vld [vmem:[#allocation11 + $0x40] sm:$0xff]  }
  0xe1   : > { %v5160_v60 = vld [vmem:[%s6401_s12 + $0x90] ss:$8 sps:$4 sm:$0xff]   ;;  %v5239_v61 = vld [vmem:[%s6409_s23] sm:$0xff]   ;;  %v5170_v4 = vld [vmem:[%s6401_s12 + $0xd4] ss:$8 sps:$4 sm:$0xff]  }
  0xe2   : > { %v5161_v62 = vld [vmem:[%s6401_s12 + $0xa4] ss:$8 sps:$4 sm:$0xff]   ;;  %v5163_v63 = vld [vmem:[%s6401_s12 + $0xa0] ss:$8 sps:$4 sm:$0xff]   ;;  %v5166_v1 = vld [vmem:[%s6401_s12 + $0xb0] ss:$8 sps:$4 sm:$0xff]  }
  0xe3   : > { %1048 = vmatpush1.bf16.msra.mxu0 %v5124_v7  ;;  %5010 = vmatpush1.bf16.msra.mxu1 %v5124_v7  ;;  %v5167_v2 = vld [vmem:[%s6401_s12 + $0xc4] ss:$8 sps:$4 sm:$0xff]   ;;  %v5169_v3 = vld [vmem:[%s6401_s12 + $0xc0] ss:$8 sps:$4 sm:$0xff]   ;;  %v5172_v5 = vld [vmem:[%s6401_s12 + $0xd0] ss:$8 sps:$4 sm:$0xff]  }
  0xe4   : > { %1049 = vmatprep.subr.bf16.mxu0 %v6073_v0  ;;  %4999 = vmatprep.subr.bf16.mxu1 %v6073_v0  ;;  %v5173_v6 = vld [vmem:[%s6401_s12 + $0xe4] ss:$8 sps:$4 sm:$0xff]   ;;  %v5175_v7 = vld [vmem:[%s6401_s12 + $0xe0] ss:$8 sps:$4 sm:$0xff]   ;;  %v5200_v16 = vld [vmem:[%s6401_s12 + $0x134] ss:$8 sps:$4 sm:$0xff]  }
  0xe7   : > { %1050 = vmatpush1.bf16.msra.mxu0 %v5125_v8  ;;  %5011 = vmatpush1.bf16.msra.mxu1 %v5125_v8  ;;  %v5176_v8 = vld [vmem:[%s6401_s12 + $0xf4] ss:$8 sps:$4 sm:$0xff]  }
  0xe8   : > { %1051 = vmatprep.subr.bf16.mxu0 %v6073_v0  ;;  %5000 = vmatprep.subr.bf16.mxu1 %v6073_v0 }
  0xeb   : > { %1052 = vmatpush1.bf16.msra.mxu0 %v5126_v9  ;;  %5012 = vmatpush1.bf16.msra.mxu1 %v5126_v9  ;;  %v5178_v9 = vld [vmem:[%s6401_s12 + $0xf0] ss:$8 sps:$4 sm:$0xff]  }
  0xec   : > { %1061 = vmatprep.subr.bf16.mxu0 %v6073_v0  ;;  %5001 = vmatprep.subr.bf16.mxu1 %v6073_v0 }
  0xef   : > { %1062 = vmatpush2.bf16.msra.mxu0 %v5127_v10  ;;  %5013 = vmatpush2.bf16.msra.mxu1 %v5127_v10  ;;  %v5179_v10 = vld [vmem:[%s6401_s12 + $0x104] ss:$8 sps:$4 sm:$0xff]  }
  0xf0   : > { %1063 = vmatprep.subr.bf16.mxu0 %v6073_v0  ;;  %5002 = vmatprep.subr.bf16.mxu1 %v6073_v0 }
  0xf3   : > { %1064 = vmatpush2.bf16.msra.mxu0 %v5128_v11  ;;  %5014 = vmatpush2.bf16.msra.mxu1 %v5128_v11  ;;  %v5181_v11 = vld [vmem:[%s6401_s12 + $0x100] ss:$8 sps:$4 sm:$0xff]  }
  0xf4   : > { %1065 = vmatprep.subr.bf16.mxu0 %v6073_v0  ;;  %5003 = vmatprep.subr.bf16.mxu1 %v6073_v0 }
  0xf7   : > { %1066 = vmatpush2.bf16.msra.mxu0 %v5129_v12  ;;  %5015 = vmatpush2.bf16.msra.mxu1 %v5129_v12  ;;  %v5185_v12 = vld [vmem:[%s6401_s12 + $0x114] ss:$8 sps:$4 sm:$0xff]  }
  0xf8   : > { %1067 = vmatprep.subr.bf16.mxu0 %v6073_v0  ;;  %5004 = vmatprep.subr.bf16.mxu1 %v6073_v0 }
  0xfb   : > { %1068 = vmatpush2.bf16.msra.mxu0 %v5130_v13  ;;  %5016 = vmatpush2.bf16.msra.mxu1 %v5130_v13  ;;  %v5188_v13 = vld [vmem:[%s6401_s12 + $0x110] ss:$8 sps:$4 sm:$0xff]  }
  0xfc   : > { %2534 = vmatprep.subr.bf16.mxu1 %v6073_v0 }
  0xfe   : > { %1070 = vmatmul.mubr.bf16.vlgmr.msra.gmra.mxu0 %v5131_v14  ;;  %1262 = vmatmul.mubr.bf16.vlgmr.msra.gmra.mxu1 %v5182_v17  ;;  %v5193_v14 = vld [vmem:[%s6401_s12 + $0x124] ss:$8 sps:$4 sm:$0xff]   ;;  %v5203_v17 = vld [vmem:[%s6401_s12 + $0x130] ss:$8 sps:$4 sm:$0xff]  }
  0xff   : > { %4711 = vmatprep.mubr.msk.bf16.mxu0 %vm940_vm0, %v5134_v15  ;;  %2535 = vmatpush1.bf16.msra.mxu1 %v5187_v18  ;;  %v5195_v15 = vld [vmem:[%s6401_s12 + $0x120] ss:$8 sps:$4 sm:$0xff]   ;;  %v5208_v18 = vld [vmem:[%s6401_s12 + $0x144] ss:$8 sps:$4 sm:$0xff]  }
 0x100   : > { %2536 = vmatprep.subr.bf16.mxu1 %v6073_v0  ;;  %4735 = vmatprep.mubr.msk.bf16.mxu1 %vm940_vm0, %v5189_v21  ;;  %v5218_v21 = vld [vmem:[%s6401_s12 + $0x150] ss:$8 sps:$4 sm:$0xff]  }
 0x103   : > { %2537 = vmatpush1.bf16.msra.mxu1 %v5192_v23  ;;  %v5225_v23 = vld [vmem:[%s6401_s12 + $0x160] ss:$8 sps:$4 sm:$0xff]  }
 0x104   : > { %2538 = vmatprep.subr.bf16.mxu1 %v6073_v0 }
 0x106   : > { %1078 = vmatmul.mubr.bf16.gmra.mxu0 %v5136_v19  ;;  %1270 = vmatmul.mubr.bf16.gmra.mxu1 %v5191_v22  ;;  %v5210_v19 = vld [vmem:[%s6401_s12 + $0x140] ss:$8 sps:$4 sm:$0xff]   ;;  %v5223_v22 = vld [vmem:[%s6401_s12 + $0x164] ss:$8 sps:$4 sm:$0xff]  }
 0x107   : > { %4712 = vmatprep.mubr.msk.bf16.mxu0 %vm940_vm0, %v5137_v20  ;;  %4736 = vmatprep.mubr.msk.bf16.mxu1 %vm940_vm0, %v5196_v26  ;;  %v5215_v20 = vld [vmem:[%s6401_s12 + $0x154] ss:$8 sps:$4 sm:$0xff]  }
 0x108   : > { %2539 = vmatpush1.bf16.msra.mxu1 %v5199_v28 }
 0x109   : > { %2540 = vmatprep.subr.bf16.mxu1 %v6073_v0 }
 0x10c   : > { %2541 = vmatpush1.bf16.msra.mxu1 %v5202_v29 }
 0x10d   : > { %2542 = vmatprep.subr.bf16.mxu1 %v6073_v0 }
 0x10e   : > { %1086 = vmatmul.mubr.bf16.gmra.mxu0 %v5139_v24  ;;  %1278 = vmatmul.mubr.bf16.gmra.mxu1 %v5198_v27  ;;  %v5230_v24 = vld [vmem:[%s6401_s12 + $0x174] ss:$8 sps:$4 sm:$0xff]  }
 0x10f   : > { %4713 = vmatprep.mubr.msk.bf16.mxu0 %vm940_vm0, %v5140_v25  ;;  %4737 = vmatprep.mubr.msk.bf16.mxu1 %vm940_vm0, %v5204_v32  ;;  %v5233_v25 = vld [vmem:[%s6401_s12 + $0x170] ss:$8 sps:$4 sm:$0xff]  }
 0x110   : > { %2543 = vmatpush1.bf16.msra.mxu1 %v5207_v34 }
 0x111   : > { %2544 = vmatprep.subr.bf16.mxu1 %v6073_v0 }
 0x114   : > { %2545 = vmatpush1.bf16.msra.mxu1 %v5214_v39 }
 0x115   : > { %2546 = vmatprep.subr.bf16.mxu1 %v6073_v0 }
 0x116   : > { %1094 = vmatmul.mubr.bf16.gmra.mxu0 %v5142_v30  ;;  %1286 = vmatmul.mubr.bf16.gmra.mxu1 %v5206_v33 }
 0x117   : > { %4714 = vmatprep.mubr.msk.bf16.mxu0 %vm940_vm0, %v5143_v31  ;;  %4738 = vmatprep.mubr.msk.bf16.mxu1 %vm940_vm0, %v5211_v37  ;;  %v5240_v31 = vld [vmem:[%s6409_s23 + $0x8] sm:$0xff]   ;;  %v5271_v37 = vld [vmem:[#allocation13 + $0x18] sm:$0xff]  }
 0x118   : > { %2547 = vmatpush1.bf16.msra.mxu1 %v5217_v40  ;;  %4921 = vmatprep.subr.bf16.mxu0 %v5271_v37 }
 0x119   : > { %2548 = vmatprep.subr.bf16.mxu1 %v6073_v0  ;;  %4922 = vmatpush3.bf16.msra.mxu0 %v5271_v37 }
 0x11c   : > { %2549 = vmatpush1.bf16.msra.mxu1 %v5222_v45 }
 0x11d   : > { %2558 = vmatprep.subr.bf16.mxu1 %v6073_v0 }
 0x11e   : > { %1102 = vmatmul.mubr.bf16.gmra.mxu0 %v5145_v35  ;;  %1294 = vmatmul.mubr.bf16.gmra.mxu1 %v5213_v38 }
 0x11f   : > { %4715 = vmatprep.mubr.msk.bf16.mxu0 %vm940_vm0, %v5146_v36  ;;  %4739 = vmatprep.mubr.msk.bf16.mxu1 %vm940_vm0, %v5219_v43 }
 0x120   : > { %2559 = vmatpush2.bf16.msra.mxu1 %v5229_v50 }
 0x121   : > { %2560 = vmatprep.subr.bf16.mxu1 %v6073_v0 }
 0x124   : > { %2561 = vmatpush2.bf16.msra.mxu1 %v5232_v51 }
 0x125   : > { %2562 = vmatprep.subr.bf16.mxu1 %v6073_v0 }
 0x126   : > { %1110 = vmatmul.mubr.bf16.gmra.mxu0 %v5148_v41  ;;  %1302 = vmatmul.mubr.bf16.gmra.mxu1 %v5221_v44 }
 0x127   : > { %4716 = vmatprep.mubr.msk.bf16.mxu0 %vm940_vm0, %v5149_v42  ;;  %4740 = vmatprep.mubr.msk.bf16.mxu1 %vm940_vm0, %v5226_v48  ;;  %v5241_v42 = vld [vmem:[%s6409_s23 + $0x10] sm:$0xff]   ;;  %v5259_v48 = vld [vmem:[%s6409_s23 + $0xa0] sm:$0xff]  }
 0x128   : > { %2563 = vmatpush2.bf16.msra.mxu1 %v5237_v56 }
 0x129   : > { %2564 = vmatprep.subr.bf16.mxu1 %v6073_v0  ;;  %v5164_v0 = vld [vmem:[%s6401_s12 + $0xb4] ss:$8 sps:$4 sm:$0xff]   ;;  %s8241_s12 = scalar_lea.hbm %s8297_s8, %s4884_s11 }
 0x12c   : > { %2565 = vmatpush2.bf16.msra.mxu1 %v5238_v59 }
 0x12e   : > { %1118 = vmatmul.mubr.bf16.gmra.mxu0 %v5151_v46  ;;  %1310 = vmatmul.mubr.bf16.gmra.mxu1 %v5228_v49 }
 0x12f   : > { %4717 = vmatprep.mubr.msk.bf16.mxu0 %vm940_vm0, %v5152_v47  ;;  %4741 = vmatprep.mubr.msk.bf16.mxu1 %vm940_vm0, %v5234_v54 }
 0x136   : > { %1126 = vmatmul.mubr.bf16.gmra.mxu0 %v5154_v52  ;;  %1318 = vmatmul.mubr.bf16.gmra.mxu1 %v5236_v55 }
 0x137   : > { %4718 = vmatprep.mubr.msk.bf16.mxu0 %vm940_vm0, %v5155_v53  ;;  %4794 = vmatprep.mubr.msk.bf16.mxu1 %vm940_vm0, %v5239_v61  ;;  %v5242_v53 = vld [vmem:[%s6409_s23 + $0x18] sm:$0xff]  }
 0x13e   : > { %1134 = vmatmul.mubr.bf16.gmra.mxu0 %v5157_v57 }
 0x13f   : > { %4719 = vmatprep.mubr.msk.bf16.mxu0 %vm940_vm0, %v5158_v58 }
 0x146   : > { %1142 = vmatmul.mubr.bf16.gmra.mxu0 %v5160_v60 }
 0x147   : > { %4720 = vmatprep.mubr.msk.bf16.mxu0 %vm940_vm0, %v5161_v62 }
 0x14e   : > { %1150 = vmatmul.mubr.bf16.gmra.mxu0 %v5163_v63 }
 0x14f   : > { %4721 = vmatprep.mubr.msk.bf16.mxu0 %vm940_vm0, %v5164_v0  ;;  %v5243_v0 = vld [vmem:[%s6409_s23 + $0x20] sm:$0xff]  }
 0x156   : > { %1158 = vmatmul.mubr.bf16.gmra.mxu0 %v5166_v1 }
 0x157   : > { %4722 = vmatprep.mubr.msk.bf16.mxu0 %vm940_vm0, %v5167_v2 }
 0x15e   : > { %1166 = vmatmul.mubr.bf16.gmra.mxu0 %v5169_v3 }
 0x15f   : > { %4723 = vmatprep.mubr.msk.bf16.mxu0 %vm940_vm0, %v5170_v4 }
 0x166   : > { %1174 = vmatmul.mubr.bf16.gmra.mxu0 %v5172_v5 }
 0x167   : > { %4724 = vmatprep.mubr.msk.bf16.mxu0 %vm940_vm0, %v5173_v6  ;;  %v5258_v6 = vld [vmem:[%s6409_s23 + $0x98] sm:$0xff]  }
 0x16e   : > { %1182 = vmatmul.mubr.bf16.gmra.mxu0 %v5175_v7 }
 0x16f   : > { %4725 = vmatprep.mubr.msk.bf16.mxu0 %vm940_vm0, %v5176_v8 }
 0x176   : > { %1190 = vmatmul.mubr.bf16.gmra.mxu0 %v5178_v9 }
 0x177   : > { %4726 = vmatprep.mubr.msk.bf16.mxu0 %vm940_vm0, %v5179_v10 }
 0x17e   : > { %1198 = vmatmul.mubr.bf16.gmra.mxu0 %v5181_v11  ;;  %v5244_v11 = vld [vmem:[%s6409_s23 + $0x28] sm:$0xff]  }
 0x17f   : > { %4727 = vmatprep.mubr.msk.bf16.mxu0 %vm940_vm0, %v5185_v12 }
 0x186   : > { %1206 = vmatmul.mubr.bf16.gmra.mxu0 %v5188_v13 }
 0x187   : > { %4728 = vmatprep.mubr.msk.bf16.mxu0 %vm940_vm0, %v5193_v14 }
 0x18e   : > { %1214 = vmatmul.mubr.bf16.gmra.mxu0 %v5195_v15 }
 0x18f   : > { %4729 = vmatprep.mubr.msk.bf16.mxu0 %vm940_vm0, %v5200_v16 }
 0x196   : > { %1222 = vmatmul.mubr.bf16.gmra.mxu0 %v5203_v17 }
 0x197   : > { %4730 = vmatprep.mubr.msk.bf16.mxu0 %vm940_vm0, %v5208_v18 }
 0x19e   : > { %1230 = vmatmul.mubr.bf16.gmra.mxu0 %v5210_v19 }
 0x19f   : > { %4731 = vmatprep.mubr.msk.bf16.mxu0 %vm940_vm0, %v5215_v20 }
 0x1a6   : > { %1238 = vmatmul.mubr.bf16.gmra.mxu0 %v5218_v21 }
 0x1a7   : > { %4732 = vmatprep.mubr.msk.bf16.mxu0 %vm940_vm0, %v5223_v22  ;;  %v5245_v22 = vld [vmem:[%s6409_s23 + $0x30] sm:$0xff]  }
 0x1ae   : > { %1246 = vmatmul.mubr.bf16.gmra.mxu0 %v5225_v23 }
 0x1af   : > { %4733 = vmatprep.mubr.msk.bf16.mxu0 %vm940_vm0, %v5230_v24 }
 0x1b6   : > { %1254 = vmatmul.mubr.bf16.gmra.mxu0 %v5233_v25 }
 0x1be   : > { %v6566_v26 = vpop.f32.mrf.mxu0  ;;  %v6568_v27 = vpop.f32.mrf.mxu1 }
 0x1bf   : > { %8425 = vst [vmem:[#allocation24_spill] sm:$0xff] %v6568_v27 }
 0x1c0   : > { %v1073_v28 = vpop.f32.mrf.mxu0  ;;  %v1265_v29 = vpop.f32.mrf.mxu1 }
 0x1c2   : > { %v6570_v30 = vpop.f32.mrf.mxu0  ;;  %v6575_v33 = vpop.f32.mrf.mxu1 }
 0x1c3   : > { %v2086_v32 = vpack.c.bf16 %v6570_v30, %v6566_v26  ;;  %8426 = vst [vmem:[#allocation25_spill] sm:$0xff] %v6575_v33 }
 0x1c4   : > { %v1076_v34 = vpop.f32.mrf.mxu0  ;;  %v1268_v35 = vpop.f32.mrf.mxu1 }
 0x1c5   : > { %2567 = vmatmul.mubr.bf16.vlgmr.msra.gmra.mxu1 %v2086_v32 }
 0x1c6   : > { %v6577_v36 = vpop.f32.mrf.mxu0  ;;  %4795 = vmatprep.mubr.msk.bf16.mxu1 %vm940_vm0, %v5240_v31  ;;  %v6582_v38 = vpop.f32.mrf.mxu1  ;;  %v5257_v31 = vld [vmem:[%s6409_s23 + $0x90] sm:$0xff]  }
 0x1c7   : > { %8427 = vst [vmem:[#allocation26_spill] sm:$0xff] %v6582_v38 }
 0x1c8   : > { %v1081_v39 = vpop.f32.mrf.mxu0  ;;  %v1273_v40 = vpop.f32.mrf.mxu1 }
 0x1c9   : > { %v5246_v40 = vld [vmem:[%s6409_s23 + $0x38] sm:$0xff]  }
 0x1ca   : > { %v6584_v41 = vpop.f32.mrf.mxu0  ;;  %v6589_v44 = vpop.f32.mrf.mxu1 }
 0x1cb   : > { %v2087_v43 = vpack.c.bf16 %v6584_v41, %v6577_v36  ;;  %8428 = vst [vmem:[#allocation27_spill] sm:$0xff] %v6589_v44 }
 0x1cc   : > { %v1084_v45 = vpop.f32.mrf.mxu0  ;;  %v1276_v46 = vpop.f32.mrf.mxu1 }
 0x1cd   : > { %2575 = vmatmul.mubr.bf16.gmra.mxu1 %v2087_v43 }
 0x1ce   : > { %v6591_v47 = vpop.f32.mrf.mxu0  ;;  %4796 = vmatprep.mubr.msk.bf16.mxu1 %vm940_vm0, %v5241_v42  ;;  %v6596_v49 = vpop.f32.mrf.mxu1 }
 0x1cf   : > { %8429 = vst [vmem:[#allocation28_spill] sm:$0xff] %v6596_v49 }
 0x1d0   : > { %v1089_v50 = vpop.f32.mrf.mxu0  ;;  %v1281_v51 = vpop.f32.mrf.mxu1 }
 0x1d2   : > { %v6598_v52 = vpop.f32.mrf.mxu0  ;;  %v6603_v55 = vpop.f32.mrf.mxu1 }
 0x1d3   : > { %v2088_v54 = vpack.c.bf16 %v6598_v52, %v6591_v47  ;;  %8430 = vst [vmem:[#allocation29_spill] sm:$0xff] %v6603_v55 }
 0x1d4   : > { %v1092_v56 = vpop.f32.mrf.mxu0  ;;  %v1284_v57 = vpop.f32.mrf.mxu1 }
 0x1d5   : > { %2583 = vmatmul.mubr.bf16.gmra.mxu1 %v2088_v54 }
 0x1d6   : > { %v6605_v58 = vpop.f32.mrf.mxu0  ;;  %4797 = vmatprep.mubr.msk.bf16.mxu1 %vm940_vm0, %v5242_v53  ;;  %v6610_v60 = vpop.f32.mrf.mxu1 }
 0x1d7   : > { %8431 = vst [vmem:[#allocation30_spill] sm:$0xff] %v6610_v60 }
 0x1d8   : > { %v1097_v61 = vpop.f32.mrf.mxu0  ;;  %v1289_v62 = vpop.f32.mrf.mxu1 }
 0x1d9   : > { %v5247_v61 = vld [vmem:[%s6409_s23 + $0x40] sm:$0xff]  }
 0x1da   : > { %v6612_v63 = vpop.f32.mrf.mxu0  ;;  %v6617_v2 = vpop.f32.mrf.mxu1 }
 0x1db   : > { %v2089_v1 = vpack.c.bf16 %v6612_v63, %v6605_v58  ;;  %8432 = vst [vmem:[#allocation31_spill] sm:$0xff] %v6617_v2 }
 0x1dc   : > { %v1100_v3 = vpop.f32.mrf.mxu0  ;;  %v1292_v4 = vpop.f32.mrf.mxu1 }
 0x1dd   : > { %2591 = vmatmul.mubr.bf16.gmra.mxu1 %v2089_v1 }
 0x1de   : > { %v6619_v5 = vpop.f32.mrf.mxu0  ;;  %4798 = vmatprep.mubr.msk.bf16.mxu1 %vm940_vm0, %v5243_v0  ;;  %v6624_v7 = vpop.f32.mrf.mxu1 }
 0x1df   : > { %8433 = vst [vmem:[#allocation32_spill] sm:$0xff] %v6624_v7 }
 0x1e0   : > { %v1105_v8 = vpop.f32.mrf.mxu0  ;;  %v1297_v9 = vpop.f32.mrf.mxu1 }
 0x1e1   : > { %v5256_v8 = vld [vmem:[%s6409_s23 + $0x88] sm:$0xff]  }
 0x1e2   : > { %v6626_v10 = vpop.f32.mrf.mxu0  ;;  %v6631_v13 = vpop.f32.mrf.mxu1 }
 0x1e3   : > { %v2090_v12 = vpack.c.bf16 %v6626_v10, %v6619_v5  ;;  %8434 = vst [vmem:[#allocation33_spill] sm:$0xff] %v6631_v13 }
 0x1e4   : > { %v1108_v14 = vpop.f32.mrf.mxu0  ;;  %v1300_v15 = vpop.f32.mrf.mxu1 }
 0x1e5   : > { %2599 = vmatmul.mubr.bf16.gmra.mxu1 %v2090_v12  ;;  %v5248_v12 = vld [vmem:[%s6409_s23 + $0x48] sm:$0xff]  }
 0x1e6   : > { %v6633_v16 = vpop.f32.mrf.mxu0  ;;  %4799 = vmatprep.mubr.msk.bf16.mxu1 %vm940_vm0, %v5244_v11  ;;  %v6638_v18 = vpop.f32.mrf.mxu1 }
 0x1e7   : > { %8435 = vst [vmem:[#allocation34_spill] sm:$0xff] %v6638_v18 }
 0x1e8   : > { %v1113_v19 = vpop.f32.mrf.mxu0  ;;  %v1305_v20 = vpop.f32.mrf.mxu1 }
 0x1ea   : > { %v6640_v21 = vpop.f32.mrf.mxu0  ;;  %v6645_v24 = vpop.f32.mrf.mxu1 }
 0x1eb   : > { %v2091_v23 = vpack.c.bf16 %v6640_v21, %v6633_v16  ;;  %8436 = vst [vmem:[#allocation35_spill] sm:$0xff] %v6645_v24 }
 0x1ec   : > { %v1116_v25 = vpop.f32.mrf.mxu0  ;;  %v1308_v28 = vpop.f32.mrf.mxu1 }
 0x1ed   : > { %2607 = vmatmul.mubr.bf16.gmra.mxu1 %v2091_v23  ;;  %v5249_v23 = vld [vmem:[%s6409_s23 + $0x50] sm:$0xff]  }
 0x1ee   : > { %v6647_v29 = vpop.f32.mrf.mxu0  ;;  %4800 = vmatprep.mubr.msk.bf16.mxu1 %vm940_vm0, %v5245_v22  ;;  %v6652_v32 = vpop.f32.mrf.mxu1 }
 0x1ef   : > { %8437 = vst [vmem:[#allocation36_spill] sm:$0xff] %v6652_v32 }
 0x1f0   : > { %v1121_v34 = vpop.f32.mrf.mxu0  ;;  %v1313_v35 = vpop.f32.mrf.mxu1 }
 0x1f2   : > { %v6654_v39 = vpop.f32.mrf.mxu0  ;;  %v6659_v43 = vpop.f32.mrf.mxu1 }
 0x1f3   : > { %v2092_v42 = vpack.c.bf16 %v6654_v39, %v6647_v29  ;;  %8438 = vst [vmem:[#allocation37_spill] sm:$0xff] %v6659_v43 }
 0x1f4   : > { %v1124_v45 = vpop.f32.mrf.mxu0  ;;  %v1316_v46 = vpop.f32.mrf.mxu1 }
 0x1f5   : > { %2615 = vmatmul.mubr.bf16.gmra.mxu1 %v2092_v42  ;;  %v5250_v42 = vld [vmem:[%s6409_s23 + $0x58] sm:$0xff]  }
 0x1f6   : > { %v6661_v50 = vpop.f32.mrf.mxu0  ;;  %4801 = vmatprep.mubr.msk.bf16.mxu1 %vm940_vm0, %v5246_v40  ;;  %v6666_v53 = vpop.f32.mrf.mxu1 }
 0x1f7   : > { %8439 = vst [vmem:[#allocation38_spill] sm:$0xff] %v6666_v53 }
 0x1f8   : > { %v1129_v54 = vpop.f32.mrf.mxu0  ;;  %v1321_v56 = vpop.f32.mrf.mxu1 }
 0x1fa   : > { %v6668_v57 = vpop.f32.mrf.mxu0  ;;  %v6673_v0 = vpop.f32.mrf.mxu1 }
 0x1fb   : > { %8440 = vst [vmem:[#allocation39_spill] sm:$0xff] %v6668_v57  ;;  %v2093_v62 = vpack.c.bf16 %v6668_v57, %v6661_v50  ;;  %8441 = vst [vmem:[#allocation40_spill] sm:$0xff] %v6673_v0 }
 0x1fc   : > { %v1132_v1 = vpop.f32.mrf.mxu0  ;;  %v1324_v3 = vpop.f32.mrf.mxu1 }
 0x1fd   : > { %2623 = vmatmul.mubr.bf16.gmra.mxu1 %v2093_v62  ;;  %v5251_v62 = vld [vmem:[%s6409_s23 + $0x60] sm:$0xff]  }
 0x1fe   : > { %v6675_v4 = vpop.f32.mrf.mxu0  ;;  %4802 = vmatprep.mubr.msk.bf16.mxu1 %vm940_vm0, %v5247_v61 }
 0x1ff   : > { %8442 = vst [vmem:[#allocation41_spill] sm:$0xff] %v6675_v4 }
 0x200   : > { %v1137_v9 = vpop.f32.mrf.mxu0 }
 0x202   : > { %v6680_v11 = vpop.f32.mrf.mxu0 }
 0x203   : > { %8443 = vst [vmem:[#allocation42_spill] sm:$0xff] %v6680_v11  ;;  %v2094_v14 = vpack.c.bf16 %v6680_v11, %v6675_v4 }
 0x204   : > { %v1140_v15 = vpop.f32.mrf.mxu0 }
 0x205   : > { %2631 = vmatmul.mubr.bf16.gmra.mxu1 %v2094_v14  ;;  %v5252_v15 = vld [vmem:[%s6409_s23 + $0x68] sm:$0xff]  }
 0x206   : > { %v6685_v19 = vpop.f32.mrf.mxu0  ;;  %4803 = vmatprep.mubr.msk.bf16.mxu1 %vm940_vm0, %v5248_v12 }
 0x207   : > { %8444 = vst [vmem:[#allocation43_spill] sm:$0xff] %v6685_v19 }
 0x208   : > { %v1145_v20 = vpop.f32.mrf.mxu0 }
 0x20a   : > { %v6688_v22 = vpop.f32.mrf.mxu0 }
 0x20b   : > { %8445 = vst [vmem:[#allocation44_spill] sm:$0xff] %v6688_v22  ;;  %v2095_v25 = vpack.c.bf16 %v6688_v22, %v6685_v19 }
 0x20c   : > { %v1148_v28 = vpop.f32.mrf.mxu0 }
 0x20d   : > { %2639 = vmatmul.mubr.bf16.gmra.mxu1 %v2095_v25 }
 0x20e   : > { %v6693_v34 = vpop.f32.mrf.mxu0  ;;  %4804 = vmatprep.mubr.msk.bf16.mxu1 %vm940_vm0, %v5249_v23 }
 0x20f   : > { %8446 = vst [vmem:[#allocation45_spill] sm:$0xff] %v6693_v34 }
 0x210   : > { %v1153_v35 = vpop.f32.mrf.mxu0 }
 0x212   : > { %v6696_v40 = vpop.f32.mrf.mxu0 }
 0x213   : > { %8447 = vst [vmem:[#allocation46_spill] sm:$0xff] %v6696_v40  ;;  %v2096_v45 = vpack.c.bf16 %v6696_v40, %v6693_v34 }
 0x214   : > { %v1156_v46 = vpop.f32.mrf.mxu0 }
 0x215   : > { %2647 = vmatmul.mubr.bf16.gmra.mxu1 %v2096_v45 }
 0x216   : > { %v6701_v54 = vpop.f32.mrf.mxu0  ;;  %4805 = vmatprep.mubr.msk.bf16.mxu1 %vm940_vm0, %v5250_v42  ;;  %v5253_v42 = vld [vmem:[%s6409_s23 + $0x70] sm:$0xff]  }
 0x217   : > { %8448 = vst [vmem:[#allocation47_spill] sm:$0xff] %v6701_v54 }
 0x218   : > { %v1161_v56 = vpop.f32.mrf.mxu0 }
 0x21a   : > { %v6704_v61 = vpop.f32.mrf.mxu0 }
 0x21b   : > { %8449 = vst [vmem:[#allocation48_spill] sm:$0xff] %v6704_v61  ;;  %v2097_v1 = vpack.c.bf16 %v6704_v61, %v6701_v54 }
 0x21c   : > { %v1164_v3 = vpop.f32.mrf.mxu0 }
 0x21d   : > { %2655 = vmatmul.mubr.bf16.gmra.mxu1 %v2097_v1  ;;  %v5254_v3 = vld [vmem:[%s6409_s23 + $0x78] sm:$0xff]  }
 0x21e   : > { %v6709_v9 = vpop.f32.mrf.mxu0  ;;  %4806 = vmatprep.mubr.msk.bf16.mxu1 %vm940_vm0, %v5251_v62 }
 0x21f   : > { %8450 = vst [vmem:[#allocation49_spill] sm:$0xff] %v6709_v9 }
 0x220   : > { %v1169_v12 = vpop.f32.mrf.mxu0 }
 0x222   : > { %v6712_v14 = vpop.f32.mrf.mxu0 }
 0x223   : > { %8451 = vst [vmem:[#allocation50_spill] sm:$0xff] %v6712_v14  ;;  %v2098_v20 = vpack.c.bf16 %v6712_v14, %v6709_v9 }
 0x224   : > { %v1172_v23 = vpop.f32.mrf.mxu0 }
 0x225   : > { %2663 = vmatmul.mubr.bf16.gmra.mxu1 %v2098_v20 }
 0x226   : > { %v6717_v25 = vpop.f32.mrf.mxu0  ;;  %4807 = vmatprep.mubr.msk.bf16.mxu1 %vm940_vm0, %v5252_v15 }
 0x227   : > { %8452 = vst [vmem:[#allocation51_spill] sm:$0xff] %v6717_v25 }
 0x228   : > { %v1177_v28 = vpop.f32.mrf.mxu0 }
 0x22a   : > { %v6720_v35 = vpop.f32.mrf.mxu0 }
 0x22b   : > { %8453 = vst [vmem:[#allocation52_spill] sm:$0xff] %v6720_v35  ;;  %v2099_v45 = vpack.c.bf16 %v6720_v35, %v6717_v25 }
 0x22c   : > { %v1180_v46 = vpop.f32.mrf.mxu0 }
 0x22d   : > { %2671 = vmatmul.mubr.bf16.gmra.mxu1 %v2099_v45  ;;  %v5255_v45 = vld [vmem:[%s6409_s23 + $0x80] sm:$0xff]  }
 0x22e   : > { %v6725_v56 = vpop.f32.mrf.mxu0  ;;  %4808 = vmatprep.mubr.msk.bf16.mxu1 %vm940_vm0, %v5253_v42 }
 0x22f   : > { %8454 = vst [vmem:[#allocation53_spill] sm:$0xff] %v6725_v56 }
 0x230   : > { %v1185_v62 = vpop.f32.mrf.mxu0 }
 0x232   : > { %v6728_v1 = vpop.f32.mrf.mxu0 }
 0x233   : > { %8455 = vst [vmem:[#allocation54_spill] sm:$0xff] %v6728_v1  ;;  %v2100_v12 = vpack.c.bf16 %v6728_v1, %v6725_v56 }
 0x234   : > { %v1188_v15 = vpop.f32.mrf.mxu0 }
 0x235   : > { %2679 = vmatmul.mubr.bf16.gmra.mxu1 %v2100_v12 }
 0x236   : > { %v6733_v20 = vpop.f32.mrf.mxu0  ;;  %4809 = vmatprep.mubr.msk.bf16.mxu1 %vm940_vm0, %v5254_v3 }
 0x237   : > { %8456 = vst [vmem:[#allocation55_spill] sm:$0xff] %v6733_v20 }
 0x238   : > { %v1193_v23 = vpop.f32.mrf.mxu0 }
 0x23a   : > { %v6736_v28 = vpop.f32.mrf.mxu0 }
 0x23b   : > { %8457 = vst [vmem:[#allocation56_spill] sm:$0xff] %v6736_v28  ;;  %v2101_v42 = vpack.c.bf16 %v6736_v28, %v6733_v20 }
 0x23c   : > { %v1196_v46 = vpop.f32.mrf.mxu0 }
 0x23d   : > { %2687 = vmatmul.mubr.bf16.gmra.mxu1 %v2101_v42 }
 0x23e   : > { %v6741_v62 = vpop.f32.mrf.mxu0  ;;  %4810 = vmatprep.mubr.msk.bf16.mxu1 %vm940_vm0, %v5255_v45 }
 0x23f   : > { %8458 = vst [vmem:[#allocation57_spill] sm:$0xff] %v6741_v62 }
 0x240   : > { %v1201_v15 = vpop.f32.mrf.mxu0 }
 0x242   : > { %v6744_v12 = vpop.f32.mrf.mxu0 }
 0x243   : > { %8459 = vst [vmem:[#allocation58_spill] sm:$0xff] %v6744_v12  ;;  %v2102_v3 = vpack.c.bf16 %v6744_v12, %v6741_v62 }
 0x244   : > { %v1204_v23 = vpop.f32.mrf.mxu0 }
 0x245   : > { %2695 = vmatmul.mubr.bf16.gmra.mxu1 %v2102_v3 }
 0x246   : > { %v6749_v51 = vpop.f32.mrf.mxu0  ;;  %4811 = vmatprep.mubr.msk.bf16.mxu1 %vm940_vm0, %v5256_v8 }
 0x247   : > { %8460 = vst [vmem:[#allocation59_spill] sm:$0xff] %v6749_v51 }
 0x248   : > { %v1209_v46 = vpop.f32.mrf.mxu0 }
 0x24a   : > { %v6752_v42 = vpop.f32.mrf.mxu0 }
 0x24b   : > { %8461 = vst [vmem:[#allocation60_spill] sm:$0xff] %v6752_v42  ;;  %v2103_v45 = vpack.c.bf16 %v6752_v42, %v6749_v51  ;;  %v6864_v51 = vld [vmem:[%s6418_s25 + $0x1] ss:$0 sm:$0xff] }
 0x24c   : > { %v1212_v15 = vpop.f32.mrf.mxu0 }
 0x24d   : > { %2703 = vmatmul.mubr.bf16.gmra.mxu1 %v2103_v45 }
 0x24e   : > { %v6757_v17 = vpop.f32.mrf.mxu0  ;;  %4812 = vmatprep.mubr.msk.bf16.mxu1 %vm940_vm0, %v5257_v31 }
 0x24f   : > { %8462 = vst [vmem:[#allocation61_spill] sm:$0xff] %v6757_v17 }
 0x250   : > { %v1217_v23 = vpop.f32.mrf.mxu0 }
 0x252   : > { %v6760_v3 = vpop.f32.mrf.mxu0 }
 0x253   : > { %8463 = vst [vmem:[#allocation62_spill] sm:$0xff] %v6760_v3  ;;  %v2104_v8 = vpack.c.bf16 %v6760_v3, %v6757_v17 }
 0x254   : > { %v1220_v46 = vpop.f32.mrf.mxu0 }
 0x255   : > { %2711 = vmatmul.mubr.bf16.gmra.mxu1 %v2104_v8 }
 0x256   : > { %v6765_v59 = vpop.f32.mrf.mxu0  ;;  %4813 = vmatprep.mubr.msk.bf16.mxu1 %vm940_vm0, %v5258_v6  ;;  %v5260_v6 = vld [vmem:[%s6409_s23 + $0xa8] sm:$0xff]  }
 0x257   : > { %8464 = vst [vmem:[#allocation63_spill] sm:$0xff] %v6765_v59 }
 0x258   : > { %v1225_v15 = vpop.f32.mrf.mxu0 }
 0x25a   : > { %v6768_v45 = vpop.f32.mrf.mxu0 }
 0x25b   : > { %8465 = vst [vmem:[#allocation64_spill] sm:$0xff] %v6768_v45  ;;  %v2105_v31 = vpack.c.bf16 %v6768_v45, %v6765_v59 }
 0x25c   : > { %v1228_v23 = vpop.f32.mrf.mxu0 }
 0x25d   : > { %2719 = vmatmul.mubr.bf16.gmra.mxu1 %v2105_v31  ;;  %v5261_v23 = vld [vmem:[%s6409_s23 + $0xb0] sm:$0xff]  }
 0x25e   : > { %v6773_v46 = vpop.f32.mrf.mxu0  ;;  %4814 = vmatprep.mubr.msk.bf16.mxu1 %vm940_vm0, %v5259_v48 }
 0x25f   : > { %8466 = vst [vmem:[#allocation65_spill] sm:$0xff] %v6773_v46 }
 0x260   : > { %v1233_v8 = vpop.f32.mrf.mxu0 }
 0x262   : > { %v6776_v3 = vpop.f32.mrf.mxu0 }
 0x263   : > { %8467 = vst [vmem:[#allocation66_spill] sm:$0xff] %v6776_v3  ;;  %v2106_v15 = vpack.c.bf16 %v6776_v3, %v6773_v46 }
 0x264   : > { %v1236_v17 = vpop.f32.mrf.mxu0 }
 0x265   : > { %2727 = vmatmul.mubr.bf16.gmra.mxu1 %v2106_v15 }
 0x266   : > { %v6781_v45 = vpop.f32.mrf.mxu0  ;;  %4815 = vmatprep.mubr.msk.bf16.mxu1 %vm940_vm0, %v5260_v6  ;;  %v5262_v6 = vld [vmem:[%s6409_s23 + $0xb8] sm:$0xff]  }
 0x267   : > { %8468 = vst [vmem:[#allocation67_spill] sm:$0xff] %v6781_v45 }
 0x268   : > { %v1241_v31 = vpop.f32.mrf.mxu0 }
 0x26a   : > { %v6784_v37 = vpop.f32.mrf.mxu0 }
 0x26b   : > { %8469 = vst [vmem:[#allocation68_spill] sm:$0xff] %v6784_v37  ;;  %v2107_v48 = vpack.c.bf16 %v6784_v37, %v6781_v45  ;;  %v5263_v37 = vld [vmem:[%s6409_s23 + $0xc0] sm:$0xff]   ;;  %v5264_v45 = vld [vmem:[%s6409_s23 + $0xc8] sm:$0xff]  }
 0x26c   : > { %v1244_v8 = vpop.f32.mrf.mxu0 }
 0x26d   : > { %2735 = vmatmul.mubr.bf16.gmra.mxu1 %v2107_v48 }
 0x26e   : > { %v6789_v59 = vpop.f32.mrf.mxu0  ;;  %4816 = vmatprep.mubr.msk.bf16.mxu1 %vm940_vm0, %v5261_v23 }
 0x26f   : > { %8470 = vst [vmem:[#allocation69_spill] sm:$0xff] %v6789_v59 }
 0x270   : > { %v1249_v17 = vpop.f32.mrf.mxu0 }
 0x272   : > { %v6792_v15 = vpop.f32.mrf.mxu0 }
 0x273   : > { %8471 = vst [vmem:[#allocation70_spill] sm:$0xff] %v6792_v15  ;;  %v2108_v31 = vpack.c.bf16 %v6792_v15, %v6789_v59  ;;  %v6808_v15 = vld [vmem:[%s6418_s25] ss:$0 sm:$0xff] }
 0x274   : > { %v1252_v3 = vpop.f32.mrf.mxu0 }
 0x275   : > { %2743 = vmatmul.mubr.bf16.gmra.mxu1 %v2108_v31  ;;  %v8474_v31 = vpack.c.bf16 %v6575_v33, %v6568_v27  ;;  %v5266_v27 = vld [vmem:[%s6409_s23 + $0xd8] sm:$0xff]  }
 0x276   : > { %v6797_v46 = vpop.f32.mrf.mxu0  ;;  %4817 = vmatprep.mubr.msk.bf16.mxu1 %vm940_vm0, %v5262_v6 }
 0x277   : > { %8472 = vst [vmem:[#allocation71_spill] sm:$0xff] %v6797_v46 }
 0x278   : > { %v1257_v48 = vpop.f32.mrf.mxu0 }
 0x27a   : > { %v6800_v8 = vpop.f32.mrf.mxu0 }
 0x27b   : > { %8473 = vst [vmem:[#allocation72_spill] sm:$0xff] %v6800_v8  ;;  %v2109_v23 = vpack.c.bf16 %v6800_v8, %v6797_v46  ;;  %v5272_v46 = vld [vmem:[#allocation13 + $0x10] sm:$0xff]  }
 0x27c   : > { %v1260_v17 = vpop.f32.mrf.mxu0  ;;  %4923 = vmatprep.subr.bf16.mxu0 %v5272_v46 }
 0x27d   : > { %2751 = vmatmul.mubr.bf16.gmra.mxu1 %v2109_v23  ;;  %v5265_v23 = vld [vmem:[%s6409_s23 + $0xd0] sm:$0xff]   ;;  %4924 = vmatpush3.bf16.msra.mxu0 %v5272_v46  ;;  %v5273_v46 = vld [vmem:[#allocation13 + $0x8] sm:$0xff]  }
 0x27e   : > { %4818 = vmatprep.mubr.msk.bf16.mxu1 %vm940_vm0, %v5263_v37  ;;  %4925 = vmatprep.subr.bf16.mxu0 %v5273_v46 }
 0x281   : > { %4926 = vmatpush3.bf16.msra.mxu0 %v5273_v46 }
 0x285   : > { %v2568_v3 = vpop.f32.mrf.mxu1  ;;  %2759 = vmatmul.mubr.bf16.gmra.mxu1 %v8474_v31 }
 0x286   : > { %v6814_v6 = vadd.f32 %v6808_v15, %v2568_v3  ;;  %4819 = vmatprep.mubr.msk.bf16.mxu1 %vm940_vm0, %v5264_v45  ;;  %v8475_v3 = vpack.c.bf16 %v6589_v44, %v6582_v38  ;;  %v5274_v38 = vld [vmem:[#allocation13] sm:$0xff]  }
 0x287   : > { %v2570_v48 = vpop.f32.mrf.mxu1  ;;  %4927 = vmatprep.subr.bf16.mxu0 %v5274_v38 }
 0x288   : > { %v3007_v8 = vmul.f32 0.5, %v6814_v6  ;;  %4928 = vmatpush3.bf16.msra.mxu0 %v5274_v38 }
 0x289   : > { %v2571_v17 = vpop.f32.mrf.mxu1 }
 0x28a   : > { %5275 = vtanh.f32 %v3007_v8  ;;  %v6819_v37 = vadd.f32 %v6808_v15, %v2571_v17 }
 0x28b   : > { %v2573_v59 = vpop.f32.mrf.mxu1 }
 0x28c   : > { %v3008_v33 = vmul.f32 0.5, %v6819_v37 }
 0x28d   : > { %v2576_v31 = vpop.f32.mrf.mxu1  ;;  %2767 = vmatmul.mubr.bf16.gmra.mxu1 %v8475_v3 }
 0x28e   : > { %5277 = vtanh.f32 %v3008_v33  ;;  %v6827_v45 = vadd.f32 %v6808_v15, %v2576_v31  ;;  %4820 = vmatprep.mubr.msk.bf16.mxu1 %vm940_vm0, %v5265_v23  ;;  %v8476_v33 = vpack.c.bf16 %v6603_v55, %v6596_v49 }
 0x28f   : > { %v2578_v8 = vpop.f32.mrf.mxu1 }
 0x290   : > { %v3009_v48 = vmul.f32 0.5, %v6827_v45 }
 0x291   : > { %v2579_v17 = vpop.f32.mrf.mxu1 }
 0x292   : > { %5279 = vtanh.f32 %v3009_v48  ;;  %v6832_v59 = vadd.f32 %v6808_v15, %v2579_v17 }
 0x293   : > { %v2581_v42 = vpop.f32.mrf.mxu1 }
 0x294   : > { %v3010_v44 = vmul.f32 0.5, %v6832_v59 }
 0x295   : > { %v2584_v3 = vpop.f32.mrf.mxu1  ;;  %2775 = vmatmul.mubr.bf16.gmra.mxu1 %v8476_v33 }
 0x296   : > { %5281 = vtanh.f32 %v3010_v44  ;;  %v6840_v23 = vadd.f32 %v6808_v15, %v2584_v3  ;;  %4821 = vmatprep.mubr.msk.bf16.mxu1 %vm940_vm0, %v5266_v27  ;;  %v5267_v44 = vld [vmem:[%s6409_s23 + $0xe0] sm:$0xff]  }
 0x297   : > { %v5276_v31 = vpop.eup %5275  ;;  %v2586_v8 = vpop.f32.mrf.mxu1 }
 0x298   : > { %v3011_v42 = vmul.f32 0.5, %v6840_v23  ;;  %v3135_v48 = vmul.f32 0.5, %v5276_v31  ;;  %v8477_v31 = vpack.c.bf16 %v6617_v2, %v6610_v60 }
 0x299   : > { %v2587_v17 = vpop.f32.mrf.mxu1 }
 0x29a   : > { %5283 = vtanh.f32 %v3011_v42  ;;  %v6845_v33 = vadd.f32 %v6808_v15, %v2587_v17  ;;  %v3199_v55 = vadd.f32 0.5, %v3135_v48 }
 0x29b   : > { %v5278_v49 = vpop.eup %5277  ;;  %v2589_v3 = vpop.f32.mrf.mxu1 }
 0x29c   : > { %v3012_v27 = vmul.f32 0.5, %v6845_v33  ;;  %3327 = vrot.lane.b32.xlu0 %v3199_v55, %s6074_s16  ;;  %v3136_v8 = vmul.f32 0.5, %v5278_v49 }
 0x29d   : > { %v2592_v46 = vpop.f32.mrf.mxu1  ;;  %2783 = vmatmul.mubr.bf16.gmra.mxu1 %v8477_v31  ;;  %v5268_v31 = vld [vmem:[%s6409_s23 + $0xe8] sm:$0xff]  }
 0x29e   : > { %5285 = vtanh.f32 %v3012_v27  ;;  %v6854_v42 = vadd.f32 %v6808_v15, %v2592_v46  ;;  %v3200_v48 = vadd.f32 0.5, %v3136_v8  ;;  %4822 = vmatprep.mubr.msk.bf16.mxu1 %vm940_vm0, %v5267_v44 }
 0x29f   : > { %v5280_v17 = vpop.eup %5279  ;;  %v2594_v3 = vpop.f32.mrf.mxu1 }
 0x2a0   : > { %v3013_v55 = vmul.f32 0.5, %v6854_v42  ;;  %3329 = vrot.lane.b32.xlu0 %v3200_v48, %s6074_s16  ;;  %v3137_v38 = vmul.f32 0.5, %v5280_v17  ;;  %v8478_v48 = vpack.c.bf16 %v6631_v13, %v6624_v7 }
 0x2a1   : > { %v2595_v49 = vpop.f32.mrf.mxu1 }
 0x2a2   : > { %5287 = vtanh.f32 %v3013_v55  ;;  %v6860_v2 = vadd.f32 %v6808_v15, %v2595_v49  ;;  %v3201_v27 = vadd.f32 0.5, %v3137_v38 }
 0x2a3   : > { %v5282_v60 = vpop.eup %5281  ;;  %v2597_v46 = vpop.f32.mrf.mxu1 }
 0x2a4   : > { %v3014_v44 = vmul.f32 0.5, %v6860_v2  ;;  %3331 = vrot.lane.b32.xlu1 %v3201_v27, %s6074_s16  ;;  %v3138_v8 = vmul.f32 0.5, %v5282_v60 }
 0x2a5   : > { %v2600_v3 = vpop.f32.mrf.mxu1  ;;  %2791 = vmatmul.mubr.bf16.gmra.mxu1 %v8478_v48 }
 0x2a6   : > { %5289 = vtanh.f32 %v3014_v44  ;;  %v6872_v15 = vadd.f32 %v6864_v51, %v2600_v3  ;;  %v3202_v17 = vadd.f32 0.5, %v3138_v8  ;;  %4823 = vmatprep.mubr.msk.bf16.mxu1 %vm940_vm0, %v5268_v31  ;;  %v5269_v44 = vld [vmem:[%s6409_s23 + $0xf0] sm:$0xff]  }
 0x2a7   : > { %v5284_v55 = vpop.eup %5283  ;;  %v2602_v38 = vpop.f32.mrf.mxu1 }
 0x2a8   : > { %v3015_v49 = vmul.f32 0.5, %v6872_v15  ;;  %3333 = vrot.lane.b32.xlu1 %v3202_v17, %s6074_s16  ;;  %v3139_v60 = vmul.f32 0.5, %v5284_v55  ;;  %v8479_v17 = vpack.c.bf16 %v6645_v24, %v6638_v18  ;;  %v8480_v18 = vpack.c.bf16 %v6659_v43, %v6652_v32 }
 0x2a9   : > { %v2603_v27 = vpop.f32.mrf.mxu1 }
 0x2aa   : > { %5291 = vtanh.f32 %v3015_v49  ;;  %v6878_v46 = vadd.f32 %v6864_v51, %v2603_v27  ;;  %v3203_v48 = vadd.f32 0.5, %v3139_v60 }
 0x2ab   : > { %v5286_v13 = vpop.eup %5285  ;;  %v2605_v3 = vpop.f32.mrf.mxu1 }
 0x2ac   : > { %v3016_v8 = vmul.f32 0.5, %v6878_v46  ;;  %3335 = vrot.lane.b32.xlu0 %v3203_v48, %s6074_s16  ;;  %v3140_v31 = vmul.f32 0.5, %v5286_v13 }
 0x2ad   : > { %v2608_v38 = vpop.f32.mrf.mxu1  ;;  %2799 = vmatmul.mubr.bf16.gmra.mxu1 %v8479_v17 }
 0x2ae   : > { %5293 = vtanh.f32 %v3016_v8  ;;  %v6887_v55 = vadd.f32 %v6864_v51, %v2608_v38  ;;  %v3204_v49 = vadd.f32 0.5, %v3140_v31  ;;  %4824 = vmatprep.mubr.msk.bf16.mxu1 %vm940_vm0, %v5269_v44  ;;  %v5270_v8 = vld [vmem:[%s6409_s23 + $0xf8] sm:$0xff]   ;;  %s5984_s23 = scalar_lea.vmem %s5983_s4, 16384 }
 0x2af   : > { %v5288_v60 = vpop.eup %5287  ;;  %v2610_v27 = vpop.f32.mrf.mxu1  ;;  %p5986_p0 = scmp.lt.s32.totalorder %s5984_s23, %s5978_s19 }
 0x2b0   : > { %v3017_v3 = vmul.f32 0.5, %v6887_v55  ;;  %3337 = vrot.lane.b32.xlu1 %v3204_v49, %s6074_s16  ;;  %v3141_v13 = vmul.f32 0.5, %v5288_v60 }
 0x2b1   : > { %v2611_v48 = vpop.f32.mrf.mxu1  ;;  %p5987_p6 = por %p5986_p0, %p5985_p4 }
 0x2b2   : > { %5295 = vtanh.f32 %v3017_v3  ;;  %v6893_v7 = vadd.f32 %v6864_v51, %v2611_v48  ;;  %v3205_v17 = vadd.f32 0.5, %v3141_v13 }
 0x2b3   : > { %v5290_v24 = vpop.eup %5289  ;;  %v2613_v38 = vpop.f32.mrf.mxu1  ;;  %p5988_p13 = pnand %p5987_p6, %p5981_p5 }
 0x2b4   : > { %v3018_v31 = vmul.f32 0.5, %v6893_v7  ;;  %3339 = vrot.lane.b32.xlu0 %v3205_v17, %s6074_s16  ;;  %v3142_v44 = vmul.f32 0.5, %v5290_v24 }
 0x2b5   : > { %v2616_v27 = vpop.f32.mrf.mxu1  ;;  %2807 = vmatmul.mubr.bf16.gmra.mxu1 %v8480_v18 }
 0x2b6   : > { %5297 = vtanh.f32 %v3018_v31  ;;  %v6902_v49 = vadd.f32 %v6864_v51, %v2616_v27  ;;  %v3206_v60 = vadd.f32 0.5, %v3142_v44  ;;  %4825 = vmatprep.mubr.msk.bf16.mxu1 %vm940_vm0, %v5270_v8 }
 0x2b7   : > { %v5292_v3 = vpop.eup %5291  ;;  %v2618_v13 = vpop.f32.mrf.mxu1 }
 0x2b8   : > { %v3019_v48 = vmul.f32 0.5, %v6902_v49  ;;  %3341 = vrot.lane.b32.xlu1 %v3206_v60, %s6074_s16  ;;  %v3143_v17 = vmul.f32 0.5, %v5292_v3  ;;  %v8481_v13 = vpack.c.bf16 %v6673_v0, %v6666_v53 }
 0x2b9   : > { %v2619_v24 = vpop.f32.mrf.mxu1 }
 0x2ba   : > { %5299 = vtanh.f32 %v3019_v48  ;;  %v6908_v38 = vadd.f32 %v6864_v51, %v2619_v24  ;;  %v3207_v18 = vadd.f32 0.5, %v3143_v17 }
 0x2bb   : > { %v5294_v31 = vpop.eup %5293  ;;  %v2621_v43 = vpop.f32.mrf.mxu1 }
 0x2bc   : > { %v3020_v27 = vmul.f32 0.5, %v6908_v38  ;;  %3343 = vrot.lane.b32.xlu0 %v3207_v18, %s6074_s16  ;;  %v3144_v8 = vmul.f32 0.5, %v5294_v31 }
 0x2bd   : > { %v2624_v44 = vpop.f32.mrf.mxu1  ;;  %2815 = vmatmul.mubr.bf16.gmra.mxu1 %v8481_v13 }
 0x2be   : > { %5301 = vtanh.f32 %v3020_v27  ;;  %v6916_v60 = vadd.f32 %v6864_v51, %v2624_v44  ;;  %v3208_v3 = vadd.f32 0.5, %v3144_v8  ;;  %v6924_v27 = vld [vmem:[%s6418_s25 + $0x2] ss:$0 sm:$0xff] }
 0x2bf   : > { %v5296_v48 = vpop.eup %5295  ;;  %v2626_v17 = vpop.f32.mrf.mxu1 }
 0x2c0   : > { %v3021_v43 = vmul.f32 0.5, %v6916_v60  ;;  %3345 = vrot.lane.b32.xlu1 %v3208_v3, %s6074_s16  ;;  %v3145_v24 = vmul.f32 0.5, %v5296_v48 }
 0x2c1   : > { %v2627_v18 = vpop.f32.mrf.mxu1 }
 0x2c2   : > { %5303 = vtanh.f32 %v3021_v43  ;;  %v6921_v31 = vadd.f32 %v6864_v51, %v2627_v18  ;;  %v3209_v0 = vadd.f32 0.5, %v3145_v24 }
 0x2c3   : > { %v5298_v53 = vpop.eup %5297  ;;  %v2629_v13 = vpop.f32.mrf.mxu1 }
 0x2c4   : > { %v3022_v44 = vmul.f32 0.5, %v6921_v31  ;;  %3347 = vrot.lane.b32.xlu0 %v3209_v0, %s6074_s16  ;;  %v3146_v8 = vmul.f32 0.5, %v5298_v53 }
 0x2c5   : > { %v2632_v17 = vpop.f32.mrf.mxu1 }
 0x2c6   : > { %5305 = vtanh.f32 %v3022_v44  ;;  %v6929_v3 = vadd.f32 %v6924_v27, %v2632_v17  ;;  %v3210_v48 = vadd.f32 0.5, %v3146_v8 }
 0x2c7   : > { %v5300_v43 = vpop.eup %5299  ;;  %v2634_v32 = vpop.f32.mrf.mxu1 }
 0x2c8   : > { %v3023_v51 = vmul.f32 0.5, %v6929_v3  ;;  %3349 = vrot.lane.b32.xlu1 %v3210_v48, %s6074_s16  ;;  %v3147_v24 = vmul.f32 0.5, %v5300_v43 }
 0x2c9   : > { %v2635_v18 = vpop.f32.mrf.mxu1 }
 0x2ca   : > { %5307 = vtanh.f32 %v3023_v51  ;;  %v6934_v13 = vadd.f32 %v6924_v27, %v2635_v18  ;;  %v3211_v0 = vadd.f32 0.5, %v3147_v24 }
 0x2cb   : > { %v5302_v53 = vpop.eup %5301  ;;  %v2637_v12 = vpop.f32.mrf.mxu1 }
 0x2cc   : > { %v3024_v44 = vmul.f32 0.5, %v6934_v13  ;;  %3351 = vrot.lane.b32.xlu0 %v3211_v0, %s6074_s16  ;;  %v3148_v8 = vmul.f32 0.5, %v5302_v53 }
 0x2cd   : > { %v2640_v17 = vpop.f32.mrf.mxu1 }
 0x2ce   : > { %5309 = vtanh.f32 %v3024_v44  ;;  %v6939_v32 = vadd.f32 %v6924_v27, %v2640_v17  ;;  %v3212_v48 = vadd.f32 0.5, %v3148_v8 }
 0x2cf   : > { %v5304_v43 = vpop.eup %5303  ;;  %v2642_v62 = vpop.f32.mrf.mxu1 }
 0x2d0   : > { %v3025_v51 = vmul.f32 0.5, %v6939_v32  ;;  %3353 = vrot.lane.b32.xlu1 %v3212_v48, %s6074_s16  ;;  %v3149_v24 = vmul.f32 0.5, %v5304_v43 }
 0x2d1   : > { %v2643_v18 = vpop.f32.mrf.mxu1 }
 0x2d2   : > { %5311 = vtanh.f32 %v3025_v51  ;;  %v6944_v12 = vadd.f32 %v6924_v27, %v2643_v18  ;;  %v3213_v0 = vadd.f32 0.5, %v3149_v24 }
 0x2d3   : > { %v5306_v53 = vpop.eup %5305  ;;  %v2645_v28 = vpop.f32.mrf.mxu1 }
 0x2d4   : > { %v3026_v44 = vmul.f32 0.5, %v6944_v12  ;;  %3355 = vrot.lane.b32.xlu0 %v3213_v0, %s6074_s16  ;;  %v3150_v8 = vmul.f32 0.5, %v5306_v53 }
 0x2d5   : > { %v2648_v17 = vpop.f32.mrf.mxu1 }
 0x2d6   : > { %5313 = vtanh.f32 %v3026_v44  ;;  %v6949_v62 = vadd.f32 %v6924_v27, %v2648_v17  ;;  %v3214_v48 = vadd.f32 0.5, %v3150_v8 }
 0x2d7   : > { %v5308_v43 = vpop.eup %5307  ;;  %v2650_v20 = vpop.f32.mrf.mxu1 }
 0x2d8   : > { %v3027_v51 = vmul.f32 0.5, %v6949_v62  ;;  %3357 = vrot.lane.b32.xlu1 %v3214_v48, %s6074_s16  ;;  %v3151_v24 = vmul.f32 0.5, %v5308_v43 }
 0x2d9   : > { %v2651_v18 = vpop.f32.mrf.mxu1 }
 0x2da   : > { %5315 = vtanh.f32 %v3027_v51  ;;  %v6954_v28 = vadd.f32 %v6924_v27, %v2651_v18  ;;  %v3215_v0 = vadd.f32 0.5, %v3151_v24 }
 0x2db   : > { %v5310_v53 = vpop.eup %5309  ;;  %v2653_v1 = vpop.f32.mrf.mxu1 }
 0x2dc   : > { %v3028_v44 = vmul.f32 0.5, %v6954_v28  ;;  %3359 = vrot.lane.b32.xlu0 %v3215_v0, %s6074_s16  ;;  %v3152_v8 = vmul.f32 0.5, %v5310_v53 }
 0x2dd   : > { %v2656_v20 = vpop.f32.mrf.mxu1 }
 0x2de   : > { %5317 = vtanh.f32 %v3028_v44  ;;  %v6959_v17 = vadd.f32 %v6924_v27, %v2656_v20  ;;  %v3216_v48 = vadd.f32 0.5, %v3152_v8  ;;  %v6967_v44 = vld [vmem:[%s6418_s25 + $0x3] ss:$0 sm:$0xff] }
 0x2df   : > { %v5312_v43 = vpop.eup %5311  ;;  %v2658_v51 = vpop.f32.mrf.mxu1 }
 0x2e0   : > { %v3029_v18 = vmul.f32 0.5, %v6959_v17  ;;  %3361 = vrot.lane.b32.xlu1 %v3216_v48, %s6074_s16  ;;  %v3153_v24 = vmul.f32 0.5, %v5312_v43 }
 0x2e1   : > { %v2659_v1 = vpop.f32.mrf.mxu1 }
 0x2e2   : > { %5319 = vtanh.f32 %v3029_v18  ;;  %v6964_v56 = vadd.f32 %v6924_v27, %v2659_v1  ;;  %v3217_v0 = vadd.f32 0.5, %v3153_v24 }
 0x2e3   : > { %v5314_v53 = vpop.eup %5313  ;;  %v2661_v35 = vpop.f32.mrf.mxu1 }
 0x2e4   : > { %v3030_v20 = vmul.f32 0.5, %v6964_v56  ;;  %3363 = vrot.lane.b32.xlu0 %v3217_v0, %s6074_s16  ;;  %v3154_v8 = vmul.f32 0.5, %v5314_v53 }
 0x2e5   : > { %v2664_v51 = vpop.f32.mrf.mxu1 }
 0x2e6   : > { %5321 = vtanh.f32 %v3030_v20  ;;  %v6972_v48 = vadd.f32 %v6967_v44, %v2664_v51  ;;  %v3218_v43 = vadd.f32 0.5, %v3154_v8 }
 0x2e7   : > { %v5316_v18 = vpop.eup %5315  ;;  %v2666_v25 = vpop.f32.mrf.mxu1 }
 0x2e8   : > { %v3031_v27 = vmul.f32 0.5, %v6972_v48  ;;  %3365 = vrot.lane.b32.xlu1 %v3218_v43, %s6074_s16  ;;  %v3155_v35 = vmul.f32 0.5, %v5316_v18 }
 0x2e9   : > { %v2667_v24 = vpop.f32.mrf.mxu1 }
 0x2ea   : > { %5323 = vtanh.f32 %v3031_v27  ;;  %v6977_v1 = vadd.f32 %v6967_v44, %v2667_v24  ;;  %v3219_v0 = vadd.f32 0.5, %v3155_v35 }
 0x2eb   : > { %v5318_v53 = vpop.eup %5317  ;;  %v2669_v14 = vpop.f32.mrf.mxu1 }
 0x2ec   : > { %v3032_v20 = vmul.f32 0.5, %v6977_v1  ;;  %3367 = vrot.lane.b32.xlu0 %v3219_v0, %s6074_s16  ;;  %v3156_v8 = vmul.f32 0.5, %v5318_v53 }
 0x2ed   : > { %v2672_v51 = vpop.f32.mrf.mxu1 }
 0x2ee   : > { %5325 = vtanh.f32 %v3032_v20  ;;  %v6982_v25 = vadd.f32 %v6967_v44, %v2672_v51  ;;  %v3220_v43 = vadd.f32 0.5, %v3156_v8 }
 0x2ef   : > { %v5320_v18 = vpop.eup %5319  ;;  %v2674_v9 = vpop.f32.mrf.mxu1 }
 0x2f0   : > { %v3033_v27 = vmul.f32 0.5, %v6982_v25  ;;  %3369 = vrot.lane.b32.xlu1 %v3220_v43, %s6074_s16  ;;  %v3157_v35 = vmul.f32 0.5, %v5320_v18 }
 0x2f1   : > { %v2675_v24 = vpop.f32.mrf.mxu1 }
 0x2f2   : > { %5327 = vtanh.f32 %v3033_v27  ;;  %v6987_v14 = vadd.f32 %v6967_v44, %v2675_v24  ;;  %v3221_v0 = vadd.f32 0.5, %v3157_v35 }
 0x2f3   : > { %v5322_v53 = vpop.eup %5321  ;;  %v2677_v61 = vpop.f32.mrf.mxu1 }
 0x2f4   : > { %v3034_v20 = vmul.f32 0.5, %v6987_v14  ;;  %3371 = vrot.lane.b32.xlu0 %v3221_v0, %s6074_s16  ;;  %v3158_v8 = vmul.f32 0.5, %v5322_v53 }
 0x2f5   : > { %v2680_v51 = vpop.f32.mrf.mxu1 }
 0x2f6   : > { %5329 = vtanh.f32 %v3034_v20  ;;  %v6992_v9 = vadd.f32 %v6967_v44, %v2680_v51  ;;  %v3222_v43 = vadd.f32 0.5, %v3158_v8 }
 0x2f7   : > { %v5324_v18 = vpop.eup %5323  ;;  %v2682_v54 = vpop.f32.mrf.mxu1 }
 0x2f8   : > { %v3035_v27 = vmul.f32 0.5, %v6992_v9  ;;  %3373 = vrot.lane.b32.xlu1 %v3222_v43, %s6074_s16  ;;  %v3159_v35 = vmul.f32 0.5, %v5324_v18 }
 0x2f9   : > { %v2683_v24 = vpop.f32.mrf.mxu1 }
 0x2fa   : > { %5331 = vtanh.f32 %v3035_v27  ;;  %v6997_v61 = vadd.f32 %v6967_v44, %v2683_v24  ;;  %v3223_v0 = vadd.f32 0.5, %v3159_v35 }
 0x2fb   : > { %v5326_v53 = vpop.eup %5325  ;;  %v2685_v40 = vpop.f32.mrf.mxu1 }
 0x2fc   : > { %v3036_v20 = vmul.f32 0.5, %v6997_v61  ;;  %3375 = vrot.lane.b32.xlu0 %v3223_v0, %s6074_s16  ;;  %v3160_v8 = vmul.f32 0.5, %v5326_v53 }
 0x2fd   : > { %v2688_v54 = vpop.f32.mrf.mxu1 }
 0x2fe   : > { %5333 = vtanh.f32 %v3036_v20  ;;  %v7002_v51 = vadd.f32 %v6967_v44, %v2688_v54  ;;  %v3224_v43 = vadd.f32 0.5, %v3160_v8  ;;  %v7010_v20 = vld [vmem:[%s6418_s25 + $0x4] ss:$0 sm:$0xff] }
 0x2ff   : > { %v5328_v18 = vpop.eup %5327  ;;  %v2690_v27 = vpop.f32.mrf.mxu1 }
 0x300   : > { %v3037_v24 = vmul.f32 0.5, %v7002_v51  ;;  %3377 = vrot.lane.b32.xlu1 %v3224_v43, %s6074_s16  ;;  %v3161_v35 = vmul.f32 0.5, %v5328_v18 }
 0x301   : > { %v2691_v40 = vpop.f32.mrf.mxu1 }
 0x302   : > { %5335 = vtanh.f32 %v3037_v24  ;;  %v7007_v34 = vadd.f32 %v6967_v44, %v2691_v40  ;;  %v3225_v0 = vadd.f32 0.5, %v3161_v35 }
 0x303   : > { %v5330_v53 = vpop.eup %5329  ;;  %v2693_v22 = vpop.f32.mrf.mxu1  ;;  %5337 = vtanh.f32 %v6814_v6 }
 0x304   : > { %v3038_v8 = vmul.f32 0.5, %v7007_v34  ;;  %3379 = vrot.lane.b32.xlu0 %v3225_v0, %s6074_s16  ;;  %v3162_v54 = vmul.f32 0.5, %v5330_v53  ;;  %5339 = vtanh.f32 %v6819_v37 }
 0x305   : > { %v2696_v43 = vpop.f32.mrf.mxu1 }
 0x306   : > { %5341 = vtanh.f32 %v3038_v8  ;;  %v7017_v18 = vadd.f32 %v7010_v20, %v2696_v43  ;;  %v3226_v44 = vadd.f32 0.5, %v3162_v54 }
 0x307   : > { %v5332_v27 = vpop.eup %5331  ;;  %v2698_v24 = vpop.f32.mrf.mxu1 }
 0x308   : > { %v3039_v22 = vmul.f32 0.5, %v7017_v18  ;;  %3381 = vrot.lane.b32.xlu1 %v3226_v44, %s6074_s16  ;;  %v3163_v6 = vmul.f32 0.5, %v5332_v27 }
 0x309   : > { %v2699_v35 = vpop.f32.mrf.mxu1 }
 0x30a   : > { %5343 = vtanh.f32 %v3039_v22  ;;  %v7022_v40 = vadd.f32 %v7010_v20, %v2699_v35  ;;  %v3227_v0 = vadd.f32 0.5, %v3163_v6 }
 0x30b   : > { %v5334_v37 = vpop.eup %5333  ;;  %v2701_v53 = vpop.f32.mrf.mxu1  ;;  %5345 = vtanh.f32 %v6827_v45 }
 0x30c   : > { %v3040_v8 = vmul.f32 0.5, %v7022_v40  ;;  %3383 = vrot.lane.b32.xlu0 %v3227_v0, %s6074_s16  ;;  %v3164_v54 = vmul.f32 0.5, %v5334_v37  ;;  %5347 = vtanh.f32 %v6832_v59 }
 0x30d   : > { %v2704_v43 = vpop.f32.mrf.mxu1 }
 0x30e   : > { %5349 = vtanh.f32 %v3040_v8  ;;  %v7029_v44 = vadd.f32 %v7010_v20, %v2704_v43  ;;  %v3328_v27 = vpop.permute.xlu0 %3327  ;;  %v3228_v24 = vadd.f32 0.5, %v3164_v54 }
 0x30f   : > { %v5336_v22 = vpop.eup %5335  ;;  %v2706_v6 = vpop.f32.mrf.mxu1 }
 0x310   : > { %v3041_v35 = vmul.f32 0.5, %v7029_v44  ;;  %3385 = vrot.lane.b32.xlu1 %v3228_v24, %s6074_s16  ;;  %v3165_v45 = vmul.f32 0.5, %v5336_v22  ;;  %v5338_v53 = vpop.eup %5337 }
 0x311   : > { %v2707_v19 = vpop.f32.mrf.mxu1  ;;  %v5340_v0 = vpop.eup %5339  ;;  %v3519_v11 = vmul.f32 %v5338_v53, %v3328_v27 }
 0x312   : > { %5351 = vtanh.f32 %v3041_v35  ;;  %v7034_v59 = vadd.f32 %v7010_v20, %v2707_v19  ;;  %v3330_v37 = vpop.permute.xlu0 %3329  ;;  %v3229_v8 = vadd.f32 0.5, %v3165_v45 }
 0x313   : > { %v5342_v43 = vpop.eup %5341  ;;  %v3520_v4 = vmul.f32 %v5340_v0, %v3330_v37  ;;  %v2709_v54 = vpop.f32.mrf.mxu1  ;;  %5353 = vtanh.f32 %v6840_v23 }
 0x314   : > { %v3042_v6 = vmul.f32 0.5, %v7034_v59  ;;  %3387 = vrot.lane.b32.xlu0 %v3229_v8, %s6074_s16  ;;  %v3166_v24 = vmul.f32 0.5, %v5342_v43  ;;  %5355 = vtanh.f32 %v6845_v33 }
 0x315   : > { %v3583_v22 = vpack.c.bf16 %v3520_v4, %v3519_v11  ;;  %v2712_v35 = vpop.f32.mrf.mxu1 }
 0x316   : > { %5357 = vtanh.f32 %v3042_v6  ;;  %v7041_v19 = vadd.f32 %v7010_v20, %v2712_v35  ;;  %v3332_v45 = vpop.permute.xlu1 %3331  ;;  %v3230_v57 = vadd.f32 0.5, %v3166_v24 }
 0x317   : > { %v5344_v27 = vpop.eup %5343  ;;  %v2714_v53 = vpop.f32.mrf.mxu1  ;;  %4929 = vmatprep.mubr.msk.bf16.mxu0 %vm940_vm0, %v3583_v22 }
 0x318   : > { %v3043_v23 = vmul.f32 0.5, %v7041_v19  ;;  %3389 = vrot.lane.b32.xlu1 %v3230_v57, %s6074_s16  ;;  %v3167_v0 = vmul.f32 0.5, %v5344_v27  ;;  %v5346_v37 = vpop.eup %5345 }
 0x319   : > { %v2715_v8 = vpop.f32.mrf.mxu1  ;;  %v5348_v33 = vpop.eup %5347  ;;  %v3521_v6 = vmul.f32 %v5346_v37, %v3332_v45 }
 0x31a   : > { %5359 = vtanh.f32 %v3043_v23  ;;  %v7047_v4 = vadd.f32 %v7010_v20, %v2715_v8  ;;  %v3334_v11 = vpop.permute.xlu1 %3333  ;;  %v3231_v43 = vadd.f32 0.5, %v3167_v0 }
 0x31b   : > { %v5350_v54 = vpop.eup %5349  ;;  %v3522_v24 = vmul.f32 %v5348_v33, %v3334_v11  ;;  %v2717_v35 = vpop.f32.mrf.mxu1  ;;  %5361 = vtanh.f32 %v6854_v42 }
 0x31c   : > { %v3044_v22 = vmul.f32 0.5, %v7047_v4  ;;  %3391 = vrot.lane.b32.xlu0 %v3231_v43, %s6074_s16  ;;  %v3168_v57 = vmul.f32 0.5, %v5350_v54  ;;  %5363 = vtanh.f32 %v6860_v2 }
 0x31d   : > { %v3584_v27 = vpack.c.bf16 %v3522_v24, %v3521_v6  ;;  %v2720_v53 = vpop.f32.mrf.mxu1 }
 0x31e   : > { %5365 = vtanh.f32 %v3044_v22  ;;  %v7054_v23 = vadd.f32 %v7010_v20, %v2720_v53  ;;  %v3232_v0 = vadd.f32 0.5, %v3168_v57  ;;  %v3336_v37 = vpop.permute.xlu0 %3335  ;;  %v7063_v53 = vld [vmem:[%s6418_s25 + $0x5] ss:$0 sm:$0xff] }
 0x31f   : > { %v5352_v8 = vpop.eup %5351  ;;  %v2722_v45 = vpop.f32.mrf.mxu1  ;;  %4930 = vmatmul.mubr.msk.bf16.vlgmr.msra.gmra.mxu0 %vm940_vm0, %v3584_v27 }
 0x320   : > { %v3045_v42 = vmul.f32 0.5, %v7054_v23  ;;  %3393 = vrot.lane.b32.xlu1 %v3232_v0, %s6074_s16  ;;  %v3169_v33 = vmul.f32 0.5, %v5352_v8  ;;  %v5354_v11 = vpop.eup %5353 }
 0x321   : > { %v2723_v2 = vpop.f32.mrf.mxu1  ;;  %v5356_v43 = vpop.eup %5355  ;;  %v3523_v22 = vmul.f32 %v5354_v11, %v3336_v37 }
 0x322   : > { %5367 = vtanh.f32 %v3045_v42  ;;  %v7060_v54 = vadd.f32 %v7010_v20, %v2723_v2  ;;  %v3338_v6 = vpop.permute.xlu1 %3337  ;;  %v3233_v24 = vadd.f32 0.5, %v3169_v33 }
 0x323   : > { %v5358_v35 = vpop.eup %5357  ;;  %v3524_v57 = vmul.f32 %v5356_v43, %v3338_v6  ;;  %v2725_v27 = vpop.f32.mrf.mxu1  ;;  %5369 = vtanh.f32 %v6872_v15 }
 0x324   : > { %v3046_v0 = vmul.f32 0.5, %v7060_v54  ;;  %3395 = vrot.lane.b32.xlu0 %v3233_v24, %s6074_s16  ;;  %v3170_v8 = vmul.f32 0.5, %v5358_v35  ;;  %5371 = vtanh.f32 %v6878_v46 }
 0x325   : > { %v3585_v45 = vpack.c.bf16 %v3524_v57, %v3523_v22  ;;  %v2728_v20 = vpop.f32.mrf.mxu1 }
 0x326   : > { %5373 = vtanh.f32 %v3046_v0  ;;  %v7070_v42 = vadd.f32 %v7063_v53, %v2728_v20  ;;  %v3234_v37 = vadd.f32 0.5, %v3170_v8  ;;  %v3340_v2 = vpop.permute.xlu0 %3339 }
 0x327   : > { %v5360_v33 = vpop.eup %5359  ;;  %v2730_v11 = vpop.f32.mrf.mxu1  ;;  %4933 = vmatprep.mubr.msk.bf16.mxu0 %vm940_vm0, %v3585_v45 }
 0x328   : > { %v3047_v15 = vmul.f32 0.5, %v7070_v42  ;;  %3397 = vrot.lane.b32.xlu1 %v3234_v37, %s6074_s16  ;;  %v3171_v43 = vmul.f32 0.5, %v5360_v33  ;;  %v5362_v6 = vpop.eup %5361 }
 0x329   : > { %v2731_v24 = vpop.f32.mrf.mxu1  ;;  %v5364_v46 = vpop.eup %5363  ;;  %v3525_v0 = vmul.f32 %v5362_v6, %v3340_v2 }
 0x32a   : > { %5375 = vtanh.f32 %v3047_v15  ;;  %v7076_v35 = vadd.f32 %v7063_v53, %v2731_v24  ;;  %v3342_v22 = vpop.permute.xlu1 %3341  ;;  %v3235_v57 = vadd.f32 0.5, %v3171_v43 }
 0x32b   : > { %v5366_v27 = vpop.eup %5365  ;;  %v3526_v8 = vmul.f32 %v5364_v46, %v3342_v22  ;;  %v2733_v20 = vpop.f32.mrf.mxu1  ;;  %5377 = vtanh.f32 %v6887_v55 }
 0x32c   : > { %v3048_v45 = vmul.f32 0.5, %v7076_v35  ;;  %3399 = vrot.lane.b32.xlu0 %v3235_v57, %s6074_s16  ;;  %v3172_v37 = vmul.f32 0.5, %v5366_v27  ;;  %5379 = vtanh.f32 %v6893_v7 }
 0x32d   : > { %v3586_v33 = vpack.c.bf16 %v3526_v8, %v3525_v0  ;;  %v2736_v11 = vpop.f32.mrf.mxu1 }
 0x32e   : > { %5381 = vtanh.f32 %v3048_v45  ;;  %v7083_v15 = vadd.f32 %v7063_v53, %v2736_v11  ;;  %v3236_v43 = vadd.f32 0.5, %v3172_v37  ;;  %v3344_v6 = vpop.permute.xlu0 %3343 }
 0x32f   : > { %v5368_v24 = vpop.eup %5367  ;;  %v2738_v2 = vpop.f32.mrf.mxu1  ;;  %4934 = vmatmul.mubr.msk.bf16.gmra.mxu0 %vm940_vm0, %v3586_v33 }
 0x330   : > { %v3049_v55 = vmul.f32 0.5, %v7083_v15  ;;  %3401 = vrot.lane.b32.xlu1 %v3236_v43, %s6074_s16  ;;  %v3173_v46 = vmul.f32 0.5, %v5368_v24  ;;  %v5370_v22 = vpop.eup %5369 }
 0x331   : > { %v2739_v57 = vpop.f32.mrf.mxu1  ;;  %v5372_v7 = vpop.eup %5371  ;;  %v3527_v45 = vmul.f32 %v5370_v22, %v3344_v6 }
 0x332   : > { %5383 = vtanh.f32 %v3049_v55  ;;  %v7089_v27 = vadd.f32 %v7063_v53, %v2739_v57  ;;  %v3346_v0 = vpop.permute.xlu1 %3345  ;;  %v3237_v8 = vadd.f32 0.5, %v3173_v46 }
 0x333   : > { %v5374_v20 = vpop.eup %5373  ;;  %v3528_v37 = vmul.f32 %v5372_v7, %v3346_v0  ;;  %v2741_v11 = vpop.f32.mrf.mxu1  ;;  %5385 = vtanh.f32 %v6902_v49 }
 0x334   : > { %v3050_v33 = vmul.f32 0.5, %v7089_v27  ;;  %3403 = vrot.lane.b32.xlu0 %v3237_v8, %s6074_s16  ;;  %v3174_v43 = vmul.f32 0.5, %v5374_v20  ;;  %5387 = vtanh.f32 %v6908_v38 }
 0x335   : > { %v3587_v24 = vpack.c.bf16 %v3528_v37, %v3527_v45  ;;  %v2744_v2 = vpop.f32.mrf.mxu1 }
 0x336   : > { %5389 = vtanh.f32 %v3050_v33  ;;  %v7096_v55 = vadd.f32 %v7063_v53, %v2744_v2  ;;  %v3238_v46 = vadd.f32 0.5, %v3174_v43  ;;  %v3348_v22 = vpop.permute.xlu0 %3347 }
 0x337   : > { %v5376_v57 = vpop.eup %5375  ;;  %v2746_v6 = vpop.f32.mrf.mxu1  ;;  %4937 = vmatprep.mubr.msk.bf16.mxu0 %vm940_vm0, %v3587_v24 }
 0x338   : > { %v3051_v49 = vmul.f32 0.5, %v7096_v55  ;;  %3405 = vrot.lane.b32.xlu1 %v3238_v46, %s6074_s16  ;;  %v3175_v7 = vmul.f32 0.5, %v5376_v57  ;;  %v5378_v0 = vpop.eup %5377 }
 0x339   : > { %v2747_v8 = vpop.f32.mrf.mxu1  ;;  %v5380_v38 = vpop.eup %5379  ;;  %v3529_v33 = vmul.f32 %v5378_v0, %v3348_v22 }
 0x33a   : > { %5391 = vtanh.f32 %v3051_v49  ;;  %v7102_v20 = vadd.f32 %v7063_v53, %v2747_v8  ;;  %v3350_v45 = vpop.permute.xlu1 %3349  ;;  %v3239_v37 = vadd.f32 0.5, %v3175_v7 }
 0x33b   : > { %v5382_v11 = vpop.eup %5381  ;;  %v3530_v43 = vmul.f32 %v5380_v38, %v3350_v45  ;;  %v2749_v2 = vpop.f32.mrf.mxu1  ;;  %5393 = vtanh.f32 %v6916_v60 }
 0x33c   : > { %v3052_v24 = vmul.f32 0.5, %v7102_v20  ;;  %3407 = vrot.lane.b32.xlu0 %v3239_v37, %s6074_s16  ;;  %v3176_v46 = vmul.f32 0.5, %v5382_v11  ;;  %5395 = vtanh.f32 %v6921_v31 }
 0x33d   : > { %v3588_v57 = vpack.c.bf16 %v3530_v43, %v3529_v33  ;;  %v2752_v6 = vpop.f32.mrf.mxu1 }
 0x33e   : > { %5397 = vtanh.f32 %v3052_v24  ;;  %v7109_v49 = vadd.f32 %v7063_v53, %v2752_v6  ;;  %v3240_v7 = vadd.f32 0.5, %v3176_v46  ;;  %v3352_v0 = vpop.permute.xlu0 %3351  ;;  %v7118_v6 = vld [vmem:[%s6418_s25 + $0x6] ss:$0 sm:$0xff] }
 0x33f   : > { %v5384_v8 = vpop.eup %5383  ;;  %v2754_v22 = vpop.f32.mrf.mxu1  ;;  %4938 = vmatmul.mubr.msk.bf16.gmra.mxu0 %vm940_vm0, %v3588_v57 }
 0x340   : > { %v3053_v60 = vmul.f32 0.5, %v7109_v49  ;;  %3409 = vrot.lane.b32.xlu1 %v3240_v7, %s6074_s16  ;;  %v3177_v38 = vmul.f32 0.5, %v5384_v8  ;;  %v5386_v45 = vpop.eup %5385 }
 0x341   : > { %v2755_v31 = vpop.f32.mrf.mxu1  ;;  %v5388_v37 = vpop.eup %5387  ;;  %v3531_v24 = vmul.f32 %v5386_v45, %v3352_v0 }
 0x342   : > { %5399 = vtanh.f32 %v3053_v60  ;;  %v7115_v11 = vadd.f32 %v7063_v53, %v2755_v31  ;;  %v3354_v33 = vpop.permute.xlu1 %3353  ;;  %v3241_v43 = vadd.f32 0.5, %v3177_v38 }
 0x343   : > { %v5390_v2 = vpop.eup %5389  ;;  %v3532_v46 = vmul.f32 %v5388_v37, %v3354_v33  ;;  %v2757_v57 = vpop.f32.mrf.mxu1  ;;  %5401 = vtanh.f32 %v6929_v3 }
 0x344   : > { %v3054_v7 = vmul.f32 0.5, %v7115_v11  ;;  %3411 = vrot.lane.b32.xlu0 %v3241_v43, %s6074_s16  ;;  %v3178_v8 = vmul.f32 0.5, %v5390_v2  ;;  %5403 = vtanh.f32 %v6934_v13 }
 0x345   : > { %v3589_v22 = vpack.c.bf16 %v3532_v46, %v3531_v24  ;;  %v2760_v53 = vpop.f32.mrf.mxu1 }
 0x346   : > { %5405 = vtanh.f32 %v3054_v7  ;;  %v7125_v60 = vadd.f32 %v7118_v6, %v2760_v53  ;;  %v3242_v0 = vadd.f32 0.5, %v3178_v8  ;;  %v3356_v31 = vpop.permute.xlu0 %3355 }
 0x347   : > { %v5392_v38 = vpop.eup %5391  ;;  %v2762_v45 = vpop.f32.mrf.mxu1  ;;  %4941 = vmatprep.mubr.msk.bf16.mxu0 %vm940_vm0, %v3589_v22 }
 0x348   : > { %v3055_v3 = vmul.f32 0.5, %v7125_v60  ;;  %3413 = vrot.lane.b32.xlu1 %v3242_v0, %s6074_s16  ;;  %v3179_v37 = vmul.f32 0.5, %v5392_v38  ;;  %v5394_v33 = vpop.eup %5393 }
 0x349   : > { %v2763_v43 = vpop.f32.mrf.mxu1  ;;  %v5396_v13 = vpop.eup %5395  ;;  %v3533_v7 = vmul.f32 %v5394_v33, %v3356_v31 }
 0x34a   : > { %5407 = vtanh.f32 %v3055_v3  ;;  %v7131_v2 = vadd.f32 %v7118_v6, %v2763_v43  ;;  %v3358_v24 = vpop.permute.xlu1 %3357  ;;  %v3243_v46 = vadd.f32 0.5, %v3179_v37 }
 0x34b   : > { %v5398_v57 = vpop.eup %5397  ;;  %v3534_v8 = vmul.f32 %v5396_v13, %v3358_v24  ;;  %v2765_v53 = vpop.f32.mrf.mxu1  ;;  %5409 = vtanh.f32 %v6939_v32 }
 0x34c   : > { %v3056_v22 = vmul.f32 0.5, %v7131_v2  ;;  %3415 = vrot.lane.b32.xlu0 %v3243_v46, %s6074_s16  ;;  %v3180_v0 = vmul.f32 0.5, %v5398_v57  ;;  %5411 = vtanh.f32 %v6944_v12 }
 0x34d   : > { %v3590_v38 = vpack.c.bf16 %v3534_v8, %v3533_v7  ;;  %v2768_v45 = vpop.f32.mrf.mxu1 }
 0x34e   : > { %5413 = vtanh.f32 %v3056_v22  ;;  %v7138_v3 = vadd.f32 %v7118_v6, %v2768_v45  ;;  %v3244_v37 = vadd.f32 0.5, %v3180_v0  ;;  %v3360_v33 = vpop.permute.xlu0 %3359 }
 0x34f   : > { %v5400_v43 = vpop.eup %5399  ;;  %v2770_v31 = vpop.f32.mrf.mxu1  ;;  %4942 = vmatmul.mubr.msk.bf16.gmra.mxu0 %vm940_vm0, %v3590_v38 }
 0x350   : > { %v3057_v32 = vmul.f32 0.5, %v7138_v3  ;;  %3417 = vrot.lane.b32.xlu1 %v3244_v37, %s6074_s16  ;;  %v3181_v13 = vmul.f32 0.5, %v5400_v43  ;;  %v5402_v24 = vpop.eup %5401 }
 0x351   : > { %v2771_v46 = vpop.f32.mrf.mxu1  ;;  %v5404_v12 = vpop.eup %5403  ;;  %v3535_v22 = vmul.f32 %v5402_v24, %v3360_v33 }
 0x352   : > { %5415 = vtanh.f32 %v3057_v32  ;;  %v7144_v57 = vadd.f32 %v7118_v6, %v2771_v46  ;;  %v3362_v7 = vpop.permute.xlu1 %3361  ;;  %v3245_v8 = vadd.f32 0.5, %v3181_v13 }
 0x353   : > { %v5406_v53 = vpop.eup %5405  ;;  %v3536_v0 = vmul.f32 %v5404_v12, %v3362_v7  ;;  %v2773_v45 = vpop.f32.mrf.mxu1  ;;  %5417 = vtanh.f32 %v6949_v62 }
 0x354   : > { %v3058_v38 = vmul.f32 0.5, %v7144_v57  ;;  %3419 = vrot.lane.b32.xlu0 %v3245_v8, %s6074_s16  ;;  %v3182_v37 = vmul.f32 0.5, %v5406_v53  ;;  %5419 = vtanh.f32 %v6954_v28 }
 0x355   : > { %v3591_v43 = vpack.c.bf16 %v3536_v0, %v3535_v22  ;;  %v2776_v31 = vpop.f32.mrf.mxu1 }
 0x356   : > { %5421 = vtanh.f32 %v3058_v38  ;;  %v7151_v32 = vadd.f32 %v7118_v6, %v2776_v31  ;;  %v3246_v13 = vadd.f32 0.5, %v3182_v37  ;;  %v3364_v24 = vpop.permute.xlu0 %3363 }
 0x357   : > { %v5408_v46 = vpop.eup %5407  ;;  %v2778_v33 = vpop.f32.mrf.mxu1  ;;  %4945 = vmatprep.mubr.msk.bf16.mxu0 %vm940_vm0, %v3591_v43 }
 0x358   : > { %v3059_v62 = vmul.f32 0.5, %v7151_v32  ;;  %3421 = vrot.lane.b32.xlu1 %v3246_v13, %s6074_s16  ;;  %v3183_v12 = vmul.f32 0.5, %v5408_v46  ;;  %v5410_v7 = vpop.eup %5409 }
 0x359   : > { %v2779_v8 = vpop.f32.mrf.mxu1  ;;  %v5412_v28 = vpop.eup %5411  ;;  %v3537_v38 = vmul.f32 %v5410_v7, %v3364_v24 }
 0x35a   : > { %5423 = vtanh.f32 %v3059_v62  ;;  %v7157_v53 = vadd.f32 %v7118_v6, %v2779_v8  ;;  %v3366_v22 = vpop.permute.xlu1 %3365  ;;  %v3247_v0 = vadd.f32 0.5, %v3183_v12 }
 0x35b   : > { %v5414_v45 = vpop.eup %5413  ;;  %v3538_v37 = vmul.f32 %v5412_v28, %v3366_v22  ;;  %v2781_v31 = vpop.f32.mrf.mxu1  ;;  %5425 = vtanh.f32 %v6959_v17 }
 0x35c   : > { %v3060_v43 = vmul.f32 0.5, %v7157_v53  ;;  %3423 = vrot.lane.b32.xlu0 %v3247_v0, %s6074_s16  ;;  %v3184_v13 = vmul.f32 0.5, %v5414_v45  ;;  %5427 = vtanh.f32 %v6964_v56 }
 0x35d   : > { %v3592_v46 = vpack.c.bf16 %v3538_v37, %v3537_v38  ;;  %v2784_v33 = vpop.f32.mrf.mxu1 }
 0x35e   : > { %5429 = vtanh.f32 %v3060_v43  ;;  %v7164_v62 = vadd.f32 %v7118_v6, %v2784_v33  ;;  %v3248_v12 = vadd.f32 0.5, %v3184_v13  ;;  %v3368_v7 = vpop.permute.xlu0 %3367  ;;  %v7173_v33 = vld [vmem:[%s6418_s25 + $0x7] ss:$0 sm:$0xff] }
 0x35f   : > { %v5416_v8 = vpop.eup %5415  ;;  %v2786_v24 = vpop.f32.mrf.mxu1  ;;  %4946 = vmatmul.mubr.msk.bf16.gmra.mxu0 %vm940_vm0, %v3592_v46 }
 0x360   : > { %v3061_v17 = vmul.f32 0.5, %v7164_v62  ;;  %3425 = vrot.lane.b32.xlu1 %v3248_v12, %s6074_s16  ;;  %v3185_v28 = vmul.f32 0.5, %v5416_v8  ;;  %v5418_v22 = vpop.eup %5417 }
 0x361   : > { %v2787_v56 = vpop.f32.mrf.mxu1  ;;  %v5420_v0 = vpop.eup %5419  ;;  %v3539_v43 = vmul.f32 %v5418_v22, %v3368_v7 }
 0x362   : > { %5431 = vtanh.f32 %v3061_v17  ;;  %v7170_v45 = vadd.f32 %v7118_v6, %v2787_v56  ;;  %v3370_v38 = vpop.permute.xlu1 %3369  ;;  %v3249_v37 = vadd.f32 0.5, %v3185_v28 }
 0x363   : > { %v5422_v31 = vpop.eup %5421  ;;  %v3540_v13 = vmul.f32 %v5420_v0, %v3370_v38  ;;  %v2789_v46 = vpop.f32.mrf.mxu1  ;;  %5433 = vtanh.f32 %v6972_v48 }
 0x364   : > { %v3062_v12 = vmul.f32 0.5, %v7170_v45  ;;  %3427 = vrot.lane.b32.xlu0 %v3249_v37, %s6074_s16  ;;  %v3186_v8 = vmul.f32 0.5, %v5422_v31  ;;  %5435 = vtanh.f32 %v6977_v1 }
 0x365   : > { %v3593_v24 = vpack.c.bf16 %v3540_v13, %v3539_v43  ;;  %v2792_v6 = vpop.f32.mrf.mxu1 }
 0x366   : > { %5437 = vtanh.f32 %v3062_v12  ;;  %v7180_v17 = vadd.f32 %v7173_v33, %v2792_v6  ;;  %v3250_v7 = vadd.f32 0.5, %v3186_v8  ;;  %v3372_v56 = vpop.permute.xlu0 %3371 }
 0x367   : > { %v5424_v28 = vpop.eup %5423  ;;  %v2794_v22 = vpop.f32.mrf.mxu1  ;;  %4949 = vmatprep.mubr.msk.bf16.mxu0 %vm940_vm0, %v3593_v24 }
 0x368   : > { %v3063_v48 = vmul.f32 0.5, %v7180_v17  ;;  %3429 = vrot.lane.b32.xlu1 %v3250_v7, %s6074_s16  ;;  %v3187_v0 = vmul.f32 0.5, %v5424_v28  ;;  %v5426_v38 = vpop.eup %5425 }
 0x369   : > { %v2795_v37 = vpop.f32.mrf.mxu1  ;;  %v5428_v1 = vpop.eup %5427  ;;  %v3541_v12 = vmul.f32 %v5426_v38, %v3372_v56 }
 0x36a   : > { %5439 = vtanh.f32 %v3063_v48  ;;  %v7186_v31 = vadd.f32 %v7173_v33, %v2795_v37  ;;  %v3374_v43 = vpop.permute.xlu1 %3373  ;;  %v3251_v13 = vadd.f32 0.5, %v3187_v0 }
 0x36b   : > { %v5430_v46 = vpop.eup %5429  ;;  %v3542_v8 = vmul.f32 %v5428_v1, %v3374_v43  ;;  %v2797_v6 = vpop.f32.mrf.mxu1  ;;  %5441 = vtanh.f32 %v6982_v25 }
 0x36c   : > { %v3064_v24 = vmul.f32 0.5, %v7186_v31  ;;  %3431 = vrot.lane.b32.xlu0 %v3251_v13, %s6074_s16  ;;  %v3188_v7 = vmul.f32 0.5, %v5430_v46  ;;  %5443 = vtanh.f32 %v6987_v14 }
 0x36d   : > { %v3594_v28 = vpack.c.bf16 %v3542_v8, %v3541_v12  ;;  %v2800_v22 = vpop.f32.mrf.mxu1 }
 0x36e   : > { %5445 = vtanh.f32 %v3064_v24  ;;  %v7193_v48 = vadd.f32 %v7173_v33, %v2800_v22  ;;  %v3252_v0 = vadd.f32 0.5, %v3188_v7  ;;  %v3376_v38 = vpop.permute.xlu0 %3375 }
 0x36f   : > { %v5432_v37 = vpop.eup %5431  ;;  %v2802_v56 = vpop.f32.mrf.mxu1  ;;  %4950 = vmatmul.mubr.msk.bf16.gmra.mxu0 %vm940_vm0, %v3594_v28 }
 0x370   : > { %v3065_v25 = vmul.f32 0.5, %v7193_v48  ;;  %3433 = vrot.lane.b32.xlu1 %v3252_v0, %s6074_s16  ;;  %v3189_v1 = vmul.f32 0.5, %v5432_v37  ;;  %v5434_v43 = vpop.eup %5433  ;;  %v7205_v37 = vld [vmem:[%s6416_s1] ss:$0 sm:$0xff] }
 0x371   : > { %v2803_v14 = vpop.f32.mrf.mxu1  ;;  %v5436_v13 = vpop.eup %5435  ;;  %v3543_v24 = vmul.f32 %v5434_v43, %v3376_v38 }
 0x372   : > { %5447 = vtanh.f32 %v3065_v25  ;;  %v7199_v46 = vadd.f32 %v7173_v33, %v2803_v14  ;;  %v3378_v12 = vpop.permute.xlu1 %3377  ;;  %v3253_v8 = vadd.f32 0.5, %v3189_v1 }
 0x373   : > { %v5438_v6 = vpop.eup %5437  ;;  %v3544_v7 = vmul.f32 %v5436_v13, %v3378_v12  ;;  %v2805_v28 = vpop.f32.mrf.mxu1  ;;  %5449 = vtanh.f32 %v6992_v9  ;;  %v7214_v9 = vadd.f32 %v7205_v37, %v6566_v26 }
 0x374   : > { %v3066_v22 = vmul.f32 0.5, %v7199_v46  ;;  %3435 = vrot.lane.b32.xlu0 %v3253_v8, %s6074_s16  ;;  %v3190_v0 = vmul.f32 0.5, %v5438_v6  ;;  %5451 = vtanh.f32 %v6997_v61  ;;  %v7220_v6 = vadd.f32 %v7205_v37, %v6570_v30 }
 0x375   : > { %v3595_v56 = vpack.c.bf16 %v3544_v7, %v3543_v24  ;;  %v2808_v25 = vpop.f32.mrf.mxu1  ;;  %8483 = vst [vmem:[#allocation74_spill] sm:$0xff] %v7214_v9 }
 0x376   : > { %5453 = vtanh.f32 %v3066_v22  ;;  %v7209_v1 = vadd.f32 %v7173_v33, %v2808_v25  ;;  %v3254_v38 = vadd.f32 0.5, %v3190_v0  ;;  %v3380_v12 = vpop.permute.xlu0 %3379  ;;  %8484 = vst [vmem:[#allocation75_spill] sm:$0xff] %v7220_v6 }
 0x377   : > { %v5440_v43 = vpop.eup %5439  ;;  %v2810_v14 = vpop.f32.mrf.mxu1  ;;  %4953 = vmatprep.mubr.msk.bf16.mxu0 %vm940_vm0, %v3595_v56  ;;  %v7227_v56 = vadd.f32 %v7205_v37, %v6577_v36 }
 0x378   : > { %8482 = vst [vmem:[#allocation73_spill] sm:$0xff] %v7209_v1  ;;  %v3067_v13 = vmul.f32 0.5, %v7209_v1  ;;  %3437 = vrot.lane.b32.xlu1 %v3254_v38, %s6074_s16  ;;  %v3191_v61 = vmul.f32 0.5, %v5440_v43  ;;  %v5442_v8 = vpop.eup %5441  ;;  %v1510_v14 = vmul.f32 0.5, %v7214_v9 }
 0x379   : > { %v2811_v24 = vpop.f32.mrf.mxu1  ;;  %v5444_v7 = vpop.eup %5443  ;;  %8485 = vst [vmem:[#allocation76_spill] sm:$0xff] %v7227_v56  ;;  %v3545_v25 = vmul.f32 %v5442_v8, %v3380_v12 }
 0x37a   : > { %5455 = vtanh.f32 %v3067_v13  ;;  %v7223_v28 = vadd.f32 %v7173_v33, %v2811_v24  ;;  %v3382_v22 = vpop.permute.xlu1 %3381  ;;  %v3255_v26 = vadd.f32 0.5, %v3191_v61  ;;  %v1511_v24 = vmul.f32 0.5, %v7220_v6 }
 0x37b   : > { %v5446_v0 = vpop.eup %5445  ;;  %v3546_v38 = vmul.f32 %v5444_v7, %v3382_v22  ;;  %v2813_v43 = vpop.f32.mrf.mxu1  ;;  %5457 = vtanh.f32 %v7002_v51  ;;  %v1512_v7 = vmul.f32 0.5, %v7227_v56  ;;  %v7242_v22 = vadd.f32 %v7205_v37, %v6584_v41 }
 0x37c   : > { %v3068_v30 = vmul.f32 0.5, %v7223_v28  ;;  %3439 = vrot.lane.b32.xlu0 %v3255_v26, %s6074_s16  ;;  %v3192_v13 = vmul.f32 0.5, %v5446_v0  ;;  %5459 = vtanh.f32 %v7007_v34 }
 0x37d   : > { %v3596_v61 = vpack.c.bf16 %v3546_v38, %v3545_v25  ;;  %v2816_v1 = vpop.f32.mrf.mxu1  ;;  %8486 = vst [vmem:[#allocation77_spill] sm:$0xff] %v7242_v22  ;;  %v7248_v25 = vadd.f32 %v7205_v37, %v6591_v47 }
 0x37e   : > { %5461 = vtanh.f32 %v3068_v30  ;;  %v7236_v36 = vadd.f32 %v7173_v33, %v2816_v1  ;;  %v3256_v12 = vadd.f32 0.5, %v3192_v13  ;;  %v3384_v26 = vpop.permute.xlu0 %3383 }
 0x37f   : > { %v5448_v8 = vpop.eup %5447  ;;  %v2818_v51 = vpop.f32.mrf.mxu1  ;;  %4954 = vmatmul.mubr.msk.bf16.gmra.mxu0 %vm940_vm0, %v3596_v61  ;;  %5463 = vtanh.f32 %v1510_v14  ;;  %8487 = vst [vmem:[#allocation78_spill] sm:$0xff] %v7248_v25  ;;  %v7252_v14 = vadd.f32 %v7205_v37, %v6598_v52  ;;  %v8560_v6 = vld [vmem:[#allocation73_spill] sm:$0xff] }
 0x380   : > { %v3069_v34 = vmul.f32 0.5, %v7236_v36  ;;  %3441 = vrot.lane.b32.xlu1 %v3256_v12, %s6074_s16  ;;  %v3193_v0 = vmul.f32 0.5, %v5448_v8  ;;  %v5450_v1 = vpop.eup %5449  ;;  %5465 = vtanh.f32 %v1511_v24  ;;  %v7259_v24 = vadd.f32 %v7205_v37, %v6605_v58 }
 0x381   : > { %v2819_v38 = vpop.f32.mrf.mxu1  ;;  %v5452_v43 = vpop.eup %5451  ;;  %8488 = vst [vmem:[#allocation79_spill] sm:$0xff] %v7252_v14  ;;  %v3547_v47 = vmul.f32 %v5450_v1, %v3384_v26  ;;  %v1513_v51 = vmul.f32 0.5, %v7242_v22  ;;  %v1515_v58 = vmul.f32 0.5, %v7252_v14  ;;  %v8563_v22 = vld [vmem:[#allocation40_spill] sm:$0xff] }
 0x382   : > { %5467 = vtanh.f32 %v3069_v34  ;;  %v7255_v41 = vadd.f32 %v7173_v33, %v2819_v38  ;;  %v3386_v30 = vpop.permute.xlu1 %3385  ;;  %v3257_v13 = vadd.f32 0.5, %v3193_v0  ;;  %8489 = vst [vmem:[#allocation80_spill] sm:$0xff] %v7259_v24  ;;  %v1514_v34 = vmul.f32 0.5, %v7248_v25  ;;  %v7269_v0 = vld [vmem:[%s6416_s1 + $0x1] ss:$0 sm:$0xff] }
 0x383   : > { %v5454_v61 = vpop.eup %5453  ;;  %5469 = vtanh.f32 %v1512_v7  ;;  %v3548_v12 = vmul.f32 %v5452_v43, %v3386_v30  ;;  %v2821_v8 = vpop.f32.mrf.mxu1  ;;  %v1516_v38 = vmul.f32 0.5, %v7259_v24 }
 0x384   : > { %5471 = vtanh.f32 %v7017_v18  ;;  %v3070_v52 = vmul.f32 0.5, %v7255_v41  ;;  %3443 = vrot.lane.b32.xlu0 %v3257_v13, %s6074_s16  ;;  %v3194_v33 = vmul.f32 0.5, %v5454_v61  ;;  %v7275_v18 = vadd.f32 %v7205_v37, %v6612_v63 }
 0x385   : > { %5473 = vtanh.f32 %v7022_v40  ;;  %v3597_v7 = vpack.c.bf16 %v3548_v12, %v3547_v47  ;;  %v7280_v13 = vadd.f32 %v7269_v0, %v6619_v5  ;;  %v7284_v47 = vadd.f32 %v7269_v0, %v6626_v10 }
 0x386   : > { %5475 = vtanh.f32 %v3070_v52  ;;  %v3258_v26 = vadd.f32 0.5, %v3194_v33  ;;  %8490 = vst [vmem:[#allocation81_spill] sm:$0xff] %v7275_v18  ;;  %v3388_v43 = vpop.permute.xlu0 %3387  ;;  %v7288_v37 = vadd.f32 %v7269_v0, %v6633_v16  ;;  %v1517_v33 = vmul.f32 0.5, %v7275_v18 }
 0x387   : > { %v5456_v1 = vpop.eup %5455  ;;  %4957 = vmatprep.mubr.msk.bf16.mxu0 %vm940_vm0, %v3597_v7  ;;  %5477 = vtanh.f32 %v1513_v51  ;;  %8491 = vst [vmem:[#allocation82_spill] sm:$0xff] %v7280_v13  ;;  %8492 = vst [vmem:[#allocation83_spill] sm:$0xff] %v7284_v47  ;;  %v1518_v10 = vmul.f32 0.5, %v7280_v13 }
 0x388   : > { %3445 = vrot.lane.b32.xlu1 %v3258_v26, %s6074_s16  ;;  %v3195_v40 = vmul.f32 0.5, %v5456_v1  ;;  %v5458_v30 = vpop.eup %5457  ;;  %5479 = vtanh.f32 %v1514_v34  ;;  %8493 = vst [vmem:[#allocation84_spill] sm:$0xff] %v7288_v37  ;;  %v1519_v26 = vmul.f32 0.5, %v7284_v47  ;;  %v8548_v47 = vld [vmem:[#allocation26_spill] sm:$0xff] }
 0x389   : > { %v5460_v61 = vpop.eup %5459  ;;  %5481 = vtanh.f32 %v1515_v58  ;;  %v3549_v51 = vmul.f32 %v5458_v30, %v3388_v43 }
 0x38a   : > { %v3390_v12 = vpop.permute.xlu1 %3389  ;;  %v3259_v8 = vadd.f32 0.5, %v3195_v40  ;;  %5483 = vtanh.f32 %v1516_v38  ;;  %v1520_v38 = vmul.f32 0.5, %v7288_v37 }
 0x38b   : > { %v5462_v63 = vpop.eup %5461  ;;  %v3550_v52 = vmul.f32 %v5460_v61, %v3390_v12  ;;  %5485 = vtanh.f32 %v7029_v44  ;;  %v7300_v44 = vadd.f32 %v7269_v0, %v6640_v21  ;;  %v7305_v61 = vadd.f32 %v7269_v0, %v6647_v29 }
 0x38c   : > { %3447 = vrot.lane.b32.xlu0 %v3259_v8, %s6074_s16  ;;  %v3196_v5 = vmul.f32 0.5, %v5462_v63  ;;  %v5464_v34 = vpop.eup %5463  ;;  %5487 = vtanh.f32 %v7034_v59  ;;  %v7309_v8 = vadd.f32 %v7269_v0, %v6654_v39 }
 0x38d   : > { %v3598_v7 = vpack.c.bf16 %v3550_v52, %v3549_v51  ;;  %v5466_v58 = vpop.eup %5465  ;;  %5489 = vtanh.f32 %v1517_v33  ;;  %8494 = vst [vmem:[#allocation85_spill] sm:$0xff] %v7300_v44  ;;  %8495 = vst [vmem:[#allocation86_spill] sm:$0xff] %v7305_v61  ;;  %v1638_v21 = vmul.f32 0.5, %v5464_v34  ;;  %v7313_v33 = vadd.f32 %v7269_v0, %v6661_v50 }
 0x38e   : > { %v3260_v16 = vadd.f32 0.5, %v3196_v5  ;;  %v3392_v40 = vpop.permute.xlu0 %3391  ;;  %5491 = vtanh.f32 %v1518_v10  ;;  %8496 = vst [vmem:[#allocation87_spill] sm:$0xff] %v7309_v8  ;;  %v1521_v29 = vmul.f32 0.5, %v7300_v44  ;;  %v1522_v34 = vmul.f32 0.5, %v7305_v61 }
 0x38f   : > { %v5468_v1 = vpop.eup %5467  ;;  %4958 = vmatmul.mubr.msk.bf16.gmra.mxu0 %vm940_vm0, %v3598_v7  ;;  %5493 = vtanh.f32 %v1519_v26  ;;  %8497 = vst [vmem:[#allocation88_spill] sm:$0xff] %v7313_v33  ;;  %v1639_v7 = vmul.f32 0.5, %v5466_v58  ;;  %v1523_v50 = vmul.f32 0.5, %v7309_v8 }
 0x390   : > { %v5470_v43 = vpop.eup %5469  ;;  %3449 = vrot.lane.b32.xlu1 %v3260_v16, %s6074_s16  ;;  %v3197_v59 = vmul.f32 0.5, %v5468_v1  ;;  %5495 = vtanh.f32 %v1520_v38 }
 0x391   : > { %v5472_v30 = vpop.eup %5471  ;;  %5497 = vtanh.f32 %v7041_v19  ;;  %v1640_v1 = vmul.f32 0.5, %v5470_v43  ;;  %v1524_v19 = vmul.f32 0.5, %v7313_v33 }
 0x392   : > { %v5474_v12 = vpop.eup %5473  ;;  %v3394_v63 = vpop.permute.xlu1 %3393  ;;  %v3261_v51 = vadd.f32 0.5, %v3197_v59  ;;  %v3551_v5 = vmul.f32 %v5472_v30, %v3392_v40  ;;  %5499 = vtanh.f32 %v7047_v4  ;;  %v7322_v40 = vld [vmem:[%s6416_s1 + $0x2] ss:$0 sm:$0xff]  ;;  %v1702_v59 = vadd.f32 0.5, %v1638_v21 }
 0x393   : > { %v5476_v52 = vpop.eup %5475  ;;  %v3552_v10 = vmul.f32 %v5474_v12, %v3394_v63  ;;  %5501 = vtanh.f32 %v1521_v29  ;;  %v8498_v63 = vld [vmem:[#allocation39_spill] sm:$0xff]  ;;  %v8500_v21 = vld [vmem:[#allocation41_spill] sm:$0xff]  ;;  %v8502_v29 = vld [vmem:[#allocation42_spill] sm:$0xff] }
 0x394   : > { %3451 = vrot.lane.b32.xlu0 %v3261_v51, %s6074_s16  ;;  %v3198_v39 = vmul.f32 0.5, %v5476_v52  ;;  %v5478_v26 = vpop.eup %5477  ;;  %v7328_v51 = vadd.f32 %v7269_v0, %v8498_v63  ;;  %5503 = vtanh.f32 %v1522_v34  ;;  %v7334_v52 = vadd.f32 %v7322_v40, %v8500_v21 }
 0x395   : > { %v3599_v16 = vpack.c.bf16 %v3552_v10, %v3551_v5  ;;  %v5480_v38 = vpop.eup %5479  ;;  %v1704_v5 = vadd.f32 0.5, %v1640_v1  ;;  %v1703_v10 = vadd.f32 0.5, %v1639_v7  ;;  %5505 = vtanh.f32 %v1523_v50 }
 0x396   : > { %v3262_v30 = vadd.f32 0.5, %v3198_v39  ;;  %v5482_v12 = vpop.eup %5481  ;;  %8499 = vst [vmem:[#allocation39_spill] sm:$0xff] %v7328_v51  ;;  %v3396_v4 = vpop.permute.xlu0 %3395  ;;  %8501 = vst [vmem:[#allocation41_spill] sm:$0xff] %v7334_v52  ;;  %v1642_v63 = vmul.f32 0.5, %v5480_v38  ;;  %v1641_v8 = vmul.f32 0.5, %v5478_v26  ;;  %5507 = vtanh.f32 %v1524_v19 }
 0x397   : > { %4961 = vmatprep.mubr.msk.bf16.mxu0 %vm940_vm0, %v3599_v16  ;;  %v5484_v58 = vpop.eup %5483  ;;  %v7338_v16 = vadd.f32 %v7322_v40, %v8502_v29  ;;  %v1525_v21 = vmul.f32 0.5, %v7328_v51  ;;  %5509 = vtanh.f32 %v7054_v23  ;;  %v1643_v7 = vmul.f32 0.5, %v5482_v12  ;;  %v8506_v12 = vld [vmem:[#allocation44_spill] sm:$0xff] }
 0x398   : > { %1830 = vrot.lane.b32.xlu0 %v1702_v59, %s6074_s16  ;;  %3453 = vrot.lane.b32.xlu1 %v3262_v30, %s6074_s16  ;;  %v5486_v43 = vpop.eup %5485  ;;  %v8504_v59 = vld [vmem:[#allocation43_spill] sm:$0xff]  ;;  %v1526_v38 = vmul.f32 0.5, %v7334_v52  ;;  %5511 = vtanh.f32 %v7060_v54  ;;  %v1644_v50 = vmul.f32 0.5, %v5484_v58 }
 0x399   : > { %v5488_v39 = vpop.eup %5487  ;;  %8503 = vst [vmem:[#allocation42_spill] sm:$0xff] %v7338_v16  ;;  %v7342_v30 = vadd.f32 %v7322_v40, %v8504_v59  ;;  %v3553_v34 = vmul.f32 %v5486_v43, %v3396_v4  ;;  %v1527_v4 = vmul.f32 0.5, %v7338_v16  ;;  %v1706_v43 = vadd.f32 0.5, %v1642_v63 }
 0x39a   : > { %v3398_v0 = vpop.permute.xlu1 %3397  ;;  %v5490_v1 = vpop.eup %5489  ;;  %5513 = vtanh.f32 %v1525_v21  ;;  %v1708_v58 = vadd.f32 0.5, %v1644_v50  ;;  %v1707_v63 = vadd.f32 0.5, %v1643_v7 }
 0x39b   : > { %8505 = vst [vmem:[#allocation43_spill] sm:$0xff] %v7342_v30  ;;  %v3554_v61 = vmul.f32 %v5488_v39, %v3398_v0  ;;  %v5492_v19 = vpop.eup %5491  ;;  %v1705_v39 = vadd.f32 0.5, %v1641_v8  ;;  %v1528_v23 = vmul.f32 0.5, %v7342_v30  ;;  %5515 = vtanh.f32 %v1526_v38  ;;  %v8547_v30 = vld [vmem:[#allocation72_spill] sm:$0xff] }
 0x39c   : > { %1834 = vrot.lane.b32.xlu0 %v1704_v5, %s6074_s16  ;;  %1832 = vrot.lane.b32.xlu1 %v1703_v10, %s6074_s16  ;;  %v5494_v29 = vpop.eup %5493  ;;  %v7355_v10 = vadd.f32 %v7322_v40, %v8506_v12  ;;  %5517 = vtanh.f32 %v1527_v4  ;;  %v1646_v12 = vmul.f32 0.5, %v5492_v19  ;;  %v1645_v16 = vmul.f32 0.5, %v5490_v1 }
 0x39d   : > { %v3600_v26 = vpack.c.bf16 %v3554_v61, %v3553_v34  ;;  %v5496_v5 = vpop.eup %5495  ;;  %v8508_v61 = vld [vmem:[#allocation45_spill] sm:$0xff]  ;;  %v8510_v34 = vld [vmem:[#allocation46_spill] sm:$0xff]  ;;  %5519 = vtanh.f32 %v1528_v23  ;;  %v1647_v7 = vmul.f32 0.5, %v5494_v29 }
 0x39e   : > { %8507 = vst [vmem:[#allocation44_spill] sm:$0xff] %v7355_v10  ;;  %v3400_v0 = vpop.permute.xlu0 %3399  ;;  %v5498_v54 = vpop.eup %5497  ;;  %v7361_v8 = vadd.f32 %v7322_v40, %v8508_v61  ;;  %v7365_v21 = vadd.f32 %v7322_v40, %v8510_v34  ;;  %v1529_v50 = vmul.f32 0.5, %v7355_v10  ;;  %5521 = vtanh.f32 %v7070_v42 }
 0x39f   : > { %4962 = vmatmul.mubr.msk.bf16.gmra.mxu0 %vm940_vm0, %v3600_v26  ;;  %v5500_v59 = vpop.eup %5499  ;;  %5523 = vtanh.f32 %v7076_v35  ;;  %v1648_v23 = vmul.f32 0.5, %v5496_v5 }
 0x3a0   : > { %1838 = vrot.lane.b32.xlu0 %v1706_v43, %s6074_s16  ;;  %1836 = vrot.lane.b32.xlu1 %v1705_v39, %s6074_s16  ;;  %8509 = vst [vmem:[#allocation45_spill] sm:$0xff] %v7361_v8  ;;  %8511 = vst [vmem:[#allocation46_spill] sm:$0xff] %v7365_v21  ;;  %v8512_v43 = vld [vmem:[#allocation47_spill] sm:$0xff]  ;;  %v3555_v39 = vmul.f32 %v5498_v54, %v3400_v0  ;;  %v5502_v4 = vpop.eup %5501  ;;  %v1530_v1 = vmul.f32 0.5, %v7361_v8  ;;  %v1531_v0 = vmul.f32 0.5, %v7365_v21  ;;  %5525 = vtanh.f32 %v1529_v50  ;;  %v8518_v50 = vld [vmem:[#allocation50_spill] sm:$0xff] }
 0x3a1   : > { %v7369_v38 = vadd.f32 %v7322_v40, %v8512_v43  ;;  %v5504_v34 = vpop.eup %5503  ;;  %v7379_v54 = vld [vmem:[%s6416_s1 + $0x3] ss:$0 sm:$0xff]  ;;  %v1649_v8 = vmul.f32 0.5, %v5502_v4 }
 0x3a2   : > { %v3402_v26 = vpop.permute.xlu1 %3401  ;;  %v5506_v42 = vpop.eup %5505  ;;  %5527 = vtanh.f32 %v1530_v1  ;;  %v7395_v21 = vadd.f32 %v7379_v54, %v8518_v50 }
 0x3a3   : > { %8513 = vst [vmem:[#allocation47_spill] sm:$0xff] %v7369_v38  ;;  %v3556_v61 = vmul.f32 %v5500_v59, %v3402_v26  ;;  %v1710_v59 = vadd.f32 0.5, %v1646_v12  ;;  %v1709_v26 = vadd.f32 0.5, %v1645_v16  ;;  %v5508_v29 = vpop.eup %5507  ;;  %v8516_v12 = vld [vmem:[#allocation49_spill] sm:$0xff]  ;;  %5529 = vtanh.f32 %v1531_v0 }
 0x3a4   : > { %1842 = vrot.lane.b32.xlu0 %v1708_v58, %s6074_s16  ;;  %1840 = vrot.lane.b32.xlu1 %v1707_v63, %s6074_s16  ;;  %v1532_v58 = vmul.f32 0.5, %v7369_v38  ;;  %v8514_v63 = vld [vmem:[#allocation48_spill] sm:$0xff]  ;;  %v5510_v5 = vpop.eup %5509  ;;  %v7391_v16 = vadd.f32 %v7379_v54, %v8516_v12  ;;  %8519 = vst [vmem:[#allocation50_spill] sm:$0xff] %v7395_v21  ;;  %v1652_v0 = vmul.f32 0.5, %v5508_v29 }
 0x3a5   : > { %v3601_v19 = vpack.c.bf16 %v3556_v61, %v3555_v39  ;;  %v7385_v43 = vadd.f32 %v7322_v40, %v8514_v63  ;;  %v1712_v39 = vadd.f32 0.5, %v1648_v23  ;;  %v1711_v61 = vadd.f32 0.5, %v1647_v7 }
 0x3a6   : > { %v3404_v35 = vpop.permute.xlu0 %3403  ;;  %8517 = vst [vmem:[#allocation49_spill] sm:$0xff] %v7391_v16  ;;  %v1650_v63 = vmul.f32 0.5, %v5504_v34  ;;  %5531 = vtanh.f32 %v1532_v58  ;;  %v1651_v7 = vmul.f32 0.5, %v5506_v42  ;;  %v1534_v34 = vmul.f32 0.5, %v7391_v16  ;;  %v8522_v42 = vld [vmem:[#allocation52_spill] sm:$0xff] }
 0x3a7   : > { %4965 = vmatprep.mubr.msk.bf16.mxu0 %vm940_vm0, %v3601_v19  ;;  %8515 = vst [vmem:[#allocation48_spill] sm:$0xff] %v7385_v43  ;;  %v5512_v19 = vpop.eup %5511  ;;  %v3557_v1 = vmul.f32 %v5510_v5, %v3404_v35  ;;  %v1533_v12 = vmul.f32 0.5, %v7385_v43  ;;  %5533 = vtanh.f32 %v7083_v15  ;;  %v1535_v35 = vmul.f32 0.5, %v7395_v21 }
 0x3a8   : > { %1846 = vrot.lane.b32.xlu0 %v1710_v59, %s6074_s16  ;;  %1844 = vrot.lane.b32.xlu1 %v1709_v26, %s6074_s16  ;;  %v8520_v59 = vld [vmem:[#allocation51_spill] sm:$0xff]  ;;  %v5514_v23 = vpop.eup %5513  ;;  %5535 = vtanh.f32 %v7089_v27  ;;  %v1714_v5 = vadd.f32 0.5, %v1650_v63  ;;  %v1716_v29 = vadd.f32 0.5, %v1652_v0  ;;  %v1715_v63 = vadd.f32 0.5, %v1651_v7 }
 0x3a9   : > { %v7399_v26 = vadd.f32 %v7379_v54, %v8520_v59  ;;  %v5516_v58 = vpop.eup %5515  ;;  %5537 = vtanh.f32 %v1533_v12  ;;  %v1653_v21 = vmul.f32 0.5, %v5514_v23 }
 0x3aa   : > { %v3406_v40 = vpop.permute.xlu1 %3405  ;;  %v5518_v50 = vpop.eup %5517  ;;  %5539 = vtanh.f32 %v1534_v34 }
 0x3ab   : > { %8521 = vst [vmem:[#allocation51_spill] sm:$0xff] %v7399_v26  ;;  %v3558_v38 = vmul.f32 %v5512_v19, %v3406_v40  ;;  %v1713_v19 = vadd.f32 0.5, %v1649_v8  ;;  %v1536_v15 = vmul.f32 0.5, %v7399_v26  ;;  %5541 = vtanh.f32 %v1535_v35 }
 0x3ac   : > { %1850 = vrot.lane.b32.xlu0 %v1712_v39, %s6074_s16  ;;  %1848 = vrot.lane.b32.xlu1 %v1711_v61, %s6074_s16  ;;  %v5520_v39 = vpop.eup %5519  ;;  %v7412_v61 = vadd.f32 %v7379_v54, %v8522_v42  ;;  %v1654_v42 = vmul.f32 0.5, %v5516_v58  ;;  %v1655_v7 = vmul.f32 0.5, %v5518_v50 }
 0x3ad   : > { %v3602_v4 = vpack.c.bf16 %v3558_v38, %v3557_v1  ;;  %v5522_v27 = vpop.eup %5521  ;;  %v8524_v38 = vld [vmem:[#allocation53_spill] sm:$0xff]  ;;  %v8526_v1 = vld [vmem:[#allocation54_spill] sm:$0xff]  ;;  %5543 = vtanh.f32 %v1536_v15  ;;  %v1656_v15 = vmul.f32 0.5, %v5520_v39 }
 0x3ae   : > { %8523 = vst [vmem:[#allocation52_spill] sm:$0xff] %v7412_v61  ;;  %v3408_v40 = vpop.permute.xlu0 %3407  ;;  %v7418_v8 = vadd.f32 %v7379_v54, %v8524_v38  ;;  %v5524_v59 = vpop.eup %5523  ;;  %v7422_v12 = vadd.f32 %v7379_v54, %v8526_v1  ;;  %v1537_v0 = vmul.f32 0.5, %v7412_v61  ;;  %5545 = vtanh.f32 %v7096_v55 }
 0x3af   : > { %4966 = vmatmul.mubr.msk.bf16.gmra.mxu0 %vm940_vm0, %v3602_v4  ;;  %v5526_v35 = vpop.eup %5525  ;;  %5547 = vtanh.f32 %v7102_v20 }
 0x3b0   : > { %1854 = vrot.lane.b32.xlu0 %v1714_v5, %s6074_s16  ;;  %1852 = vrot.lane.b32.xlu1 %v1713_v19, %s6074_s16  ;;  %8525 = vst [vmem:[#allocation53_spill] sm:$0xff] %v7418_v8  ;;  %8527 = vst [vmem:[#allocation54_spill] sm:$0xff] %v7422_v12  ;;  %v8528_v5 = vld [vmem:[#allocation55_spill] sm:$0xff]  ;;  %v3559_v19 = vmul.f32 %v5522_v27, %v3408_v40  ;;  %v1538_v23 = vmul.f32 0.5, %v7418_v8  ;;  %v5528_v1 = vpop.eup %5527  ;;  %v1539_v40 = vmul.f32 0.5, %v7422_v12  ;;  %5549 = vtanh.f32 %v1537_v0  ;;  %v8531_v0 = vld [vmem:[#allocation58_spill] sm:$0xff] }
 0x3b1   : > { %v7426_v34 = vadd.f32 %v7379_v54, %v8528_v5  ;;  %v7436_v27 = vld [vmem:[%s6416_s1 + $0x4] ss:$0 sm:$0xff]  ;;  %v5530_v55 = vpop.eup %5529  ;;  %v1657_v8 = vmul.f32 0.5, %v5526_v35 }
 0x3b2   : > { %v3410_v4 = vpop.permute.xlu1 %3409  ;;  %5551 = vtanh.f32 %v1538_v23  ;;  %v7452_v12 = vadd.f32 %v7436_v27, %v8531_v0 }
 0x3b3   : > { %v3560_v38 = vmul.f32 %v5524_v59, %v3410_v4  ;;  %v1718_v59 = vadd.f32 0.5, %v1654_v42  ;;  %v1717_v4 = vadd.f32 0.5, %v1653_v21  ;;  %v5532_v50 = vpop.eup %5531  ;;  %v8530_v42 = vld [vmem:[#allocation57_spill] sm:$0xff]  ;;  %5553 = vtanh.f32 %v1539_v40 }
 0x3b4   : > { %1858 = vrot.lane.b32.xlu0 %v1716_v29, %s6074_s16  ;;  %1856 = vrot.lane.b32.xlu1 %v1715_v63, %s6074_s16  ;;  %v1540_v29 = vmul.f32 0.5, %v7426_v34  ;;  %v8529_v63 = vld [vmem:[#allocation56_spill] sm:$0xff]  ;;  %v5534_v39 = vpop.eup %5533  ;;  %v7448_v21 = vadd.f32 %v7436_v27, %v8530_v42  ;;  %v1660_v40 = vmul.f32 0.5, %v5532_v50 }
 0x3b5   : > { %v3603_v58 = vpack.c.bf16 %v3560_v38, %v3559_v19  ;;  %v7442_v5 = vadd.f32 %v7379_v54, %v8529_v63  ;;  %v1720_v19 = vadd.f32 0.5, %v1656_v15  ;;  %v1719_v38 = vadd.f32 0.5, %v1655_v7 }
 0x3b6   : > { %v3412_v20 = vpop.permute.xlu0 %3411  ;;  %v1658_v63 = vmul.f32 0.5, %v5528_v1  ;;  %5555 = vtanh.f32 %v1540_v29  ;;  %v1659_v7 = vmul.f32 0.5, %v5530_v55  ;;  %v1542_v1 = vmul.f32 0.5, %v7448_v21 }
 0x3b7   : > { %4969 = vmatprep.mubr.msk.bf16.mxu0 %vm940_vm0, %v3603_v58  ;;  %v5536_v58 = vpop.eup %5535  ;;  %v3561_v23 = vmul.f32 %v5534_v39, %v3412_v20  ;;  %v1541_v42 = vmul.f32 0.5, %v7442_v5  ;;  %5557 = vtanh.f32 %v7109_v49  ;;  %v1543_v20 = vmul.f32 0.5, %v7452_v12 }
 0x3b8   : > { %1862 = vrot.lane.b32.xlu0 %v1718_v59, %s6074_s16  ;;  %1860 = vrot.lane.b32.xlu1 %v1717_v4, %s6074_s16  ;;  %v8532_v59 = vld [vmem:[#allocation59_spill] sm:$0xff]  ;;  %v5538_v15 = vpop.eup %5537  ;;  %5559 = vtanh.f32 %v7115_v11  ;;  %v1722_v39 = vadd.f32 0.5, %v1658_v63  ;;  %v8534_v63 = vld [vmem:[#allocation61_spill] sm:$0xff] }
 0x3b9   : > { %v7456_v4 = vadd.f32 %v7436_v27, %v8532_v59  ;;  %v5540_v29 = vpop.eup %5539  ;;  %5561 = vtanh.f32 %v1541_v42  ;;  %v7475_v59 = vadd.f32 %v7436_v27, %v8534_v63 }
 0x3ba   : > { %v3414_v54 = vpop.permute.xlu1 %3413  ;;  %v5542_v0 = vpop.eup %5541  ;;  %5563 = vtanh.f32 %v1542_v1  ;;  %v1662_v42 = vmul.f32 0.5, %v5540_v29 }
 0x3bb   : > { %v3562_v61 = vmul.f32 %v5536_v58, %v3414_v54  ;;  %v1721_v58 = vadd.f32 0.5, %v1657_v8  ;;  %v1544_v49 = vmul.f32 0.5, %v7456_v4  ;;  %v1723_v8 = vadd.f32 0.5, %v1659_v7 }
 0x3bc   : > { %1866 = vrot.lane.b32.xlu0 %v1720_v19, %s6074_s16  ;;  %1864 = vrot.lane.b32.xlu1 %v1719_v38, %s6074_s16  ;;  %v5544_v19 = vpop.eup %5543  ;;  %v1724_v38 = vadd.f32 0.5, %v1660_v40  ;;  %5565 = vtanh.f32 %v1543_v20  ;;  %v1663_v7 = vmul.f32 0.5, %v5542_v0  ;;  %v7493_v0 = vld [vmem:[%s6416_s1 + $0x5] ss:$0 sm:$0xff] }
 0x3bd   : > { %v3604_v35 = vpack.c.bf16 %v3562_v61, %v3561_v23  ;;  %v5546_v11 = vpop.eup %5545  ;;  %v8533_v61 = vld [vmem:[#allocation60_spill] sm:$0xff]  ;;  %5567 = vtanh.f32 %v1544_v49  ;;  %v1664_v29 = vmul.f32 0.5, %v5544_v19  ;;  %v7566_v51 = vadd.f32 %v7493_v0, %v8547_v30 }
 0x3be   : > { %v3416_v55 = vpop.permute.xlu0 %3415  ;;  %v7471_v50 = vadd.f32 %v7436_v27, %v8533_v61  ;;  %v5548_v54 = vpop.eup %5547  ;;  %5569 = vtanh.f32 %v7125_v60  ;;  %v1546_v61 = vmul.f32 0.5, %v7475_v59  ;;  %v1726_v60 = vadd.f32 0.5, %v1662_v42 }
 0x3bf   : > { %4970 = vmatmul.mubr.msk.bf16.gmra.mxu0 %vm940_vm0, %v3604_v35  ;;  %v1661_v35 = vmul.f32 0.5, %v5538_v15  ;;  %v3563_v1 = vmul.f32 %v5546_v11, %v3416_v55  ;;  %v5550_v40 = vpop.eup %5549  ;;  %5571 = vtanh.f32 %v7131_v2  ;;  %v8536_v55 = vld [vmem:[#allocation63_spill] sm:$0xff] }
 0x3c0   : > { %1870 = vrot.lane.b32.xlu0 %v1722_v39, %s6074_s16  ;;  %1868 = vrot.lane.b32.xlu1 %v1721_v58, %s6074_s16  ;;  %v8535_v39 = vld [vmem:[#allocation62_spill] sm:$0xff]  ;;  %v1545_v20 = vmul.f32 0.5, %v7471_v50  ;;  %v5552_v49 = vpop.eup %5551  ;;  %v7489_v11 = vadd.f32 %v7436_v27, %v8536_v55 }
 0x3c1   : > { %v7479_v58 = vadd.f32 %v7436_v27, %v8535_v39  ;;  %v1727_v39 = vadd.f32 0.5, %v1663_v7  ;;  %v1666_v43 = vmul.f32 0.5, %v5552_v49 }
 0x3c2   : > { %v3418_v23 = vpop.permute.xlu1 %3417  ;;  %5573 = vtanh.f32 %v1545_v20  ;;  %v1548_v55 = vmul.f32 0.5, %v7489_v11 }
 0x3c3   : > { %v3564_v16 = vmul.f32 %v5548_v54, %v3418_v23  ;;  %v1725_v54 = vadd.f32 0.5, %v1661_v35  ;;  %v8537_v23 = vld [vmem:[#allocation64_spill] sm:$0xff]  ;;  %v1728_v35 = vadd.f32 0.5, %v1664_v29  ;;  %5575 = vtanh.f32 %v1546_v61 }
 0x3c4   : > { %1874 = vrot.lane.b32.xlu0 %v1724_v38, %s6074_s16  ;;  %1872 = vrot.lane.b32.xlu1 %v1723_v8, %s6074_s16  ;;  %v5554_v38 = vpop.eup %5553  ;;  %v1547_v8 = vmul.f32 0.5, %v7479_v58  ;;  %v7500_v42 = vadd.f32 %v7436_v27, %v8537_v23 }
 0x3c5   : > { %v3605_v15 = vpack.c.bf16 %v3564_v16, %v3563_v1  ;;  %v5556_v63 = vpop.eup %5555  ;;  %v1665_v16 = vmul.f32 0.5, %v5550_v40  ;;  %v8539_v40 = vld [vmem:[#allocation66_spill] sm:$0xff]  ;;  %v1667_v29 = vmul.f32 0.5, %v5554_v38 }
 0x3c6   : > { %v3420_v2 = vpop.permute.xlu0 %3419  ;;  %v5558_v19 = vpop.eup %5557  ;;  %5577 = vtanh.f32 %v1547_v8  ;;  %v7509_v20 = vadd.f32 %v7493_v0, %v8539_v40  ;;  %v1549_v23 = vmul.f32 0.5, %v7500_v42  ;;  %v1668_v8 = vmul.f32 0.5, %v5556_v63 }
 0x3c7   : > { %4973 = vmatprep.mubr.msk.bf16.mxu0 %vm940_vm0, %v3605_v15  ;;  %v5560_v1 = vpop.eup %5559  ;;  %v8538_v15 = vld [vmem:[#allocation65_spill] sm:$0xff]  ;;  %5579 = vtanh.f32 %v7138_v3  ;;  %v1729_v7 = vadd.f32 0.5, %v1665_v16 }
 0x3c8   : > { %1878 = vrot.lane.b32.xlu0 %v1726_v60, %s6074_s16  ;;  %1876 = vrot.lane.b32.xlu1 %v1725_v54, %s6074_s16  ;;  %v7505_v26 = vadd.f32 %v7493_v0, %v8538_v15  ;;  %v3565_v54 = vmul.f32 %v5558_v19, %v3420_v2  ;;  %v5562_v61 = vpop.eup %5561  ;;  %5581 = vtanh.f32 %v7144_v57  ;;  %v8540_v19 = vld [vmem:[#allocation67_spill] sm:$0xff]  ;;  %v1551_v16 = vmul.f32 0.5, %v7509_v20 }
 0x3c9   : > { %v5564_v15 = vpop.eup %5563  ;;  %5583 = vtanh.f32 %v1548_v55  ;;  %v7519_v3 = vadd.f32 %v7493_v0, %v8540_v19  ;;  %v1669_v57 = vmul.f32 0.5, %v5562_v61  ;;  %v8541_v55 = vld [vmem:[#allocation68_spill] sm:$0xff]  ;;  %v1732_v40 = vadd.f32 0.5, %v1668_v8  ;;  %v8543_v61 = vld [vmem:[#allocation70_spill] sm:$0xff] }
 0x3ca   : > { %v3422_v60 = vpop.permute.xlu1 %3421  ;;  %v1550_v2 = vmul.f32 0.5, %v7505_v26  ;;  %5585 = vtanh.f32 %v1549_v23  ;;  %v7536_v23 = vadd.f32 %v7493_v0, %v8543_v61 }
 0x3cb   : > { %v3566_v27 = vmul.f32 %v5560_v1, %v3422_v60  ;;  %v5566_v1 = vpop.eup %5565  ;;  %v7527_v60 = vadd.f32 %v7493_v0, %v8541_v55 }
 0x3cc   : > { %1882 = vrot.lane.b32.xlu0 %v1728_v35, %s6074_s16  ;;  %1880 = vrot.lane.b32.xlu1 %v1727_v39, %s6074_s16  ;;  %v1730_v35 = vadd.f32 0.5, %v1666_v43  ;;  %v5568_v38 = vpop.eup %5567  ;;  %v1731_v43 = vadd.f32 0.5, %v1667_v29  ;;  %5587 = vtanh.f32 %v1550_v2  ;;  %v1733_v29 = vadd.f32 0.5, %v1669_v57  ;;  %v7542_v2 = vld [vmem:[%s6416_s1 + $0x6] ss:$0 sm:$0xff] }
 0x3cd   : > { %v3606_v49 = vpack.c.bf16 %v3566_v27, %v3565_v54  ;;  %v5570_v63 = vpop.eup %5569  ;;  %v1552_v27 = vmul.f32 0.5, %v7519_v3  ;;  %5589 = vtanh.f32 %v1551_v16  ;;  %v1671_v8 = vmul.f32 0.5, %v5566_v1  ;;  %v8545_v57 = vld [vmem:[#allocation24_spill] sm:$0xff] }
 0x3ce   : > { %v3424_v39 = vpop.permute.xlu0 %3423  ;;  %v5572_v54 = vpop.eup %5571  ;;  %5591 = vtanh.f32 %v7151_v32  ;;  %v1555_v1 = vmul.f32 0.5, %v7536_v23 }
 0x3cf   : > { %4974 = vmatmul.mubr.msk.bf16.gmra.mxu0 %vm940_vm0, %v3606_v49  ;;  %v8542_v49 = vld [vmem:[#allocation69_spill] sm:$0xff]  ;;  %v3567_v55 = vmul.f32 %v5570_v63, %v3424_v39  ;;  %5593 = vtanh.f32 %v7157_v53  ;;  %v5574_v61 = vpop.eup %5573  ;;  %v8544_v63 = vld [vmem:[#allocation71_spill] sm:$0xff] }
 0x3d0   : > { %1886 = vrot.lane.b32.xlu0 %v1730_v35, %s6074_s16  ;;  %1884 = vrot.lane.b32.xlu1 %v1729_v7, %s6074_s16  ;;  %v7532_v19 = vadd.f32 %v7493_v0, %v8542_v49  ;;  %v1670_v7 = vmul.f32 0.5, %v5564_v15  ;;  %v1672_v49 = vmul.f32 0.5, %v5568_v38  ;;  %v1553_v15 = vmul.f32 0.5, %v7527_v60  ;;  %v8546_v53 = vld [vmem:[#allocation25_spill] sm:$0xff] }
 0x3d1   : > { %5595 = vtanh.f32 %v1552_v27  ;;  %v7549_v32 = vadd.f32 %v7493_v0, %v8544_v63  ;;  %v1735_v63 = vadd.f32 0.5, %v1671_v8 }
 0x3d2   : > { %v3426_v35 = vpop.permute.xlu1 %3425  ;;  %v1554_v39 = vmul.f32 0.5, %v7532_v19  ;;  %5597 = vtanh.f32 %v1553_v15 }
 0x3d3   : > { %v3568_v10 = vmul.f32 %v5572_v54, %v3426_v35  ;;  %v7555_v54 = vadd.f32 %v7542_v2, %v8545_v57  ;;  %v1556_v57 = vmul.f32 0.5, %v7549_v32 }
 0x3d4   : > { %1890 = vrot.lane.b32.xlu0 %v1732_v40, %s6074_s16  ;;  %1888 = vrot.lane.b32.xlu1 %v1731_v43, %s6074_s16  ;;  %v1734_v40 = vadd.f32 0.5, %v1670_v7  ;;  %v5576_v43 = vpop.eup %5575  ;;  %v1673_v7 = vmul.f32 0.5, %v5574_v61  ;;  %5599 = vtanh.f32 %v1554_v39  ;;  %v8549_v61 = vld [vmem:[#allocation27_spill] sm:$0xff] }
 0x3d5   : > { %v3607_v16 = vpack.c.bf16 %v3568_v10, %v3567_v55  ;;  %v5578_v38 = vpop.eup %5577  ;;  %v7559_v10 = vadd.f32 %v7542_v2, %v8546_v53  ;;  %v1736_v55 = vadd.f32 0.5, %v1672_v49  ;;  %v1674_v52 = vmul.f32 0.5, %v5576_v43 }
 0x3d6   : > { %v3428_v27 = vpop.permute.xlu0 %3427  ;;  %v5580_v35 = vpop.eup %5579  ;;  %5601 = vtanh.f32 %v1555_v1  ;;  %v1558_v8 = vmul.f32 0.5, %v7555_v54  ;;  %v7576_v39 = vadd.f32 %v7542_v2, %v8549_v61  ;;  %v1675_v30 = vmul.f32 0.5, %v5578_v38 }
 0x3d7   : > { %4977 = vmatprep.mubr.msk.bf16.mxu0 %vm940_vm0, %v3607_v16  ;;  %v5582_v16 = vpop.eup %5581  ;;  %v1559_v49 = vmul.f32 0.5, %v7559_v10  ;;  %5603 = vtanh.f32 %v7164_v62  ;;  %v1737_v0 = vadd.f32 0.5, %v1673_v7  ;;  %v8551_v7 = vld [vmem:[#allocation29_spill] sm:$0xff] }
 0x3d8   : > { %1894 = vrot.lane.b32.xlu0 %v1734_v40, %s6074_s16  ;;  %1892 = vrot.lane.b32.xlu1 %v1733_v29, %s6074_s16  ;;  %v5584_v33 = vpop.eup %5583  ;;  %v7570_v40 = vadd.f32 %v7542_v2, %v8548_v47  ;;  %v3569_v29 = vmul.f32 %v5580_v35, %v3428_v27  ;;  %5605 = vtanh.f32 %v7170_v45  ;;  %v1557_v27 = vmul.f32 0.5, %v7566_v51 }
 0x3d9   : > { %v5586_v43 = vpop.eup %5585  ;;  %v1676_v1 = vmul.f32 0.5, %v5584_v33  ;;  %5607 = vtanh.f32 %v1556_v57  ;;  %v1738_v35 = vadd.f32 0.5, %v1674_v52  ;;  %v1561_v52 = vmul.f32 0.5, %v7576_v39 }
 0x3da   : > { %v3430_v53 = vpop.permute.xlu1 %3429  ;;  %5609 = vtanh.f32 %v1558_v8  ;;  %v1739_v57 = vadd.f32 0.5, %v1675_v30 }
 0x3db   : > { %v3570_v15 = vmul.f32 %v5582_v16, %v3430_v53  ;;  %v5588_v16 = vpop.eup %5587  ;;  %v1560_v53 = vmul.f32 0.5, %v7570_v40  ;;  %5611 = vtanh.f32 %v1559_v49 }
 0x3dc   : > { %1898 = vrot.lane.b32.xlu0 %v1736_v55, %s6074_s16  ;;  %1896 = vrot.lane.b32.xlu1 %v1735_v63, %s6074_s16  ;;  %v5590_v62 = vpop.eup %5589  ;;  %v8550_v55 = vld [vmem:[#allocation28_spill] sm:$0xff]  ;;  %v7594_v63 = vadd.f32 %v7542_v2, %v8551_v7  ;;  %v1678_v8 = vmul.f32 0.5, %v5588_v16  ;;  %5613 = vtanh.f32 %v1557_v27 }
 0x3dd   : > { %v3608_v47 = vpack.c.bf16 %v3570_v15, %v3569_v29  ;;  %v7587_v38 = vadd.f32 %v7542_v2, %v8550_v55  ;;  %v5592_v33 = vpop.eup %5591  ;;  %v1677_v15 = vmul.f32 0.5, %v5586_v43  ;;  %5615 = vtanh.f32 %v1560_v53  ;;  %v7607_v27 = vld [vmem:[%s6416_s1 + $0x7] ss:$0 sm:$0xff] }
 0x3de   : > { %v3432_v45 = vpop.permute.xlu0 %3431  ;;  %v5594_v29 = vpop.eup %5593  ;;  %5617 = vtanh.f32 %v7180_v17  ;;  %v1563_v30 = vmul.f32 0.5, %v7594_v63  ;;  %v1679_v16 = vmul.f32 0.5, %v5590_v62  ;;  %v8554_v62 = vld [vmem:[#allocation32_spill] sm:$0xff] }
 0x3df   : > { %4978 = vmatmul.mubr.msk.bf16.gmra.mxu0 %vm940_vm0, %v3608_v47  ;;  %v1740_v47 = vadd.f32 0.5, %v1676_v1  ;;  %v5596_v55 = vpop.eup %5595  ;;  %v3571_v49 = vmul.f32 %v5592_v33, %v3432_v45  ;;  %v1562_v13 = vmul.f32 0.5, %v7587_v38  ;;  %5619 = vtanh.f32 %v7186_v31 }
 0x3e0   : > { %1902 = vrot.lane.b32.xlu0 %v1738_v35, %s6074_s16  ;;  %1900 = vrot.lane.b32.xlu1 %v1737_v0, %s6074_s16  ;;  %v8552_v35 = vld [vmem:[#allocation30_spill] sm:$0xff]  ;;  %v5598_v1 = vpop.eup %5597  ;;  %v1680_v53 = vmul.f32 0.5, %v5596_v55  ;;  %v1742_v45 = vadd.f32 0.5, %v1678_v8  ;;  %v1741_v33 = vadd.f32 0.5, %v1677_v15  ;;  %5621 = vtanh.f32 %v1561_v52 }
 0x3e1   : > { %v7598_v0 = vadd.f32 %v7542_v2, %v8552_v35  ;;  %v5600_v7 = vpop.eup %5599  ;;  %5623 = vtanh.f32 %v1562_v13  ;;  %v7619_v52 = vadd.f32 %v7607_v27, %v8554_v62  ;;  %v1681_v8 = vmul.f32 0.5, %v5598_v1 }
 0x3e2   : > { %v3434_v61 = vpop.permute.xlu1 %3433  ;;  %5625 = vtanh.f32 %v1563_v30  ;;  %v1744_v13 = vadd.f32 0.5, %v1680_v53  ;;  %v1743_v35 = vadd.f32 0.5, %v1679_v16  ;;  %v8556_v53 = vld [vmem:[#allocation34_spill] sm:$0xff] }
 0x3e3   : > { %v3572_v44 = vmul.f32 %v5594_v29, %v3434_v61  ;;  %v1564_v17 = vmul.f32 0.5, %v7598_v0  ;;  %v5602_v29 = vpop.eup %5601  ;;  %v1566_v16 = vmul.f32 0.5, %v7619_v52 }
 0x3e4   : > { %1906 = vrot.lane.b32.xlu0 %v1740_v47, %s6074_s16  ;;  %1904 = vrot.lane.b32.xlu1 %v1739_v57, %s6074_s16  ;;  %v8553_v57 = vld [vmem:[#allocation31_spill] sm:$0xff]  ;;  %v1682_v47 = vmul.f32 0.5, %v5600_v7  ;;  %v7634_v7 = vadd.f32 %v7607_v27, %v8556_v53 }
 0x3e5   : > { %v3609_v43 = vpack.c.bf16 %v3572_v44, %v3571_v49  ;;  %v7613_v61 = vadd.f32 %v7542_v2, %v8553_v57  ;;  %v5604_v44 = vpop.eup %5603  ;;  %5627 = vtanh.f32 %v1564_v17  ;;  %v8555_v2 = vld [vmem:[#allocation33_spill] sm:$0xff] }
 0x3e6   : > { %v3436_v31 = vpop.permute.xlu0 %3435  ;;  %v5606_v15 = vpop.eup %5605  ;;  %5629 = vtanh.f32 %v7193_v48 }
 0x3e7   : > { %4981 = vmatprep.mubr.msk.bf16.mxu0 %vm940_vm0, %v3609_v43  ;;  %v5608_v49 = vpop.eup %5607  ;;  %v7623_v43 = vadd.f32 %v7607_v27, %v8555_v2  ;;  %v1565_v57 = vmul.f32 0.5, %v7613_v61  ;;  %5631 = vtanh.f32 %v7199_v46 }
 0x3e8   : > { %1910 = vrot.lane.b32.xlu0 %v1742_v45, %s6074_s16  ;;  %1908 = vrot.lane.b32.xlu1 %v1741_v33, %s6074_s16  ;;  %v7625_v45 = vpop.f32.mrf.mxu0  ;;  %v3573_v33 = vmul.f32 %v5604_v44, %v3436_v31  ;;  %v5610_v1 = vpop.eup %5609  ;;  %v1683_v44 = vmul.f32 0.5, %v5602_v29  ;;  %v1684_v62 = vmul.f32 0.5, %v5608_v49  ;;  %v1568_v29 = vmul.f32 0.5, %v7634_v7 }
 0x3e9   : > { %v5612_v31 = vpop.eup %5611  ;;  %v1686_v37 = vmul.f32 0.5, %v5610_v1  ;;  %5633 = vtanh.f32 %v1565_v57 }
 0x3ea   : > { %v3438_v55 = vpop.permute.xlu1 %3437  ;;  %v5614_v48 = vpop.eup %5613  ;;  %5635 = vtanh.f32 %v1566_v16  ;;  %v1747_v14 = vadd.f32 0.5, %v1683_v44  ;;  %v1687_v24 = vmul.f32 0.5, %v5612_v31 }
 0x3eb   : > { %v3574_v30 = vmul.f32 %v5606_v15, %v3438_v55  ;;  %v1746_v15 = vadd.f32 0.5, %v1682_v47  ;;  %v1745_v55 = vadd.f32 0.5, %v1681_v8  ;;  %v7638_v2 = vpop.f32.mrf.mxu0  ;;  %v8557_v8 = vld [vmem:[#allocation35_spill] sm:$0xff]  ;;  %v1685_v1 = vmul.f32 0.5, %v5614_v48 }
 0x3ec   : > { %1914 = vrot.lane.b32.xlu0 %v1744_v13, %s6074_s16  ;;  %1912 = vrot.lane.b32.xlu1 %v1743_v35, %s6074_s16  ;;  %v1567_v13 = vmul.f32 0.5, %v7623_v43  ;;  %v5616_v35 = vpop.eup %5615  ;;  %v7646_v47 = vadd.f32 %v7607_v27, %v8557_v8  ;;  %v1750_v48 = vadd.f32 0.5, %v1686_v37 }
 0x3ed   : > { %v3610_v17 = vpack.c.bf16 %v3574_v30, %v3573_v33  ;;  %v5618_v46 = vpop.eup %5617  ;;  %v8558_v33 = vld [vmem:[#allocation36_spill] sm:$0xff]  ;;  %v7656_v16 = vpop.f32.mrf.mxu0  ;;  %v1688_v44 = vmul.f32 0.5, %v5616_v35 }
 0x3ee   : > { %v3440_v53 = vpop.permute.xlu0 %3439  ;;  %v5620_v49 = vpop.eup %5619  ;;  %v7650_v30 = vadd.f32 %v7607_v27, %v8558_v33  ;;  %5637 = vtanh.f32 %v1567_v13  ;;  %v1569_v13 = vmul.f32 0.5, %v7646_v47 }
 0x3ef   : > { %4982 = vmatmul.mubr.msk.bf16.gmra.mxu0 %vm940_vm0, %v3610_v17  ;;  %v1748_v17 = vadd.f32 0.5, %v1684_v62  ;;  %v3575_v18 = vmul.f32 %v5618_v46, %v3440_v53  ;;  %v5622_v8 = vpop.eup %5621  ;;  %5639 = vtanh.f32 %v8560_v6  ;;  %v8561_v46 = vld [vmem:[#allocation38_spill] sm:$0xff]  ;;  %v1749_v6 = vadd.f32 0.5, %v1685_v1 }
 0x3f0   : > { %1918 = vrot.lane.b32.xlu0 %v1746_v15, %s6074_s16  ;;  %1916 = vrot.lane.b32.xlu1 %v1745_v55, %s6074_s16  ;;  %v8559_v15 = vld [vmem:[#allocation37_spill] sm:$0xff]  ;;  %v5624_v62 = vpop.eup %5623  ;;  %5641 = vtanh.f32 %v7223_v28  ;;  %v1570_v53 = vmul.f32 0.5, %v7650_v30  ;;  %v7666_v31 = vadd.f32 %v7607_v27, %v8561_v46 }
 0x3f1   : > { %v7654_v55 = vadd.f32 %v7607_v27, %v8559_v15  ;;  %v5626_v15 = vpop.eup %5625  ;;  %5643 = vtanh.f32 %v1568_v29  ;;  %v1752_v29 = vadd.f32 0.5, %v1688_v44 }
 0x3f2   : > { %v3442_v57 = vpop.permute.xlu1 %3441  ;;  %8562 = vst [vmem:[#allocation55_spill] sm:$0xff] %v7666_v31  ;;  %v5628_v37 = vpop.eup %5627  ;;  %5645 = vtanh.f32 %v1569_v13  ;;  %v1572_v46 = vmul.f32 0.5, %v7666_v31 }
 0x3f3   : > { %v3576_v25 = vmul.f32 %v5620_v49, %v3442_v57  ;;  %v1571_v49 = vmul.f32 0.5, %v7654_v55  ;;  %v5630_v28 = vpop.eup %5629  ;;  %v1751_v57 = vadd.f32 0.5, %v1687_v24  ;;  %5647 = vtanh.f32 %v1570_v53 }
 0x3f4   : > { %1922 = vrot.lane.b32.xlu0 %v1748_v17, %s6074_s16  ;;  %1920 = vrot.lane.b32.xlu1 %v1747_v14, %s6074_s16  ;;  %v7669_v14 = vpop.f32.mrf.mxu0  ;;  %v5632_v1 = vpop.eup %5631  ;;  %v1690_v17 = vmul.f32 0.5, %v5624_v62 }
 0x3f5   : > { %v3611_v33 = vpack.c.bf16 %v3576_v25, %v3575_v18  ;;  %v1689_v25 = vmul.f32 0.5, %v5622_v8  ;;  %5649 = vtanh.f32 %v1571_v49  ;;  %v1691_v8 = vmul.f32 0.5, %v5626_v15 }
 0x3f6   : > { %v3444_v35 = vpop.permute.xlu0 %3443  ;;  %v7674_v18 = vpop.f32.mrf.mxu0  ;;  %5651 = vtanh.f32 %v7236_v36 }
 0x3f7   : > { %4985 = vmatprep.mubr.msk.bf16.mxu0 %vm940_vm0, %v3611_v33  ;;  %v7679_v33 = vadd.f32 %v7607_v27, %v8563_v22  ;;  %v5634_v24 = vpop.eup %5633  ;;  %5653 = vtanh.f32 %v7255_v41  ;;  %v1753_v13 = vadd.f32 0.5, %v1689_v25  ;;  %v1692_v27 = vmul.f32 0.5, %v5628_v37 }
 0x3f8   : > { %1926 = vrot.lane.b32.xlu0 %v1750_v48, %s6074_s16  ;;  %1924 = vrot.lane.b32.xlu1 %v1749_v6, %s6074_s16  ;;  %v3577_v48 = vmul.f32 %v5630_v28, %v3444_v35  ;;  %v7685_v62 = vpop.f32.mrf.mxu0  ;;  %v5636_v22 = vpop.eup %5635  ;;  %5655 = vtanh.f32 %v1572_v46  ;;  %v1755_v35 = vadd.f32 0.5, %v1691_v8  ;;  %v1693_v25 = vmul.f32 0.5, %v5634_v24 }
 0x3f9   : > { %8564 = vst [vmem:[#allocation56_spill] sm:$0xff] %v7679_v33  ;;  %v1573_v53 = vmul.f32 0.5, %v7679_v33 }
 0x3fa   : > { %v3446_v9 = vpop.permute.xlu1 %3445  ;;  %v7691_v41 = vpop.f32.mrf.mxu0  ;;  %v1757_v24 = vadd.f32 0.5, %v1693_v25 }
 0x3fb   : > { %v3578_v6 = vmul.f32 %v5632_v1, %v3446_v9  ;;  %v1754_v9 = vadd.f32 0.5, %v1690_v17  ;;  %v5638_v36 = vpop.eup %5637  ;;  %5657 = vtanh.f32 %v1573_v53 }
 0x3fc   : > { %1930 = vrot.lane.b32.xlu0 %v1752_v29, %s6074_s16  ;;  %1928 = vrot.lane.b32.xlu1 %v1751_v57, %s6074_s16  ;;  %v5640_v15 = vpop.eup %5639  ;;  %v1694_v29 = vmul.f32 0.5, %v5636_v22  ;;  %v1756_v57 = vadd.f32 0.5, %v1692_v27  ;;  %5659 = vtanh.f32 %v7426_v34 }
 0x3fd   : > { %v3612_v44 = vpack.c.bf16 %v3578_v6, %v3577_v48  ;;  %v5642_v28 = vpop.eup %5641  ;;  %v7695_v48 = vpop.f32.mrf.mxu0  ;;  %5661 = vtanh.f32 %v7442_v5 }
 0x3fe   : > { %v3448_v49 = vpop.permute.xlu0 %3447  ;;  %v5644_v1 = vpop.eup %5643  ;;  %v1758_v33 = vadd.f32 0.5, %v1694_v29  ;;  %5663 = vtanh.f32 %v7448_v21 }
 0x3ff   : > { %4986 = vmatmul.mubr.msk.bf16.gmra.mxu0 %vm940_vm0, %v3612_v44  ;;  %v3579_v17 = vmul.f32 %v5640_v15, %v3448_v49  ;;  %v5646_v44 = vpop.eup %5645  ;;  %v7697_v53 = vpop.f32.mrf.mxu0  ;;  %5665 = vtanh.f32 %v7452_v12 }
 0x400   : > { %1934 = vrot.lane.b32.xlu0 %v1754_v9, %s6074_s16  ;;  %1932 = vrot.lane.b32.xlu1 %v1753_v13, %s6074_s16  ;;  %v1695_v13 = vmul.f32 0.5, %v5638_v36  ;;  %v1696_v9 = vmul.f32 0.5, %v5644_v1  ;;  %v5648_v22 = vpop.eup %5647  ;;  %5667 = vtanh.f32 %v7456_v4 }
 0x401   : > { %v3816_v1 = vpop.f32.mrf.mxu0  ;;  %5669 = vtanh.f32 %v7471_v50 }
 0x402   : > { %v3450_v37 = vpop.permute.xlu1 %3449  ;;  %v5650_v27 = vpop.eup %5649  ;;  %v1759_v29 = vadd.f32 0.5, %v1695_v13  ;;  %5671 = vtanh.f32 %v7475_v59 }
 0x403   : > { %v3580_v46 = vmul.f32 %v5642_v28, %v3450_v37  ;;  %v5652_v49 = vpop.eup %5651  ;;  %v1698_v28 = vmul.f32 0.5, %v5648_v22  ;;  %5673 = vtanh.f32 %v7479_v58 }
 0x404   : > { %1938 = vrot.lane.b32.xlu0 %v1756_v57, %s6074_s16  ;;  %1936 = vrot.lane.b32.xlu1 %v1755_v35, %s6074_s16  ;;  %v5654_v15 = vpop.eup %5653  ;;  %v1697_v35 = vmul.f32 0.5, %v5646_v44  ;;  %v1760_v57 = vadd.f32 0.5, %v1696_v9  ;;  %v4940_v9 = vpop.f32.mrf.mxu0  ;;  %5675 = vtanh.f32 %v7489_v11 }
 0x405   : > { %v3613_v6 = vpack.c.bf16 %v3580_v46, %v3579_v17  ;;  %v5656_v25 = vpop.eup %5655  ;;  %v1762_v22 = vadd.f32 0.5, %v1698_v28  ;;  %v7720_v28 = vld [vmem:[%s8296_s7] ss:$0 sm:$0xff]  ;;  %5677 = vtanh.f32 %v7500_v42 }
 0x406   : > { %v3452_v8 = vpop.permute.xlu0 %3451  ;;  %5679 = vtanh.f32 %v7505_v26 }
 0x407   : > { %4989 = vmatprep.mubr.msk.bf16.mxu0 %vm940_vm0, %v3613_v6  ;;  %v3581_v17 = vmul.f32 %v5652_v49, %v3452_v8  ;;  %v1699_v6 = vmul.f32 0.5, %v5650_v27  ;;  %5681 = vtanh.f32 %v7509_v20 }
 0x408   : > { %1942 = vrot.lane.b32.xlu0 %v1758_v33, %s6074_s16  ;;  %1940 = vrot.lane.b32.xlu1 %v1757_v24, %s6074_s16  ;;  %v1700_v24 = vmul.f32 0.5, %v5656_v25  ;;  %v5658_v31 = vpop.eup %5657  ;;  %5683 = vtanh.f32 %v7519_v3 }
 0x409   : > { %v1701_v13 = vmul.f32 0.5, %v5658_v31  ;;  %v3793_v31 = vadd.f32 %v7625_v45, %v7720_v28  ;;  %v5660_v12 = vpop.eup %5659  ;;  %5685 = vtanh.f32 %v7527_v60 }
 0x40a   : > { %v7702_v37 = vpop.permute.xlu0 %1830  ;;  %v3454_v36 = vpop.permute.xlu1 %3453  ;;  %v1764_v27 = vadd.f32 0.5, %v1700_v24  ;;  %v3788_v24 = vadd.f32 %v7720_v28, %v7669_v14  ;;  %5687 = vtanh.f32 %v7532_v19 }
 0x40b   : > { %8565 = vst [vmem:[#allocation57_spill] sm:$0xff] %v7702_v37  ;;  %v3582_v46 = vmul.f32 %v5654_v15, %v3454_v36  ;;  %v1761_v37 = vadd.f32 0.5, %v1697_v35  ;;  %v1763_v15 = vadd.f32 0.5, %v1699_v6  ;;  %v3819_v35 = vpop.f32.mrf.mxu0  ;;  %v5662_v50 = vpop.eup %5661  ;;  %5689 = vtanh.f32 %v7536_v23 }
 0x40c   : > { %1946 = vrot.lane.b32.xlu0 %v1760_v57, %s6074_s16  ;;  %1944 = vrot.lane.b32.xlu1 %v1759_v29, %s6074_s16  ;;  %v1765_v29 = vadd.f32 0.5, %v1701_v13  ;;  %v5664_v59 = vpop.eup %5663  ;;  %5691 = vtanh.f32 %v7549_v32 }
 0x40d   : > { %v3614_v33 = vpack.c.bf16 %v3582_v46, %v3581_v17  ;;  %v3785_v17 = vadd.f32 %v7720_v28, %v7638_v2  ;;  %v3796_v46 = vadd.f32 %v7656_v16, %v7720_v28  ;;  %v5666_v58 = vpop.eup %5665  ;;  %5693 = vtanh.f32 %v7555_v54 }
 0x40e   : > { %v7706_v56 = vpop.permute.xlu0 %1834  ;;  %v7708_v44 = vpop.permute.xlu1 %1832  ;;  %5695 = vtanh.f32 %v7566_v51 }
 0x40f   : > { %4990 = vmatmul.mubr.msk.bf16.gmra.mxu0 %vm940_vm0, %v3614_v33  ;;  %v4943_v36 = vpop.f32.mrf.mxu0  ;;  %v5668_v11 = vpop.eup %5667  ;;  %5697 = vtanh.f32 %v7559_v10 }
 0x410   : > { %1950 = vrot.lane.b32.xlu0 %v1762_v22, %s6074_s16  ;;  %1948 = vrot.lane.b32.xlu1 %v1761_v37, %s6074_s16  ;;  %v3809_v22 = vadd.f32 %v7674_v18, %v7720_v28  ;;  %5699 = vtanh.f32 %v7570_v40 }
 0x411   : > { %v3832_v25 = vpop.f32.mrf.mxu0 }
 0x412   : > { %v7713_v8 = vpop.permute.xlu0 %1838  ;;  %v7715_v49 = vpop.permute.xlu1 %1836 }
 0x413   : > { %v4944_v45 = vpop.f32.mrf.mxu0 }
 0x414   : > { %1954 = vrot.lane.b32.xlu0 %v1764_v27, %s6074_s16  ;;  %1952 = vrot.lane.b32.xlu1 %v1763_v15, %s6074_s16  ;;  %v3801_v27 = vadd.f32 %v7720_v28, %v7685_v62  ;;  %v3812_v15 = vadd.f32 %v7691_v41, %v7720_v28 }
 0x415   : > { %v3835_v16 = vpop.f32.mrf.mxu0 }
 0x416   : > { %v7726_v37 = vpop.permute.xlu0 %1842  ;;  %v7728_v57 = vpop.permute.xlu1 %1840 }
 0x418   : > { %1956 = vrot.lane.b32.xlu1 %v1765_v29, %s6074_s16  ;;  %4107 = vrot.lane.b32.xlu0 %v3793_v31, %s6074_s16  ;;  %v3804_v29 = vadd.f32 %v7720_v28, %v7695_v48 }
 0x41a   : > { %v7736_v33 = vpop.permute.xlu0 %1846  ;;  %v7738_v6 = vpop.permute.xlu1 %1844 }
 0x41c   : > { %4109 = vrot.lane.b32.xlu1 %v3796_v46, %s6074_s16  ;;  %4103 = vrot.lane.b32.xlu0 %v3785_v17, %s6074_s16  ;;  %v3825_v17 = vadd.f32 %v7697_v53, %v7720_v28  ;;  %v3820_v53 = vadd.f32 %v7720_v28, %v3819_v35 }
 0x41e   : > { %v7746_v13 = vpop.permute.xlu0 %1850  ;;  %v7748_v2 = vpop.permute.xlu1 %1848 }
 0x41f   : > { %v4947_v18 = vpop.f32.mrf.mxu0 }
 0x420   : > { %4105 = vrot.lane.b32.xlu1 %v3788_v24, %s6074_s16  ;;  %4115 = vrot.lane.b32.xlu0 %v3809_v22, %s6074_s16  ;;  %v3817_v24 = vadd.f32 %v7720_v28, %v3816_v1  ;;  %v3828_v22 = vadd.f32 %v4940_v9, %v7720_v28 }
 0x421   : > { %v3848_v41 = vpop.f32.mrf.mxu0 }
 0x422   : > { %v7756_v31 = vpop.permute.xlu0 %1854  ;;  %v7758_v14 = vpop.permute.xlu1 %1852 }
 0x423   : > { %v4948_v48 = vpop.f32.mrf.mxu0 }
 0x424   : > { %4117 = vrot.lane.b32.xlu1 %v3812_v15, %s6074_s16  ;;  %4111 = vrot.lane.b32.xlu0 %v3801_v27, %s6074_s16 }
 0x425   : > { %v3851_v1 = vpop.f32.mrf.mxu0 }
 0x426   : > { %v7766_v46 = vpop.permute.xlu0 %1858  ;;  %v7768_v62 = vpop.permute.xlu1 %1856  ;;  %v3852_v34 = vadd.f32 %v7720_v28, %v3851_v1 }
 0x427   : > { %8566 = vst [vmem:[#allocation58_spill] sm:$0xff] %v7768_v62  ;;  %v3841_v62 = vadd.f32 %v4943_v36, %v7720_v28  ;;  %v3836_v36 = vadd.f32 %v7720_v28, %v3835_v16 }
 0x428   : > { %4113 = vrot.lane.b32.xlu1 %v3804_v29, %s6074_s16  ;;  %4123 = vrot.lane.b32.xlu0 %v3825_v17, %s6074_s16 }
 0x42a   : > { %v7774_v27 = vpop.permute.xlu0 %1862  ;;  %v7776_v15 = vpop.permute.xlu1 %1860 }
 0x42b   : > { %8567 = vst [vmem:[#allocation59_spill] sm:$0xff] %v7774_v27  ;;  %8568 = vst [vmem:[#allocation60_spill] sm:$0xff] %v7776_v15  ;;  %v3833_v27 = vadd.f32 %v7720_v28, %v3832_v25 }
 0x42c   : > { %4125 = vrot.lane.b32.xlu1 %v3828_v22, %s6074_s16  ;;  %4119 = vrot.lane.b32.xlu0 %v3817_v24, %s6074_s16  ;;  %v3844_v22 = vadd.f32 %v4944_v45, %v7720_v28  ;;  %v3849_v45 = vadd.f32 %v7720_v28, %v3848_v41 }
 0x42e   : > { %v7782_v29 = vpop.permute.xlu0 %1866  ;;  %v7784_v17 = vpop.permute.xlu1 %1864 }
 0x42f   : > { %8569 = vst [vmem:[#allocation61_spill] sm:$0xff] %v7784_v17  ;;  %v4951_v9 = vpop.f32.mrf.mxu0 }
 0x430   : > { %4121 = vrot.lane.b32.xlu1 %v3820_v53, %s6074_s16  ;;  %4131 = vrot.lane.b32.xlu0 %v3841_v62, %s6074_s16  ;;  %v3857_v53 = vadd.f32 %v4947_v18, %v7720_v28 }
 0x431   : > { %v3864_v35 = vpop.f32.mrf.mxu0 }
 0x432   : > { %v7790_v15 = vpop.permute.xlu0 %1870  ;;  %v7792_v24 = vpop.permute.xlu1 %1868  ;;  %v3865_v5 = vadd.f32 %v7720_v28, %v3864_v35 }
 0x433   : > { %v4952_v25 = vpop.f32.mrf.mxu0 }
 0x434   : > { %4133 = vrot.lane.b32.xlu1 %v3844_v22, %s6074_s16  ;;  %4127 = vrot.lane.b32.xlu0 %v3833_v27, %s6074_s16  ;;  %v3860_v27 = vadd.f32 %v4948_v48, %v7720_v28  ;;  %v3876_v21 = vadd.f32 %v4952_v25, %v7720_v28 }
 0x435   : > { %v3867_v18 = vpop.f32.mrf.mxu0 }
 0x436   : > { %v7798_v17 = vpop.permute.xlu0 %1874  ;;  %v7800_v62 = vpop.permute.xlu1 %1872  ;;  %v3868_v4 = vadd.f32 %v7720_v28, %v3867_v18 }
 0x438   : > { %4129 = vrot.lane.b32.xlu1 %v3836_v36, %s6074_s16  ;;  %4139 = vrot.lane.b32.xlu0 %v3857_v53, %s6074_s16  ;;  %v3873_v36 = vadd.f32 %v4951_v9, %v7720_v28 }
 0x43a   : > { %v7807_v22 = vpop.permute.xlu0 %1878  ;;  %v7809_v16 = vpop.permute.xlu1 %1876 }
 0x43c   : > { %4141 = vrot.lane.b32.xlu1 %v3860_v27, %s6074_s16  ;;  %4135 = vrot.lane.b32.xlu0 %v3849_v45, %s6074_s16 }
 0x43e   : > { %v7817_v41 = vpop.permute.xlu0 %1882  ;;  %v7819_v48 = vpop.permute.xlu1 %1880 }
 0x43f   : > { %v4955_v53 = vpop.f32.mrf.mxu0 }
 0x440   : > { %4137 = vrot.lane.b32.xlu1 %v3852_v34, %s6074_s16  ;;  %4147 = vrot.lane.b32.xlu0 %v3873_v36, %s6074_s16  ;;  %v3889_v35 = vadd.f32 %v4955_v53, %v7720_v28 }
 0x441   : > { %v3880_v45 = vpop.f32.mrf.mxu0 }
 0x442   : > { %v7827_v1 = vpop.permute.xlu0 %1886  ;;  %v7829_v9 = vpop.permute.xlu1 %1884  ;;  %v3881_v18 = vadd.f32 %v7720_v28, %v3880_v45 }
 0x443   : > { %8570 = vst [vmem:[#allocation62_spill] sm:$0xff] %v7827_v1  ;;  %v4956_v34 = vpop.f32.mrf.mxu0 }
 0x444   : > { %4149 = vrot.lane.b32.xlu1 %v3876_v21, %s6074_s16  ;;  %4143 = vrot.lane.b32.xlu0 %v3865_v5, %s6074_s16  ;;  %v3892_v53 = vadd.f32 %v4956_v34, %v7720_v28 }
 0x446   : > { %v1891_v27 = vpop.permute.xlu0 %1890  ;;  %v7837_v25 = vpop.permute.xlu1 %1888 }
 0x447   : > { %8571 = vst [vmem:[#allocation63_spill] sm:$0xff] %v7837_v25  ;;  %v7839_v36 = vmul.f32 %v5660_v12, %v1891_v27  ;;  %v3883_v25 = vpop.f32.mrf.mxu0 }
 0x448   : > { %4145 = vrot.lane.b32.xlu1 %v3868_v4, %s6074_s16  ;;  %4155 = vrot.lane.b32.xlu0 %v3889_v35, %s6074_s16  ;;  %v3884_v45 = vadd.f32 %v7720_v28, %v3883_v25 }
 0x44a   : > { %v1895_v5 = vpop.permute.xlu0 %1894  ;;  %v1893_v21 = vpop.permute.xlu1 %1892 }
 0x44b   : > { %v7847_v1 = vmul.f32 %v5664_v59, %v1895_v5  ;;  %v7849_v12 = vmul.f32 %v5662_v50, %v1893_v21  ;;  %v5670_v59 = vpop.eup %5669  ;;  %5701 = vtanh.f32 %v7576_v39 }
 0x44c   : > { %4157 = vrot.lane.b32.xlu1 %v3892_v53, %s6074_s16  ;;  %4151 = vrot.lane.b32.xlu0 %v3881_v18, %s6074_s16  ;;  %v5672_v18 = vpop.eup %5671  ;;  %5703 = vtanh.f32 %v7587_v38 }
 0x44e   : > { %v1899_v4 = vpop.permute.xlu0 %1898  ;;  %v1897_v35 = vpop.permute.xlu1 %1896 }
 0x44f   : > { %v7856_v27 = vmul.f32 %v5668_v11, %v1899_v4  ;;  %v7858_v34 = vmul.f32 %v5666_v58, %v1897_v35  ;;  %v4959_v50 = vpop.f32.mrf.mxu0 }
 0x450   : > { %v3905_v42 = vadd.f32 %v4959_v50, %v7720_v28  ;;  %4153 = vrot.lane.b32.xlu1 %v3884_v45, %s6074_s16  ;;  %v5674_v45 = vpop.eup %5673  ;;  %5705 = vtanh.f32 %v7594_v63 }
 0x451   : > { %v3896_v26 = vpop.f32.mrf.mxu0  ;;  %v5676_v4 = vpop.eup %5675  ;;  %5707 = vtanh.f32 %v7598_v0 }
 0x452   : > { %v1903_v53 = vpop.permute.xlu0 %1902  ;;  %v1901_v25 = vpop.permute.xlu1 %1900  ;;  %4163 = vrot.lane.b32.xlu0 %v3905_v42, %s6074_s16  ;;  %v3897_v20 = vadd.f32 %v7720_v28, %v3896_v26 }
 0x453   : > { %v7865_v5 = vmul.f32 %v5672_v18, %v1903_v53  ;;  %v7867_v21 = vmul.f32 %v5670_v59, %v1901_v25  ;;  %v4960_v58 = vpop.f32.mrf.mxu0  ;;  %v5678_v26 = vpop.eup %5677  ;;  %5709 = vtanh.f32 %v7613_v61 }
 0x454   : > { %v3908_v11 = vadd.f32 %v4960_v58, %v7720_v28  ;;  %v5680_v19 = vpop.eup %5679  ;;  %5711 = vtanh.f32 %v7619_v52 }
 0x455   : > { %v3899_v3 = vpop.f32.mrf.mxu0 }
 0x456   : > { %v1907_v35 = vpop.permute.xlu0 %1906  ;;  %v1905_v50 = vpop.permute.xlu1 %1904  ;;  %4165 = vrot.lane.b32.xlu1 %v3908_v11, %s6074_s16  ;;  %4159 = vrot.lane.b32.xlu0 %v3897_v20, %s6074_s16  ;;  %v3900_v60 = vadd.f32 %v7720_v28, %v3899_v3 }
 0x457   : > { %v7875_v42 = vmul.f32 %v5676_v4, %v1907_v35  ;;  %v7877_v59 = vmul.f32 %v5674_v45, %v1905_v50  ;;  %v5682_v20 = vpop.eup %5681  ;;  %5713 = vtanh.f32 %v7623_v43 }
 0x458   : > { %v5684_v23 = vpop.eup %5683  ;;  %5715 = vtanh.f32 %v7634_v7 }
 0x459   : > { %v5686_v50 = vpop.eup %5685  ;;  %5717 = vtanh.f32 %v7646_v47 }
 0x45a   : > { %v1911_v18 = vpop.permute.xlu0 %1910  ;;  %v1909_v53 = vpop.permute.xlu1 %1908  ;;  %4161 = vrot.lane.b32.xlu1 %v3900_v60, %s6074_s16 }
 0x45b   : > { %v7883_v25 = vmul.f32 %v5680_v19, %v1911_v18  ;;  %v7885_v58 = vmul.f32 %v5678_v26, %v1909_v53  ;;  %v5688_v54 = vpop.eup %5687  ;;  %5719 = vtanh.f32 %v7650_v30 }
 0x45e   : > { %v1915_v11 = vpop.permute.xlu0 %1914  ;;  %v1913_v45 = vpop.permute.xlu1 %1912 }
 0x45f   : > { %v7889_v3 = vmul.f32 %v5684_v23, %v1915_v11  ;;  %v7891_v32 = vmul.f32 %v5682_v20, %v1913_v45  ;;  %v4963_v4 = vpop.f32.mrf.mxu0  ;;  %v5690_v23 = vpop.eup %5689  ;;  %5721 = vtanh.f32 %v7654_v55 }
 0x460   : > { %v3921_v35 = vadd.f32 %v4963_v4, %v7720_v28  ;;  %v5692_v11 = vpop.eup %5691 }
 0x461   : > { %v3912_v60 = vpop.f32.mrf.mxu0 }
 0x462   : > { %v1919_v26 = vpop.permute.xlu0 %1918  ;;  %v1917_v19 = vpop.permute.xlu1 %1916  ;;  %4171 = vrot.lane.b32.xlu0 %v3921_v35, %s6074_s16  ;;  %v3913_v10 = vadd.f32 %v7720_v28, %v3912_v60 }
 0x463   : > { %v7897_v51 = vmul.f32 %v5688_v54, %v1919_v26  ;;  %v7899_v18 = vmul.f32 %v5686_v50, %v1917_v19  ;;  %v4964_v53 = vpop.f32.mrf.mxu0  ;;  %v5694_v60 = vpop.eup %5693 }
 0x464   : > { %v3924_v20 = vadd.f32 %v4964_v53, %v7720_v28  ;;  %v5696_v38 = vpop.eup %5695 }
 0x465   : > { %v3915_v40 = vpop.f32.mrf.mxu0 }
 0x466   : > { %v1923_v45 = vpop.permute.xlu0 %1922  ;;  %v1921_v4 = vpop.permute.xlu1 %1920  ;;  %4173 = vrot.lane.b32.xlu1 %v3924_v20, %s6074_s16  ;;  %4167 = vrot.lane.b32.xlu0 %v3913_v10, %s6074_s16  ;;  %v3916_v39 = vadd.f32 %v7720_v28, %v3915_v40 }
 0x467   : > { %v7907_v35 = vmul.f32 %v5692_v11, %v1923_v45  ;;  %v7909_v50 = vmul.f32 %v5690_v23, %v1921_v4  ;;  %v5698_v10 = vpop.eup %5697 }
 0x468   : > { %v5700_v63 = vpop.eup %5699 }
 0x469   : > { %v5702_v4 = vpop.eup %5701 }
 0x46a   : > { %v1927_v54 = vpop.permute.xlu0 %1926  ;;  %v1925_v26 = vpop.permute.xlu1 %1924  ;;  %4169 = vrot.lane.b32.xlu1 %v3916_v39, %s6074_s16 }
 0x46b   : > { %v7915_v19 = vmul.f32 %v5694_v60, %v1927_v54  ;;  %v7917_v53 = vmul.f32 %v5696_v38, %v1925_v26  ;;  %v5704_v61 = vpop.eup %5703 }
 0x46e   : > { %v1931_v20 = vpop.permute.xlu0 %1930  ;;  %v1929_v23 = vpop.permute.xlu1 %1928 }
 0x46f   : > { %v7921_v40 = vmul.f32 %v5700_v63, %v1931_v20  ;;  %v7923_v0 = vmul.f32 %v5698_v10, %v1929_v23  ;;  %v4967_v11 = vpop.f32.mrf.mxu0  ;;  %v5706_v63 = vpop.eup %5705 }
 0x470   : > { %v3937_v45 = vadd.f32 %v4967_v11, %v7720_v28  ;;  %v5708_v20 = vpop.eup %5707 }
 0x471   : > { %v3928_v39 = vpop.f32.mrf.mxu0 }
 0x472   : > { %v1935_v60 = vpop.permute.xlu0 %1934  ;;  %v1933_v38 = vpop.permute.xlu1 %1932  ;;  %4179 = vrot.lane.b32.xlu0 %v3937_v45, %s6074_s16  ;;  %v3929_v43 = vadd.f32 %v7720_v28, %v3928_v39 }
 0x473   : > { %v7929_v52 = vmul.f32 %v5704_v61, %v1935_v60  ;;  %v7931_v54 = vmul.f32 %v5702_v4, %v1933_v38  ;;  %v4968_v26 = vpop.f32.mrf.mxu0  ;;  %v5710_v39 = vpop.eup %5709  ;;  %v8575_v61 = vld [vmem:[#allocation55_spill] sm:$0xff] }
 0x474   : > { %v3940_v10 = vadd.f32 %v4968_v26, %v7720_v28  ;;  %5723 = vtanh.f32 %v8575_v61  ;;  %v5712_v30 = vpop.eup %5711  ;;  %v8576_v26 = vld [vmem:[#allocation76_spill] sm:$0xff]  ;;  %v8581_v61 = vld [vmem:[#allocation77_spill] sm:$0xff] }
 0x475   : > { %8572 = vst [vmem:[#allocation64_spill] sm:$0xff] %v7929_v52  ;;  %v3931_v7 = vpop.f32.mrf.mxu0  ;;  %5725 = vtanh.f32 %v8576_v26  ;;  %v8584_v26 = vld [vmem:[#allocation75_spill] sm:$0xff] }
 0x476   : > { %v1939_v23 = vpop.permute.xlu0 %1938  ;;  %v1937_v11 = vpop.permute.xlu1 %1936  ;;  %4181 = vrot.lane.b32.xlu1 %v3940_v10, %s6074_s16  ;;  %4175 = vrot.lane.b32.xlu0 %v3929_v43, %s6074_s16  ;;  %v3932_v47 = vadd.f32 %v7720_v28, %v3931_v7 }
 0x477   : > { %v7939_v45 = vmul.f32 %v5708_v20, %v1939_v23  ;;  %v7941_v4 = vmul.f32 %v5706_v63, %v1937_v11  ;;  %v5714_v63 = vpop.eup %5713  ;;  %v8579_v20 = vld [vmem:[#allocation56_spill] sm:$0xff]  ;;  %v8580_v23 = vld [vmem:[#allocation74_spill] sm:$0xff] }
 0x478   : > { %5727 = vtanh.f32 %v8579_v20  ;;  %v5716_v55 = vpop.eup %5715 }
 0x479   : > { %8573 = vst [vmem:[#allocation65_spill] sm:$0xff] %v7939_v45  ;;  %8574 = vst [vmem:[#allocation66_spill] sm:$0xff] %v7941_v4  ;;  %5729 = vtanh.f32 %v8580_v23  ;;  %v8585_v23 = vld [vmem:[#allocation80_spill] sm:$0xff] }
 0x47a   : > { %v1943_v60 = vpop.permute.xlu0 %1942  ;;  %v1941_v38 = vpop.permute.xlu1 %1940  ;;  %4177 = vrot.lane.b32.xlu1 %v3932_v47, %s6074_s16  ;;  %5731 = vtanh.f32 %v8581_v61 }
 0x47b   : > { %v7948_v10 = vmul.f32 %v5712_v30, %v1943_v60  ;;  %v7950_v43 = vmul.f32 %v5710_v39, %v1941_v38  ;;  %v5718_v60 = vpop.eup %5717  ;;  %5733 = vtanh.f32 %v8584_v26 }
 0x47c   : > { %v5720_v38 = vpop.eup %5719  ;;  %5735 = vtanh.f32 %v8585_v23 }
 0x47d   : > { %8577 = vst [vmem:[#allocation67_spill] sm:$0xff] %v7948_v10  ;;  %8578 = vst [vmem:[#allocation68_spill] sm:$0xff] %v7950_v43  ;;  %v5722_v61 = vpop.eup %5721 }
 0x47e   : > { %v1947_v7 = vpop.permute.xlu0 %1946  ;;  %v1945_v11 = vpop.permute.xlu1 %1944 }
 0x47f   : > { %v7955_v4 = vmul.f32 %v5716_v55, %v1947_v7  ;;  %v7957_v52 = vmul.f32 %v5714_v63, %v1945_v11  ;;  %v4971_v47 = vpop.f32.mrf.mxu0 }
 0x480   : > { %v3953_v30 = vadd.f32 %v4971_v47, %v7720_v28 }
 0x481   : > { %8582 = vst [vmem:[#allocation69_spill] sm:$0xff] %v7955_v4  ;;  %8583 = vst [vmem:[#allocation70_spill] sm:$0xff] %v7957_v52  ;;  %v3944_v39 = vpop.f32.mrf.mxu0  ;;  %v5724_v52 = vpop.eup %5723  ;;  %v8587_v4 = vld [vmem:[#allocation78_spill] sm:$0xff] }
 0x482   : > { %v1951_v20 = vpop.permute.xlu0 %1950  ;;  %v1949_v10 = vpop.permute.xlu1 %1948  ;;  %4187 = vrot.lane.b32.xlu0 %v3953_v30, %s6074_s16  ;;  %v3945_v7 = vadd.f32 %v7720_v28, %v3944_v39  ;;  %5737 = vtanh.f32 %v8587_v4  ;;  %v8588_v30 = vld [vmem:[#allocation81_spill] sm:$0xff]  ;;  %v8589_v4 = vld [vmem:[#allocation79_spill] sm:$0xff] }
 0x483   : > { %v7963_v43 = vmul.f32 %v5720_v38, %v1951_v20  ;;  %v7965_v55 = vmul.f32 %v5718_v60, %v1949_v10  ;;  %v4972_v63 = vpop.f32.mrf.mxu0  ;;  %5739 = vtanh.f32 %v8588_v30  ;;  %v5726_v39 = vpop.eup %5725 }
 0x484   : > { %v3956_v11 = vadd.f32 %v4972_v63, %v7720_v28  ;;  %v2024_v20 = vmul.f32 %v5726_v39, %v7706_v56  ;;  %5741 = vtanh.f32 %v8589_v4  ;;  %v8591_v56 = vld [vmem:[#allocation57_spill] sm:$0xff] }
 0x485   : > { %8586 = vst [vmem:[#allocation71_spill] sm:$0xff] %v7963_v43  ;;  %v3947_v47 = vpop.f32.mrf.mxu0  ;;  %v5728_v23 = vpop.eup %5727  ;;  %v8593_v4 = vld [vmem:[#allocation85_spill] sm:$0xff] }
 0x486   : > { %v1955_v26 = vpop.permute.xlu0 %1954  ;;  %v1953_v45 = vpop.permute.xlu1 %1952  ;;  %4189 = vrot.lane.b32.xlu1 %v3956_v11, %s6074_s16  ;;  %4183 = vrot.lane.b32.xlu0 %v3945_v7, %s6074_s16  ;;  %v3948_v38 = vadd.f32 %v7720_v28, %v3947_v47  ;;  %v8590_v11 = vld [vmem:[#allocation84_spill] sm:$0xff] }
 0x487   : > { %v7973_v10 = vmul.f32 %v5724_v52, %v1955_v26  ;;  %v7975_v60 = vmul.f32 %v5722_v61, %v1953_v45  ;;  %v5730_v7 = vpop.eup %5729  ;;  %5743 = vtanh.f32 %v8590_v11  ;;  %v8592_v26 = vld [vmem:[#allocation82_spill] sm:$0xff] }
 0x488   : > { %v5732_v45 = vpop.eup %5731  ;;  %v2022_v61 = vmul.f32 %v5730_v7, %v8591_v56  ;;  %5745 = vtanh.f32 %v8592_v26  ;;  %v8594_v56 = vld [vmem:[#allocation83_spill] sm:$0xff] }
 0x489   : > { %v2025_v47 = vmul.f32 %v5732_v45, %v7715_v49  ;;  %5747 = vtanh.f32 %v8593_v4 }
 0x48a   : > { %v1957_v63 = vpop.permute.xlu1 %1956  ;;  %v4108_v43 = vpop.permute.xlu0 %4107  ;;  %4185 = vrot.lane.b32.xlu1 %v3948_v38, %s6074_s16  ;;  %5749 = vtanh.f32 %v8594_v56  ;;  %v8597_v56 = vld [vmem:[#allocation39_spill] sm:$0xff] }
 0x48b   : > { %v7982_v30 = vmul.f32 %v5728_v23, %v1957_v63  ;;  %v4297_v52 = vsel %vm940_vm0, %v2024_v20, %v4108_v43  ;;  %v5734_v23 = vpop.eup %5733 }
 0x48c   : > { %4361 = vst [vmem:[%s7987_s20 + $0x10] sm:$0xff] %v4297_v52  ;;  %v5736_v11 = vpop.eup %5735  ;;  %v2023_v49 = vmul.f32 %v5734_v23, %v7708_v44 }
 0x48d   : > { %v2028_v52 = vmul.f32 %v5736_v11, %v7726_v37 }
 0x48e   : > { %v4110_v39 = vpop.permute.xlu1 %4109  ;;  %v4104_v38 = vpop.permute.xlu0 %4103 }
 0x48f   : > { %v4298_v43 = vsel %vm940_vm0, %v2025_v47, %v4110_v39  ;;  %v4295_v20 = vsel %vm940_vm0, %v2022_v61, %v4104_v38  ;;  %v4975_v63 = vpop.f32.mrf.mxu0  ;;  %v5738_v61 = vpop.eup %5737  ;;  %v8595_v39 = vld [vmem:[#allocation88_spill] sm:$0xff] }
 0x490   : > { %4362 = vst [vmem:[%s7987_s20 + $0x18] sm:$0xff] %v4298_v43  ;;  %4359 = vst [vmem:[%s7987_s20] sm:$0xff] %v4295_v20  ;;  %v3969_v7 = vadd.f32 %v4975_v63, %v7720_v28  ;;  %5751 = vtanh.f32 %v8595_v39  ;;  %v5740_v20 = vpop.eup %5739  ;;  %v2026_v23 = vmul.f32 %v5738_v61, %v7713_v8 }
 0x491   : > { %v3960_v45 = vpop.f32.mrf.mxu0  ;;  %v2029_v63 = vmul.f32 %v5740_v20, %v7738_v6 }
 0x492   : > { %v4106_v26 = vpop.permute.xlu1 %4105  ;;  %4195 = vrot.lane.b32.xlu0 %v3969_v7, %s6074_s16  ;;  %v4116_v47 = vpop.permute.xlu0 %4115  ;;  %v3961_v44 = vadd.f32 %v7720_v28, %v3960_v45  ;;  %v8596_v7 = vld [vmem:[#allocation86_spill] sm:$0xff] }
 0x493   : > { %v4296_v38 = vsel %vm940_vm0, %v2023_v49, %v4106_v26  ;;  %v4301_v4 = vsel %vm940_vm0, %v2028_v52, %v4116_v47  ;;  %v4976_v43 = vpop.f32.mrf.mxu0  ;;  %5753 = vtanh.f32 %v8596_v7  ;;  %v5742_v45 = vpop.eup %5741 }
 0x494   : > { %4360 = vst [vmem:[%s7987_s20 + $0x8] sm:$0xff] %v4296_v38  ;;  %4365 = vst [vmem:[%s7987_s20 + $0x30] sm:$0xff] %v4301_v4  ;;  %v3972_v37 = vadd.f32 %v4976_v43, %v7720_v28  ;;  %5755 = vtanh.f32 %v8597_v56  ;;  %v5744_v8 = vpop.eup %5743  ;;  %v2027_v61 = vmul.f32 %v5742_v45, %v7728_v57  ;;  %v8598_v38 = vld [vmem:[#allocation87_spill] sm:$0xff]  ;;  %v8601_v45 = vld [vmem:[#allocation44_spill] sm:$0xff] }
 0x495   : > { %v3963_v11 = vpop.f32.mrf.mxu0  ;;  %v2032_v39 = vmul.f32 %v5744_v8, %v7746_v13  ;;  %5757 = vtanh.f32 %v8598_v38  ;;  %v5746_v20 = vpop.eup %5745 }
 0x496   : > { %4197 = vrot.lane.b32.xlu1 %v3972_v37, %s6074_s16  ;;  %v4118_v49 = vpop.permute.xlu1 %4117  ;;  %4191 = vrot.lane.b32.xlu0 %v3961_v44, %s6074_s16  ;;  %v4112_v52 = vpop.permute.xlu0 %4111  ;;  %v3964_v6 = vadd.f32 %v7720_v28, %v3963_v11  ;;  %v8599_v44 = vld [vmem:[#allocation43_spill] sm:$0xff]  ;;  %v2030_v57 = vmul.f32 %v5746_v20, %v7736_v33  ;;  %v8600_v11 = vld [vmem:[#allocation41_spill] sm:$0xff] }
 0x497   : > { %v4302_v26 = vsel %vm940_vm0, %v2029_v63, %v4118_v49  ;;  %v4299_v47 = vsel %vm940_vm0, %v2026_v23, %v4112_v52  ;;  %5759 = vtanh.f32 %v8599_v44  ;;  %v5748_v63 = vpop.eup %5747  ;;  %v8603_v20 = vld [vmem:[#allocation47_spill] sm:$0xff] }
 0x498   : > { %4366 = vst [vmem:[%s7987_s20 + $0x38] sm:$0xff] %v4302_v26  ;;  %4363 = vst [vmem:[%s7987_s20 + $0x20] sm:$0xff] %v4299_v47  ;;  %v2033_v13 = vmul.f32 %v5748_v63, %v7758_v14  ;;  %5761 = vtanh.f32 %v8600_v11  ;;  %v5750_v52 = vpop.eup %5749 }
 0x499   : > { %5763 = vtanh.f32 %v8601_v45  ;;  %v2031_v14 = vmul.f32 %v5750_v52, %v7748_v2 }
 0x49a   : > { %4193 = vrot.lane.b32.xlu1 %v3964_v6, %s6074_s16  ;;  %v4114_v4 = vpop.permute.xlu1 %4113  ;;  %v4124_v43 = vpop.permute.xlu0 %4123 }
 0x49b   : > { %v4300_v37 = vsel %vm940_vm0, %v2027_v61, %v4114_v4  ;;  %v4305_v23 = vsel %vm940_vm0, %v2032_v39, %v4124_v43  ;;  %v8602_v39 = vld [vmem:[#allocation42_spill] sm:$0xff] }
 0x49c   : > { %4364 = vst [vmem:[%s7987_s20 + $0x28] sm:$0xff] %v4300_v37  ;;  %4369 = vst [vmem:[%s7987_s20 + $0x50] sm:$0xff] %v4305_v23  ;;  %5765 = vtanh.f32 %v8602_v39  ;;  %v8608_v39 = vld [vmem:[#allocation46_spill] sm:$0xff] }
 0x49d   : > { %v5752_v8 = vpop.eup %5751  ;;  %5767 = vtanh.f32 %v8603_v20  ;;  %v8609_v20 = vld [vmem:[#allocation51_spill] sm:$0xff] }
 0x49e   : > { %v4126_v7 = vpop.permute.xlu1 %4125  ;;  %v4120_v49 = vpop.permute.xlu0 %4119  ;;  %v2036_v6 = vmul.f32 %v5752_v8, %v7766_v46 }
 0x49f   : > { %v4306_v56 = vsel %vm940_vm0, %v2033_v13, %v4126_v7  ;;  %v4303_v26 = vsel %vm940_vm0, %v2030_v57, %v4120_v49  ;;  %v4979_v47 = vpop.f32.mrf.mxu0  ;;  %v8604_v13 = vld [vmem:[#allocation60_spill] sm:$0xff]  ;;  %v8605_v49 = vld [vmem:[#allocation45_spill] sm:$0xff] }
 0x4a0   : > { %4370 = vst [vmem:[%s7987_s20 + $0x58] sm:$0xff] %v4306_v56  ;;  %4367 = vst [vmem:[%s7987_s20 + $0x40] sm:$0xff] %v4303_v26  ;;  %v3985_v33 = vadd.f32 %v4979_v47, %v7720_v28  ;;  %v5754_v43 = vpop.eup %5753  ;;  %5769 = vtanh.f32 %v8605_v49  ;;  %v8606_v26 = vld [vmem:[#allocation48_spill] sm:$0xff] }
 0x4a1   : > { %v3976_v61 = vpop.f32.mrf.mxu0  ;;  %v5756_v63 = vpop.eup %5755  ;;  %v2034_v57 = vmul.f32 %v5754_v43, %v7756_v31  ;;  %5771 = vtanh.f32 %v8606_v26 }
 0x4a2   : > { %v4122_v38 = vpop.permute.xlu1 %4121  ;;  %4203 = vrot.lane.b32.xlu0 %v3985_v33, %s6074_s16  ;;  %v4132_v4 = vpop.permute.xlu0 %4131  ;;  %v3977_v2 = vadd.f32 %v7720_v28, %v3976_v61  ;;  %v2037_v11 = vmul.f32 %v5756_v63, %v8604_v13  ;;  %5773 = vtanh.f32 %v8608_v39  ;;  %v8610_v63 = vld [vmem:[#allocation59_spill] sm:$0xff] }
 0x4a3   : > { %v4304_v44 = vsel %vm940_vm0, %v2031_v14, %v4122_v38  ;;  %v4309_v37 = vsel %vm940_vm0, %v2036_v6, %v4132_v4  ;;  %v4980_v23 = vpop.f32.mrf.mxu0  ;;  %v5758_v56 = vpop.eup %5757  ;;  %v8607_v14 = vld [vmem:[#allocation58_spill] sm:$0xff]  ;;  %5775 = vtanh.f32 %v8609_v20 }
 0x4a4   : > { %4368 = vst [vmem:[%s7987_s20 + $0x48] sm:$0xff] %v4304_v44  ;;  %4373 = vst [vmem:[%s7987_s20 + $0x70] sm:$0xff] %v4309_v37  ;;  %v3988_v46 = vadd.f32 %v4980_v23, %v7720_v28  ;;  %v5760_v31 = vpop.eup %5759  ;;  %v2035_v6 = vmul.f32 %v5758_v56, %v8607_v14 }
 0x4a5   : > { %v3979_v7 = vpop.f32.mrf.mxu0  ;;  %v2040_v61 = vmul.f32 %v5760_v31, %v7782_v29  ;;  %v5762_v43 = vpop.eup %5761 }
 0x4a6   : > { %4205 = vrot.lane.b32.xlu1 %v3988_v46, %s6074_s16  ;;  %v4134_v52 = vpop.permute.xlu1 %4133  ;;  %4199 = vrot.lane.b32.xlu0 %v3977_v2, %s6074_s16  ;;  %v4128_v45 = vpop.permute.xlu0 %4127  ;;  %v3980_v33 = vadd.f32 %v7720_v28, %v3979_v7  ;;  %v2038_v29 = vmul.f32 %v5762_v43, %v8610_v63  ;;  %v8611_v46 = vld [vmem:[#allocation49_spill] sm:$0xff]  ;;  %v8612_v7 = vld [vmem:[#allocation52_spill] sm:$0xff] }
 0x4a7   : > { %v4310_v47 = vsel %vm940_vm0, %v2037_v11, %v4134_v52  ;;  %v4307_v8 = vsel %vm940_vm0, %v2034_v57, %v4128_v45  ;;  %v5764_v23 = vpop.eup %5763  ;;  %5777 = vtanh.f32 %v8611_v46 }
 0x4a8   : > { %4374 = vst [vmem:[%s7987_s20 + $0x78] sm:$0xff] %v4310_v47  ;;  %4371 = vst [vmem:[%s7987_s20 + $0x60] sm:$0xff] %v4307_v8  ;;  %v2041_v2 = vmul.f32 %v5764_v23, %v7792_v24  ;;  %5779 = vtanh.f32 %v8612_v7  ;;  %v8613_v24 = vld [vmem:[#allocation61_spill] sm:$0xff] }
 0x4a9   : > { %v5766_v11 = vpop.eup %5765 }
 0x4aa   : > { %4201 = vrot.lane.b32.xlu1 %v3980_v33, %s6074_s16  ;;  %v4130_v38 = vpop.permute.xlu1 %4129  ;;  %v4140_v4 = vpop.permute.xlu0 %4139  ;;  %v2039_v47 = vmul.f32 %v5766_v11, %v8613_v24 }
 0x4ab   : > { %v4308_v44 = vsel %vm940_vm0, %v2035_v6, %v4130_v38  ;;  %v4313_v37 = vsel %vm940_vm0, %v2040_v61, %v4140_v4  ;;  %v5768_v56 = vpop.eup %5767  ;;  %v8614_v61 = vld [vmem:[#allocation50_spill] sm:$0xff] }
 0x4ac   : > { %4372 = vst [vmem:[%s7987_s20 + $0x68] sm:$0xff] %v4308_v44  ;;  %4377 = vst [vmem:[%s7987_s20 + $0x90] sm:$0xff] %v4313_v37  ;;  %v2044_v8 = vmul.f32 %v5768_v56, %v7798_v17  ;;  %5781 = vtanh.f32 %v8614_v61 }
 0x4ad   : > { %v5770_v6 = vpop.eup %5769 }
 0x4ae   : > { %v4142_v57 = vpop.permute.xlu1 %4141  ;;  %v4136_v13 = vpop.permute.xlu0 %4135  ;;  %v2042_v44 = vmul.f32 %v5770_v6, %v7790_v15  ;;  %v8615_v15 = vld [vmem:[#allocation53_spill] sm:$0xff] }
 0x4af   : > { %v4314_v49 = vsel %vm940_vm0, %v2041_v2, %v4142_v57  ;;  %v4311_v52 = vsel %vm940_vm0, %v2038_v29, %v4136_v13  ;;  %v4983_v45 = vpop.f32.mrf.mxu0  ;;  %v5772_v43 = vpop.eup %5771  ;;  %5783 = vtanh.f32 %v8615_v15  ;;  %v8618_v15 = vld [vmem:[#allocation63_spill] sm:$0xff] }
 0x4b0   : > { %4378 = vst [vmem:[%s7987_s20 + $0x98] sm:$0xff] %v4314_v49  ;;  %4375 = vst [vmem:[%s7987_s20 + $0x80] sm:$0xff] %v4311_v52  ;;  %v4001_v26 = vadd.f32 %v4983_v45, %v7720_v28  ;;  %v2045_v37 = vmul.f32 %v5772_v43, %v7809_v16  ;;  %v5774_v2 = vpop.eup %5773 }
 0x4b1   : > { %v3992_v31 = vpop.f32.mrf.mxu0  ;;  %v5776_v13 = vpop.eup %5775  ;;  %v2043_v16 = vmul.f32 %v5774_v2, %v7800_v62 }
 0x4b2   : > { %v4138_v33 = vpop.permute.xlu1 %4137  ;;  %4211 = vrot.lane.b32.xlu0 %v4001_v26, %s6074_s16  ;;  %v4148_v14 = vpop.permute.xlu0 %4147  ;;  %v3993_v20 = vadd.f32 %v7720_v28, %v3992_v31  ;;  %v2048_v7 = vmul.f32 %v5776_v13, %v7817_v41 }
 0x4b3   : > { %v4312_v39 = vsel %vm940_vm0, %v2039_v47, %v4138_v33  ;;  %v4317_v38 = vsel %vm940_vm0, %v2044_v8, %v4148_v14  ;;  %v4984_v4 = vpop.f32.mrf.mxu0  ;;  %v8616_v47 = vld [vmem:[#allocation54_spill] sm:$0xff] }
 0x4b4   : > { %4376 = vst [vmem:[%s7987_s20 + $0x88] sm:$0xff] %v4312_v39  ;;  %4381 = vst [vmem:[%s7987_s20 + $0xb0] sm:$0xff] %v4317_v38  ;;  %v4004_v17 = vadd.f32 %v4984_v4, %v7720_v28  ;;  %v5778_v45 = vpop.eup %5777  ;;  %5785 = vtanh.f32 %v8616_v47 }
 0x4b5   : > { %v3995_v23 = vpop.f32.mrf.mxu0  ;;  %v5780_v24 = vpop.eup %5779  ;;  %v2046_v62 = vmul.f32 %v5778_v45, %v7807_v22 }
 0x4b6   : > { %4213 = vrot.lane.b32.xlu1 %v4004_v17, %s6074_s16  ;;  %v4150_v63 = vpop.permute.xlu1 %4149  ;;  %4207 = vrot.lane.b32.xlu0 %v3993_v20, %s6074_s16  ;;  %v4144_v29 = vpop.permute.xlu0 %4143  ;;  %v3996_v11 = vadd.f32 %v7720_v28, %v3995_v23  ;;  %v2049_v41 = vmul.f32 %v5780_v24, %v7829_v9 }
 0x4b7   : > { %v4318_v46 = vsel %vm940_vm0, %v2045_v37, %v4150_v63  ;;  %v4315_v57 = vsel %vm940_vm0, %v2042_v44, %v4144_v29  ;;  %v8617_v63 = vld [vmem:[#allocation62_spill] sm:$0xff] }
 0x4b8   : > { %4382 = vst [vmem:[%s7987_s20 + $0xb8] sm:$0xff] %v4318_v46  ;;  %4379 = vst [vmem:[%s7987_s20 + $0xa0] sm:$0xff] %v4315_v57 }
 0x4b9   : > { %v5782_v61 = vpop.eup %5781 }
 0x4ba   : > { %4209 = vrot.lane.b32.xlu1 %v3996_v11, %s6074_s16  ;;  %v4146_v49 = vpop.permute.xlu1 %4145  ;;  %v4156_v52 = vpop.permute.xlu0 %4155  ;;  %v2047_v38 = vmul.f32 %v5782_v61, %v7819_v48 }
 0x4bb   : > { %v4316_v56 = vsel %vm940_vm0, %v2043_v16, %v4146_v49  ;;  %v4321_v26 = vsel %vm940_vm0, %v2048_v7, %v4156_v52 }
 0x4bc   : > { %4380 = vst [vmem:[%s7987_s20 + $0xa8] sm:$0xff] %v4316_v56  ;;  %4385 = vst [vmem:[%s7987_s20 + $0xd0] sm:$0xff] %v4321_v26  ;;  %v5784_v48 = vpop.eup %5783 }
 0x4bd   : > { %v2050_v29 = vmul.f32 %v5784_v48, %v8617_v63 }
 0x4be   : > { %v4158_v8 = vpop.permute.xlu1 %4157  ;;  %v4152_v31 = vpop.permute.xlu0 %4151 }
 0x4bf   : > { %v4322_v33 = vsel %vm940_vm0, %v2049_v41, %v4158_v8  ;;  %v4319_v14 = vsel %vm940_vm0, %v2046_v62, %v4152_v31  ;;  %v4987_v6 = vpop.f32.mrf.mxu0 }
 0x4c0   : > { %4386 = vst [vmem:[%s7987_s20 + $0xd8] sm:$0xff] %v4322_v33  ;;  %4383 = vst [vmem:[%s7987_s20 + $0xc0] sm:$0xff] %v4319_v14  ;;  %v4017_v39 = vadd.f32 %v4987_v6, %v7720_v28 }
 0x4c1   : > { %v4008_v4 = vpop.f32.mrf.mxu0 }
 0x4c2   : > { %v4154_v22 = vpop.permute.xlu1 %4153  ;;  %4219 = vrot.lane.b32.xlu0 %v4017_v39, %s6074_s16  ;;  %v4009_v20 = vadd.f32 %v7720_v28, %v4008_v4 }
 0x4c3   : > { %v4320_v9 = vsel %vm940_vm0, %v2047_v38, %v4154_v22  ;;  %v4988_v43 = vpop.f32.mrf.mxu0 }
 0x4c4   : > { %4384 = vst [vmem:[%s7987_s20 + $0xc8] sm:$0xff] %v4320_v9  ;;  %v4020_v17 = vadd.f32 %v4988_v43, %v7720_v28  ;;  %v4164_v44 = vpop.permute.xlu0 %4163 }
 0x4c5   : > { %v4325_v37 = vsel %vm940_vm0, %v7839_v36, %v4164_v44  ;;  %v4011_v23 = vpop.f32.mrf.mxu0  ;;  %v5786_v36 = vpop.eup %5785 }
 0x4c6   : > { %4389 = vst [vmem:[%s7987_s20 + $0xf0] sm:$0xff] %v4325_v37  ;;  %4221 = vrot.lane.b32.xlu1 %v4020_v17, %s6074_s16  ;;  %4215 = vrot.lane.b32.xlu0 %v4009_v20, %s6074_s16  ;;  %v4012_v2 = vadd.f32 %v7720_v28, %v4011_v23  ;;  %v2051_v16 = vmul.f32 %v5786_v36, %v8618_v15  ;;  %v8620_v15 = vld [vmem:[#allocation68_spill] sm:$0xff] }
 0x4c8   : > { %v4166_v46 = vpop.permute.xlu1 %4165  ;;  %v4160_v57 = vpop.permute.xlu0 %4159 }
 0x4c9   : > { %v4326_v13 = vsel %vm940_vm0, %v7849_v12, %v4166_v46  ;;  %v4323_v11 = vsel %vm940_vm0, %v2050_v29, %v4160_v57  ;;  %v5787_v12 = vld [vmem:[%s8296_s7] ss:$0 sm:$0xff] }
 0x4ca   : > { %4390 = vst [vmem:[%s7987_s20 + $0xf8] sm:$0xff] %v4326_v13  ;;  %4387 = vst [vmem:[%s7987_s20 + $0xe0] sm:$0xff] %v4323_v11  ;;  %4217 = vrot.lane.b32.xlu1 %v4012_v2, %s6074_s16  ;;  %v8619_v13 = vld [vmem:[#allocation65_spill] sm:$0xff] }
 0x4cc   : > { %v4162_v7 = vpop.permute.xlu1 %4161 }
 0x4cd   : > { %v4324_v49 = vsel %vm940_vm0, %v2051_v16, %v4162_v7  ;;  %v8621_v16 = vld [vmem:[#allocation64_spill] sm:$0xff] }
 0x4ce   : > { %4388 = vst [vmem:[%s7987_s20 + $0xe8] sm:$0xff] %v4324_v49  ;;  %v8622_v49 = vld [vmem:[#allocation66_spill] sm:$0xff] }
 0x4cf   : > { %v4991_v28 = vpop.f32.mrf.mxu0 }
 0x4d0   : > { %v4033_v62 = vadd.f32 %v5787_v12, %v4991_v28 }
 0x4d1   : > { %v4024_v52 = vpop.f32.mrf.mxu0 }
 0x4d2   : > { %v4025_v45 = vadd.f32 %v5787_v12, %v4024_v52 }
 0x4d3   : > { %v4992_v56 = vpop.f32.mrf.mxu0 }
 0x4d4   : > { %4223 = vrot.lane.b32.xlu0 %v4025_v45, %s6074_s16  ;;  %v4172_v26 = vpop.permute.xlu0 %4171 }
 0x4d5   : > { %v4329_v24 = vsel %vm940_vm0, %v7856_v27, %v4172_v26  ;;  %v4027_v47 = vpop.f32.mrf.mxu0  ;;  %v4036_v27 = vadd.f32 %v5787_v12, %v4992_v56 }
 0x4d6   : > { %4393 = vst [vmem:[%s7987_s20 + $0x110] sm:$0xff] %v4329_v24  ;;  %v4028_v41 = vadd.f32 %v5787_v12, %v4027_v47  ;;  %v8623_v12 = vld [vmem:[#allocation69_spill] sm:$0xff]  ;;  %v8624_v47 = vld [vmem:[#allocation67_spill] sm:$0xff] }
 0x4d8   : > { %4225 = vrot.lane.b32.xlu1 %v4028_v41, %s6074_s16  ;;  %v4174_v8 = vpop.permute.xlu1 %4173  ;;  %4227 = vrot.lane.b32.xlu0 %v4033_v62, %s6074_s16  ;;  %v4168_v31 = vpop.permute.xlu0 %4167 }
 0x4d9   : > { %v4330_v33 = vsel %vm940_vm0, %v7867_v21, %v4174_v8  ;;  %v4327_v14 = vsel %vm940_vm0, %v7847_v1, %v4168_v31  ;;  %v8625_v8 = vld [vmem:[#allocation70_spill] sm:$0xff] }
 0x4da   : > { %4394 = vst [vmem:[%s7987_s20 + $0x118] sm:$0xff] %v4330_v33  ;;  %4391 = vst [vmem:[%s7987_s20 + $0x100] sm:$0xff] %v4327_v14  ;;  %v8626_v14 = vld [vmem:[#allocation71_spill] sm:$0xff] }
 0x4dc   : > { %4229 = vrot.lane.b32.xlu1 %v4036_v27, %s6074_s16  ;;  %v4170_v6 = vpop.permute.xlu1 %4169 }
 0x4dd   : > { %v4328_v61 = vsel %vm940_vm0, %v7858_v34, %v4170_v6 }
 0x4de   : > { %4392 = vst [vmem:[%s7987_s20 + $0x108] sm:$0xff] %v4328_v61 }
 0x4e4   : > { %v4180_v39 = vpop.permute.xlu0 %4179 }
 0x4e5   : > { %v4333_v21 = vsel %vm940_vm0, %v7875_v42, %v4180_v39 }
 0x4e6   : > { %4397 = vst [vmem:[%s7987_s20 + $0x130] sm:$0xff] %v4333_v21 }
 0x4e8   : > { %v4182_v38 = vpop.permute.xlu1 %4181  ;;  %v4176_v1 = vpop.permute.xlu0 %4175 }
 0x4e9   : > { %v4334_v4 = vsel %vm940_vm0, %v7885_v58, %v4182_v38  ;;  %v4331_v22 = vsel %vm940_vm0, %v7865_v5, %v4176_v1 }
 0x4ea   : > { %4398 = vst [vmem:[%s7987_s20 + $0x138] sm:$0xff] %v4334_v4  ;;  %4395 = vst [vmem:[%s7987_s20 + $0x120] sm:$0xff] %v4331_v22 }
 0x4ec   : > { %v4178_v34 = vpop.permute.xlu1 %4177 }
 0x4ed   : > { %v4332_v9 = vsel %vm940_vm0, %v7877_v59, %v4178_v34 }
 0x4ee   : > { %4396 = vst [vmem:[%s7987_s20 + $0x128] sm:$0xff] %v4332_v9 }
 0x4f4   : > { %v4188_v42 = vpop.permute.xlu0 %4187 }
 0x4f5   : > { %v4337_v43 = vsel %vm940_vm0, %v7889_v3, %v4188_v42 }
 0x4f6   : > { %4401 = vst [vmem:[%s7987_s20 + $0x150] sm:$0xff] %v4337_v43 }
 0x4f8   : > { %v4190_v20 = vpop.permute.xlu1 %4189  ;;  %v4184_v58 = vpop.permute.xlu0 %4183 }
 0x4f9   : > { %v4338_v5 = vsel %vm940_vm0, %v7899_v18, %v4190_v20  ;;  %v4335_v17 = vsel %vm940_vm0, %v7883_v25, %v4184_v58 }
 0x4fa   : > { %4402 = vst [vmem:[%s7987_s20 + $0x158] sm:$0xff] %v4338_v5  ;;  %4399 = vst [vmem:[%s7987_s20 + $0x140] sm:$0xff] %v4335_v17 }
 0x4fc   : > { %v4186_v59 = vpop.permute.xlu1 %4185 }
 0x4fd   : > { %v4336_v44 = vsel %vm940_vm0, %v7891_v32, %v4186_v59 }
 0x4fe   : > { %4400 = vst [vmem:[%s7987_s20 + $0x148] sm:$0xff] %v4336_v44 }
 0x504   : > { %v4196_v3 = vpop.permute.xlu0 %4195 }
 0x505   : > { %v4341_v37 = vsel %vm940_vm0, %v7907_v35, %v4196_v3 }
 0x506   : > { %4405 = vst [vmem:[%s7987_s20 + $0x170] sm:$0xff] %v4341_v37 }
 0x508   : > { %v4198_v23 = vpop.permute.xlu1 %4197  ;;  %v4192_v18 = vpop.permute.xlu0 %4191 }
 0x509   : > { %v4342_v25 = vsel %vm940_vm0, %v7917_v53, %v4198_v23  ;;  %v4339_v48 = vsel %vm940_vm0, %v7897_v51, %v4192_v18 }
 0x50a   : > { %4406 = vst [vmem:[%s7987_s20 + $0x178] sm:$0xff] %v4342_v25  ;;  %4403 = vst [vmem:[%s7987_s20 + $0x160] sm:$0xff] %v4339_v48 }
 0x50c   : > { %v4194_v32 = vpop.permute.xlu1 %4193 }
 0x50d   : > { %v4340_v63 = vsel %vm940_vm0, %v7909_v50, %v4194_v32 }
 0x50e   : > { %4404 = vst [vmem:[%s7987_s20 + $0x168] sm:$0xff] %v4340_v63 }
 0x514   : > { %v4204_v35 = vpop.permute.xlu0 %4203 }
 0x515   : > { %v4345_v29 = vsel %vm940_vm0, %v7921_v40, %v4204_v35 }
 0x516   : > { %4409 = vst [vmem:[%s7987_s20 + $0x190] sm:$0xff] %v4345_v29 }
 0x518   : > { %v4206_v2 = vpop.permute.xlu1 %4205  ;;  %v4200_v53 = vpop.permute.xlu0 %4199 }
 0x519   : > { %v4346_v51 = vsel %vm940_vm0, %v7931_v54, %v4206_v2  ;;  %v4343_v46 = vsel %vm940_vm0, %v7915_v19, %v4200_v53 }
 0x51a   : > { %4410 = vst [vmem:[%s7987_s20 + $0x198] sm:$0xff] %v4346_v51  ;;  %4407 = vst [vmem:[%s7987_s20 + $0x180] sm:$0xff] %v4343_v46 }
 0x51c   : > { %v4202_v50 = vpop.permute.xlu1 %4201 }
 0x51d   : > { %v4344_v57 = vsel %vm940_vm0, %v7923_v0, %v4202_v50 }
 0x51e   : > { %4408 = vst [vmem:[%s7987_s20 + $0x188] sm:$0xff] %v4344_v57 }
 0x524   : > { %v4212_v40 = vpop.permute.xlu0 %4211 }
 0x525   : > { %v4349_v11 = vsel %vm940_vm0, %v8619_v13, %v4212_v40 }
 0x526   : > { %4413 = vst [vmem:[%s7987_s20 + $0x1b0] sm:$0xff] %v4349_v11 }
 0x528   : > { %v4214_v36 = vpop.permute.xlu1 %4213  ;;  %v4208_v54 = vpop.permute.xlu0 %4207 }
 0x529   : > { %v4350_v19 = vsel %vm940_vm0, %v8620_v15, %v4214_v36  ;;  %v4347_v7 = vsel %vm940_vm0, %v8621_v16, %v4208_v54 }
 0x52a   : > { %4414 = vst [vmem:[%s7987_s20 + $0x1b8] sm:$0xff] %v4350_v19  ;;  %4411 = vst [vmem:[%s7987_s20 + $0x1a0] sm:$0xff] %v4347_v7 }
 0x52c   : > { %v4210_v0 = vpop.permute.xlu1 %4209 }
 0x52d   : > { %v4348_v28 = vsel %vm940_vm0, %v8622_v49, %v4210_v0 }
 0x52e   : > { %4412 = vst [vmem:[%s7987_s20 + $0x1a8] sm:$0xff] %v4348_v28 }
 0x534   : > { %v4220_v52 = vpop.permute.xlu0 %4219 }
 0x535   : > { %v4353_v45 = vsel %vm940_vm0, %v8623_v12, %v4220_v52 }
 0x536   : > { %4417 = vst [vmem:[%s7987_s20 + $0x1d0] sm:$0xff] %v4353_v45 }
 0x538   : > { %v4222_v56 = vpop.permute.xlu1 %4221  ;;  %v4216_v26 = vpop.permute.xlu0 %4215 }
 0x539   : > { %v4354_v24 = vsel %vm940_vm0, %v7965_v55, %v4222_v56  ;;  %v4351_v62 = vsel %vm940_vm0, %v8624_v47, %v4216_v26 }
 0x53a   : > { %4418 = vst [vmem:[%s7987_s20 + $0x1d8] sm:$0xff] %v4354_v24  ;;  %4415 = vst [vmem:[%s7987_s20 + $0x1c0] sm:$0xff] %v4351_v62 }
 0x53c   : > { %v4218_v41 = vpop.permute.xlu1 %4217 }
 0x53d   : > { %v4352_v31 = vsel %vm940_vm0, %v8625_v8, %v4218_v41 }
 0x53e   : > { %4416 = vst [vmem:[%s7987_s20 + $0x1c8] sm:$0xff] %v4352_v31 }
 0x546   : > { %v4224_v33 = vpop.permute.xlu0 %4223 }
 0x547   : > { %v4355_v27 = vsel %vm940_vm0, %v8626_v14, %v4224_v33 }
 0x548   : > { %4419 = vst [vmem:[%s7987_s20 + $0x1e0] sm:$0xff] %v4355_v27 }
 0x54a   : > { %v4226_v55 = vpop.permute.xlu1 %4225  ;;  %v4228_v6 = vpop.permute.xlu0 %4227 }
 0x54b   : > { %v4356_v61 = vsel %vm940_vm0, %v7975_v60, %v4226_v55  ;;  %v4357_v39 = vsel %vm940_vm0, %v7973_v10, %v4228_v6 }
 0x54c   : > { %4420 = vst [vmem:[%s7987_s20 + $0x1e8] sm:$0xff] %v4356_v61  ;;  %4421 = vst [vmem:[%s7987_s20 + $0x1f0] sm:$0xff] %v4357_v39 }
 0x54e   : > { %v4230_v21 = vpop.permute.xlu1 %4229 }
 0x54f   : > { %v4358_v38 = vsel %vm940_vm0, %v7982_v30, %v4230_v21 }
 0x550   : > { %4422 = vst [vmem:[%s7987_s20 + $0x1f8] sm:$0xff] %v4358_v38 }
 0x551   : > { %5991 = shalt.err (!%p5988_p13)
}
 0x552   : > { %s5992_s14 = scalar_lea.hbm %s8241_s12, 8192  ;;  %s5996_s25 = scalar_lea.hbm %s8297_s8, 16384 }
 0x553   : > { %p5993_p3 = scmp.ne.s32.totalorder %s8241_s12, %s5992_s14  ;;  %p5997_p7 = scmp.lt.s32.totalorder %s8241_s12, %s8297_s8 }
 0x554   : > { %p5998_p12 = scmp.lt.s32.totalorder %s5996_s25, %s5992_s14 }
 0x555   : > { %p5994_p2 = pnand %p5993_p3, %p8627_p10 }
 0x556   : > { %p5999_p8 = por %p5998_p12, %p5997_p7 }
 0x557   : > { %p5995_p11 = pneg %p5994_p2 }
 0x559   : > { %p6000_p9 = pnand %p5999_p8, %p5995_p11 }
 0x55b   : > { %6003 = shalt.err (!%p6000_p9)
}
 0x55c   : > { %s6076_s22 = smov 128   ;;  %s6077_s20 = smov 8  }
 0x55d   : > { %5037 = dma.vmem_to_hbm [thread:$0]  (%p8627_p10), %s8243_s13, 8192, %s8241_s12, %s4424_s9, %s6076_s22, %s6076_s22, %s6077_s20  }
 0x55e PF: > { %s4453_s5 = sand.u32 1, %s6046_s27   ;;  %p8628_p1 = scmp.ne.s32.totalorder %s8405_s18, 0 }
 0x55f   : > { %p8629_p5 = scmp.ge.s32.totalorder %s6058_s30, 2  ;;  %s4454_s29 = scalar_lea.sflag [#allocation4], %s4453_s5 }
 0x561   : > { %p5063_p4 = pnand %p8629_p5, %p8628_p1 }
 0x563   : > { %p5064_p0 = pneg %p5063_p4 }
 0x565   : > { %6041 = dma.done.wait (%p5064_p0), %s4454_s29, 8192  }
 0x566   : > { %6043 = vsyncadd (%p5064_p0), %s4454_s29, 4294959104  ;;  %s8630_s30 = sld [smem:[#allocation22_spill]]  ;;  %s8633_s27 = smov %s6050_s28 }
 0x567   : > { %s8631_s11 = sld [smem:[#allocation21_spill]] }
 0x568   : > { %s8632_s29 = sld [smem:[#allocation23_spill]] }
 0x56c   : > { %p28_p6 = scmp.ge.s32.totalorder %s8630_s30, 4  }
 0x56d   : > { %s8634_s28 = smov %s8631_s11 }
 0x56e   :  { %30 = sbr.rel (!%p28_p6) target bundleno = 15 (0xf), region = 146 }
 0x573   :  { %4459 = vsyncpa [#allocation3], 1 }
 0x574   :  { %4461 = vsyncpa [#allocation3 + $0x1], 1 }
 0x575   :  { %4462 = vsyncpa [#allocation6], 1 }
 0x576   :  { %4464 = vsyncpa [#allocation6 + $0x1], 1 }
 0x577   :  { %4465 = vsyncpa [#allocation9], 1 }
 0x578   :  { %4467 = vsyncpa [#allocation9 + $0x1], 1 }
 0x579   :  { %4468 = vsyncpa [#allocation12], 1 }
 0x57a   :  { %4469 = vsyncpa [#allocation4], 1 }
 0x57b   :  { %4471 = vsyncpa [#allocation4 + $0x1], 1 }

</bundles_post_ra>
